<compile_context>
chip_gen: v7x
topology: tpu7x:2x2x1
jax: 0.10.0
libtpu: 0.0.40
codegen_flags: <defaults>
</compile_context>

<pallas_src>
import functools
import numpy as np
import jax
import jax.numpy as jnp
from jax.experimental import pallas as pl
from jax.experimental.pallas import tpu as pltpu

INPUT = 66      # LSTM input size
H = 256         # LSTM hidden size
G = 4 * H       # gate width (i, f, g, o)
FC1 = 128
FC2 = 16


def _sigmoid(v):
    # sigmoid(x) == 0.5 * tanh(0.5 x) + 0.5  -> single EUP op + cheap VPU ops.
    return 0.5 * jnp.tanh(0.5 * v) + 0.5


# ----------------------------------------------------------------------------
# Direction-major kernel: one grid step per LSTM direction.
#   step d: hoisted input projection (bf16 MXU) -> unrolled recurrence ->
#           d==0: stash final h in scratch; d==1: build h_hat and run FC head.
# ----------------------------------------------------------------------------
def lstm_fc_dir_kernel(x_ref,        # (T*Bp, I)  bf16, time-major (already reversed for d==1)
                       wih_ref,      # (I, G)     bf16, this direction's W_ih^T
                       bx_ref,       # (1, G)     f32, folded b_ih + b_hh
                       whh_ref,      # (H, G)     bf16, this direction's W_hh^T
                       w1_ref,       # (2H, FC1)  bf16
                       b1_ref,       # (1, FC1)   f32
                       w2_ref,       # (FC1, FC2) bf16
                       b2_ref,       # (1, FC2)   f32
                       out_ref,      # (B, FC2)   f32
                       gates_ref,    # VMEM scratch (T*Bp, G) f32
                       hsave_ref,    # VMEM scratch (Bp, H)   f32 (fwd final h)
                       *, T, B, Bp):
    d = pl.program_id(0)

    # ---- hoisted input projection for this direction: one MXU matmul for all T ----
    gates_ref[...] = (
        jnp.dot(x_ref[...], wih_ref[...], preferred_element_type=jnp.float32)
        + bx_ref[...])

    # ---- recurrence: T steps, h/c carried in registers, gate slices tile-aligned ----
    def body(t, carry):
        h, c = carry
        row = pl.multiple_of(t * Bp, Bp)
        gx = gates_ref[pl.ds(row, Bp), :]                       # (Bp, G) f32
        gates = gx + jnp.dot(h.astype(jnp.bfloat16), whh_ref[...],
                             preferred_element_type=jnp.float32)
        i = _sigmoid(gates[:, 0 * H:1 * H])
        f = _sigmoid(gates[:, 1 * H:2 * H])
        g = jnp.tanh(gates[:, 2 * H:3 * H])
        o = _sigmoid(gates[:, 3 * H:4 * H])
        c_new = f * c + i * g
        h_new = o * jnp.tanh(c_new)
        return h_new, c_new

    h0 = jnp.zeros((Bp, H), jnp.float32)
    c0 = jnp.zeros((Bp, H), jnp.float32)
    h_fin, _ = jax.lax.fori_loop(0, T, body, (h0, c0), unroll=True)

    # ---- forward direction: stash final hidden state for the epilogue ----
    @pl.when(d == 0)
    def _():
        hsave_ref[...] = h_fin

    # ---- last direction: h_hat (torch .view semantics) + fused FC head ----
    @pl.when(d == pl.num_programs(0) - 1)
    def _():
        hf = hsave_ref[...]     # (Bp, H) forward final h
        hb = h_fin              # (Bp, H) backward final h

        # h = (2, B, H) flattened row-major; chunk c (length H) = hf[c] if c<B else hb[c-B].
        # h_hat[b] = [chunk(2b), chunk(2b+1)]  (raw .view reinterpretation, B is the TRUE batch).
        def chunk(c):
            if c < B:
                return hf[c:c + 1, :]
            return hb[c - B:c - B + 1, :]

        even = jnp.concatenate([chunk(2 * b) for b in range(B)], axis=0)      # (B, H)
        odd = jnp.concatenate([chunk(2 * b + 1) for b in range(B)], axis=0)   # (B, H)
        h_hat = jnp.concatenate([even, odd], axis=1)                          # (B, 2H)

        z = (jnp.dot(h_hat.astype(jnp.bfloat16), w1_ref[...],
                     preferred_element_type=jnp.float32) + b1_ref[...])
        z = jnp.maximum(z, 0.0)
        out_ref[...] = (jnp.dot(z.astype(jnp.bfloat16), w2_ref[...],
                                preferred_element_type=jnp.float32) + b2_ref[...])


# ----------------------------------------------------------------------------
# Full model forward (single Pallas call, direction-major grid)
# ----------------------------------------------------------------------------
def model_lstmfc_forward(x, lstm_params, fc_params):
    """x: (B, T, 66) float32 (batch_first, like the PyTorch module)."""
    B, T, I = x.shape
    assert I == INPUT
    Bp = ((B + 7) // 8) * 8          # sublane-aligned batch pad
    wihf, whhf, bihf, bhhf, wihb, whhb, bihb, bhhb = lstm_params
    w1, b1, w2, b2 = fc_params

    # Time-major, batch padded to Bp, flattened: rows [t*Bp:(t+1)*Bp] = x[:, t, :] (padded).
    x_tm = jnp.transpose(x, (1, 0, 2))                       # (T, B, I)
    x_tm = jnp.pad(x_tm, ((0, 0), (0, Bp - B), (0, 0)))      # (T, Bp, I)
    x_fwd = x_tm.reshape(T * Bp, I)
    x_bwd = x_tm[::-1].reshape(T * Bp, I)                    # pre-reversed for bwd direction
    x_all = jnp.stack([x_fwd, x_bwd], axis=0).astype(jnp.bfloat16)   # (2, T*Bp, I)

    # Per-direction weights (bf16 matmul operands, f32 biases).
    wih_all = jnp.stack([wihf.T, wihb.T], axis=0).astype(jnp.bfloat16)       # (2, I, G)
    whh_all = jnp.stack([whhf.T, whhb.T], axis=0).astype(jnp.bfloat16)       # (2, H, G)
    bx_all = jnp.stack([(bihf + bhhf).reshape(1, G),
                        (bihb + bhhb).reshape(1, G)], axis=0)                # (2, 1, G) f32

    w1_t = w1.T.astype(jnp.bfloat16)          # (2H, FC1)
    w2_t = w2.T.astype(jnp.bfloat16)          # (FC1, FC2)
    b1r = b1.reshape(1, FC1)
    b2r = b2.reshape(1, FC2)

    kernel = functools.partial(lstm_fc_dir_kernel, T=T, B=B, Bp=Bp)

    grid_spec = pltpu.PrefetchScalarGridSpec(
        num_scalar_prefetch=0,
        grid=(2,),   # direction-major: d=0 forward, d=1 backward (+ FC epilogue)
        in_specs=[
            pl.BlockSpec((None, T * Bp, I), lambda d: (d, 0, 0)),   # x (per direction)
            pl.BlockSpec((None, I, G), lambda d: (d, 0, 0)),        # W_ih^T (per direction)
            pl.BlockSpec((None, 1, G), lambda d: (d, 0, 0)),        # folded bias (per direction)
            pl.BlockSpec((None, H, G), lambda d: (d, 0, 0)),        # W_hh^T (per direction)
            pl.BlockSpec((2 * H, FC1), lambda d: (0, 0)),           # fc1 weight (shared)
            pl.BlockSpec((1, FC1), lambda d: (0, 0)),               # fc1 bias
            pl.BlockSpec((FC1, FC2), lambda d: (0, 0)),             # fc2 weight
            pl.BlockSpec((1, FC2), lambda d: (0, 0)),               # fc2 bias
        ],
        out_specs=pl.BlockSpec((B, FC2), lambda d: (0, 0)),
        scratch_shapes=[
            pltpu.VMEM((T * Bp, G), jnp.float32),   # hoisted x-gates (current direction)
            pltpu.VMEM((Bp, H), jnp.float32),       # forward final h, carried across steps
        ],
    )

    return pl.pallas_call(
        kernel,
        out_shape=jax.ShapeDtypeStruct((B, FC2), jnp.float32),
        grid_spec=grid_spec,
        compiler_params=pltpu.CompilerParams(
            dimension_semantics=("arbitrary",)),   # d=1 depends on d=0's scratch
    )(x_all, wih_all, bx_all, whh_all, w1_t, b1r, w2_t, b2r)


# ----------------------------------------------------------------------------
# Pure-JAX f32 reference (for validation)
# ----------------------------------------------------------------------------
def _lstm_dir_ref(x_tm, w_ih, w_hh, b_ih, b_hh):
    B = x_tm.shape[1]

    def step(carry, x_t):
        h, c = carry
        gates = x_t @ w_ih.T + b_ih + h @ w_hh.T + b_hh
        i, f, g, o = jnp.split(gates, 4, axis=-1)
        i = jax.nn.sigmoid(i)
        f = jax.nn.sigmoid(f)
        g = jnp.tanh(g)
        o = jax.nn.sigmoid(o)
        c = f * c + i * g
        h = o * jnp.tanh(c)
        return (h, c), None

    init = (jnp.zeros((B, H), jnp.float32), jnp.zeros((B, H), jnp.float32))
    (h_fin, _), _ = jax.lax.scan(step, init, x_tm)
    return h_fin


def model_lstmfc_reference(x, lstm_params, fc_params):
    B = x.shape[0]
    x_tm = jnp.transpose(x, (1, 0, 2))
    wihf, whhf, bihf, bhhf, wihb, whhb, bihb, bhhb = lstm_params
    h_f = _lstm_dir_ref(x_tm, wihf, whhf, bihf, bhhf)
    h_b = _lstm_dir_ref(x_tm[::-1], wihb, whhb, bihb, bhhb)
    h = jnp.stack([h_f, h_b], axis=0)              # (2, B, H)
    h_hat = jnp.reshape(h, (B, 2 * H))             # raw .view semantics
    w1, b1, w2, b2 = fc_params
    z = jnp.maximum(h_hat @ w1.T + b1, 0.0)
    return z @ w2.T + b2


# ----------------------------------------------------------------------------
# Deterministic parameter init (shapes from the PyTorch module __init__)
# ----------------------------------------------------------------------------
def init_params(key):
    ks = jax.random.split(key, 12)
    s_lstm = 1.0 / np.sqrt(H)

    def u(k, shape, s):
        return jax.random.uniform(k, shape, jnp.float32, -s, s)

    lstm_params = (
        u(ks[0], (G, INPUT), s_lstm),  # weight_ih_l0
        u(ks[1], (G, H), s_lstm),      # weight_hh_l0
        u(ks[2], (G,), s_lstm),        # bias_ih_l0
        u(ks[3], (G,), s_lstm),        # bias_hh_l0
        u(ks[4], (G, INPUT), s_lstm),  # weight_ih_l0_reverse
        u(ks[5], (G, H), s_lstm),      # weight_hh_l0_reverse
        u(ks[6], (G,), s_lstm),        # bias_ih_l0_reverse
        u(ks[7], (G,), s_lstm),        # bias_hh_l0_reverse
    )
    fc_params = (
        u(ks[8], (FC1, 2 * H), 1.0 / np.sqrt(2 * H)),   # fc1.weight (128, 512)
        u(ks[9], (FC1,), 1.0 / np.sqrt(2 * H)),         # fc1.bias
        u(ks[10], (FC2, FC1), 1.0 / np.sqrt(FC1)),      # fc2.weight (16, 128)
        u(ks[11], (FC2,), 1.0 / np.sqrt(FC1)),          # fc2.bias
    )
    return lstm_params, fc_params


if __name__ == "__main__":
    key = jax.random.PRNGKey(0)
    k_param, k_x = jax.random.split(key)
    lstm_params, fc_params = init_params(k_param)

    B, T = 2, 8
    x = jax.random.normal(k_x, (B, T, INPUT), jnp.float32)

    out = model_lstmfc_forward(x, lstm_params, fc_params)
    out = jax.block_until_ready(out)

    ref = jax.block_until_ready(model_lstmfc_reference(x, lstm_params, fc_params))
    # bf16 matmul operands through an 8-step recurrence: loosen parity vs f32 reference.
    np.testing.assert_allclose(np.asarray(out), np.asarray(ref), rtol=3e-2, atol=3e-2)
    assert out.shape == (B, FC2)

    print("KERNEL_OK")
</pallas_src>

<mosaic_0001>
module attributes {stable_mosaic.version = 11 : i64} {
  func.func @lstm_fc_dir_kernel(%arg0: i32, %arg1: memref<1x64x66xbf16, #tpu.memory_space<vmem>>, %arg2: memref<1x66x1024xbf16, #tpu.memory_space<vmem>>, %arg3: memref<1x1x1024xf32, #tpu.memory_space<vmem>>, %arg4: memref<1x256x1024xbf16, #tpu.memory_space<vmem>>, %arg5: memref<512x128xbf16, #tpu.memory_space<vmem>>, %arg6: memref<1x128xf32, #tpu.memory_space<vmem>>, %arg7: memref<128x16xbf16, #tpu.memory_space<vmem>>, %arg8: memref<1x16xf32, #tpu.memory_space<vmem>>, %arg9: memref<2x16xf32, #tpu.memory_space<vmem>>, %arg10: memref<64x1024xf32, #tpu.memory_space<vmem>>, %arg11: memref<8x256xf32, #tpu.memory_space<vmem>>) attributes {dimension_semantics = [#tpu.dimension_semantics<arbitrary>], iteration_bounds = array<i64: 2>, scalar_prefetch = 0 : i64, scratch_operands = 2 : i64, tpu.core_type = #tpu.core_type<tc>, window_params = [{transform_indices = @transform_0, window_bounds = array<i64: 1, 64, 66>}, {transform_indices = @transform_1, window_bounds = array<i64: 1, 66, 1024>}, {transform_indices = @transform_2, window_bounds = array<i64: 1, 1, 1024>}, {transform_indices = @transform_3, window_bounds = array<i64: 1, 256, 1024>}, {pipeline_mode = #tpu.pipeline_mode<synchronous>, transform_indices = @transform_4, window_bounds = array<i64: 512, 128>}, {pipeline_mode = #tpu.pipeline_mode<synchronous>, transform_indices = @transform_5, window_bounds = array<i64: 1, 128>}, {pipeline_mode = #tpu.pipeline_mode<synchronous>, transform_indices = @transform_6, window_bounds = array<i64: 128, 16>}, {pipeline_mode = #tpu.pipeline_mode<synchronous>, transform_indices = @transform_7, window_bounds = array<i64: 1, 16>}, {pipeline_mode = #tpu.pipeline_mode<synchronous>, transform_indices = @transform_8, window_bounds = array<i64: 2, 16>}]} {
    %c0 = arith.constant 0 : index
    %c0_0 = arith.constant 0 : index
    %c0_1 = arith.constant 0 : index
    %0 = vector.load %arg1[%c0, %c0_0, %c0_1] : memref<1x64x66xbf16, #tpu.memory_space<vmem>>, vector<1x64x66xbf16>
    %1 = vector.shape_cast %0 : vector<1x64x66xbf16> to vector<64x66xbf16>
    %c0_2 = arith.constant 0 : index
    %c0_3 = arith.constant 0 : index
    %c0_4 = arith.constant 0 : index
    %2 = vector.load %arg2[%c0_2, %c0_3, %c0_4] : memref<1x66x1024xbf16, #tpu.memory_space<vmem>>, vector<1x66x1024xbf16>
    %3 = vector.shape_cast %2 : vector<1x66x1024xbf16> to vector<66x1024xbf16>
    %cst = arith.constant dense<0.000000e+00> : vector<64x1024xf32>
    %4 = tpu.matmul %1, %3, %cst {dimension_numbers = #tpu.dot_dimension_numbers<[1], [0], [0], [1], [0, 0, 1, 1], [], []>} : vector<64x66xbf16>, vector<66x1024xbf16>, vector<64x1024xf32> -> vector<64x1024xf32>
    %c0_5 = arith.constant 0 : index
    %c0_6 = arith.constant 0 : index
    %c0_7 = arith.constant 0 : index
    %5 = vector.load %arg3[%c0_5, %c0_6, %c0_7] : memref<1x1x1024xf32, #tpu.memory_space<vmem>>, vector<1x1x1024xf32>
    %6 = vector.shape_cast %5 : vector<1x1x1024xf32> to vector<1x1024xf32>
    %7 = vector.broadcast %6 : vector<1x1024xf32> to vector<64x1024xf32>
    %8 = arith.addf %4, %7 : vector<64x1024xf32>
    %c0_8 = arith.constant 0 : index
    %c0_9 = arith.constant 0 : index
    %9 = vector.load %arg10[%c0_8, %c0_9] : memref<64x1024xf32, #tpu.memory_space<vmem>>, vector<64x1024xf32>
    tpu.vector_store %arg10[%c0_8, %c0_9], %8 {strides = array<i32>} : memref<64x1024xf32, #tpu.memory_space<vmem>>, vector<64x1024xf32>,
    %cst_10 = arith.constant 0.000000e+00 : f32
    %10 = vector.broadcast %cst_10 : f32 to vector<8x256xf32>
    %cst_11 = arith.constant 0.000000e+00 : f32
    %11 = vector.broadcast %cst_11 : f32 to vector<8x256xf32>
    %c0_i32 = arith.constant 0 : i32
    %c8_i32 = arith.constant 8 : i32
    %12 = arith.muli %c0_i32, %c8_i32 : i32
    %13 = tpu.assume_multiple %12, 8 : i32
    %14 = arith.index_cast %13 : i32 to index
    %c0_12 = arith.constant 0 : index
    %15 = vector.load %arg10[%14, %c0_12] : memref<64x1024xf32, #tpu.memory_space<vmem>>, vector<8x1024xf32>
    %16 = arith.truncf %10 : vector<8x256xf32> to vector<8x256xbf16>
    %c0_13 = arith.constant 0 : index
    %c0_14 = arith.constant 0 : index
    %c0_15 = arith.constant 0 : index
    %17 = vector.load %arg4[%c0_13, %c0_14, %c0_15] : memref<1x256x1024xbf16, #tpu.memory_space<vmem>>, vector<1x256x1024xbf16>
    %18 = vector.shape_cast %17 : vector<1x256x1024xbf16> to vector<256x1024xbf16>
    %cst_16 = arith.constant dense<0.000000e+00> : vector<8x1024xf32>
    %19 = tpu.matmul %16, %18, %cst_16 {dimension_numbers = #tpu.dot_dimension_numbers<[1], [0], [0], [1], [0, 0, 1, 1], [], []>} : vector<8x256xbf16>, vector<256x1024xbf16>, vector<8x1024xf32> -> vector<8x1024xf32>
    %20 = arith.addf %15, %19 : vector<8x1024xf32>
    %21 = vector.extract_strided_slice %20 {offsets = [0, 0], sizes = [8, 256], strides = [1, 1]} : vector<8x1024xf32> to vector<8x256xf32>
    %cst_17 = arith.constant 5.000000e-01 : f32
    %22 = vector.broadcast %cst_17 : f32 to vector<8x256xf32>
    %23 = arith.mulf %22, %21 : vector<8x256xf32>
    %24 = math.tanh %23 : vector<8x256xf32>
    %cst_18 = arith.constant 5.000000e-01 : f32
    %25 = vector.broadcast %cst_18 : f32 to vector<8x256xf32>
    %26 = arith.mulf %25, %24 : vector<8x256xf32>
    %cst_19 = arith.constant 5.000000e-01 : f32
    %27 = vector.broadcast %cst_19 : f32 to vector<8x256xf32>
    %28 = arith.addf %26, %27 : vector<8x256xf32>
    %29 = vector.extract_strided_slice %20 {offsets = [0, 256], sizes = [8, 256], strides = [1, 1]} : vector<8x1024xf32> to vector<8x256xf32>
    %cst_20 = arith.constant 5.000000e-01 : f32
    %30 = vector.broadcast %cst_20 : f32 to vector<8x256xf32>
    %31 = arith.mulf %30, %29 : vector<8x256xf32>
    %32 = math.tanh %31 : vector<8x256xf32>
    %cst_21 = arith.constant 5.000000e-01 : f32
    %33 = vector.broadcast %cst_21 : f32 to vector<8x256xf32>
    %34 = arith.mulf %33, %32 : vector<8x256xf32>
    %cst_22 = arith.constant 5.000000e-01 : f32
    %35 = vector.broadcast %cst_22 : f32 to vector<8x256xf32>
    %36 = arith.addf %34, %35 : vector<8x256xf32>
    %37 = vector.extract_strided_slice %20 {offsets = [0, 512], sizes = [8, 256], strides = [1, 1]} : vector<8x1024xf32> to vector<8x256xf32>
    %38 = math.tanh %37 : vector<8x256xf32>
    %39 = vector.extract_strided_slice %20 {offsets = [0, 768], sizes = [8, 256], strides = [1, 1]} : vector<8x1024xf32> to vector<8x256xf32>
    %cst_23 = arith.constant 5.000000e-01 : f32
    %40 = vector.broadcast %cst_23 : f32 to vector<8x256xf32>
    %41 = arith.mulf %40, %39 : vector<8x256xf32>
    %42 = math.tanh %41 : vector<8x256xf32>
    %cst_24 = arith.constant 5.000000e-01 : f32
    %43 = vector.broadcast %cst_24 : f32 to vector<8x256xf32>
    %44 = arith.mulf %43, %42 : vector<8x256xf32>
    %cst_25 = arith.constant 5.000000e-01 : f32
    %45 = vector.broadcast %cst_25 : f32 to vector<8x256xf32>
    %46 = arith.addf %44, %45 : vector<8x256xf32>
    %47 = arith.mulf %36, %11 : vector<8x256xf32>
    %48 = arith.mulf %28, %38 : vector<8x256xf32>
    %49 = arith.addf %47, %48 : vector<8x256xf32>
    %50 = math.tanh %49 : vector<8x256xf32>
    %51 = arith.mulf %46, %50 : vector<8x256xf32>
    %c1_i32 = arith.constant 1 : i32
    %c8_i32_26 = arith.constant 8 : i32
    %52 = arith.muli %c1_i32, %c8_i32_26 : i32
    %53 = tpu.assume_multiple %52, 8 : i32
    %54 = arith.index_cast %53 : i32 to index
    %c0_27 = arith.constant 0 : index
    %55 = vector.load %arg10[%54, %c0_27] : memref<64x1024xf32, #tpu.memory_space<vmem>>, vector<8x1024xf32>
    %56 = arith.truncf %51 : vector<8x256xf32> to vector<8x256xbf16>
    %c0_28 = arith.constant 0 : index
    %c0_29 = arith.constant 0 : index
    %c0_30 = arith.constant 0 : index
    %57 = vector.load %arg4[%c0_28, %c0_29, %c0_30] : memref<1x256x1024xbf16, #tpu.memory_space<vmem>>, vector<1x256x1024xbf16>
    %58 = vector.shape_cast %57 : vector<1x256x1024xbf16> to vector<256x1024xbf16>
    %cst_31 = arith.constant dense<0.000000e+00> : vector<8x1024xf32>
    %59 = tpu.matmul %56, %58, %cst_31 {dimension_numbers = #tpu.dot_dimension_numbers<[1], [0], [0], [1], [0, 0, 1, 1], [], []>} : vector<8x256xbf16>, vector<256x1024xbf16>, vector<8x1024xf32> -> vector<8x1024xf32>
    %60 = arith.addf %55, %59 : vector<8x1024xf32>
    %61 = vector.extract_strided_slice %60 {offsets = [0, 0], sizes = [8, 256], strides = [1, 1]} : vector<8x1024xf32> to vector<8x256xf32>
    %cst_32 = arith.constant 5.000000e-01 : f32
    %62 = vector.broadcast %cst_32 : f32 to vector<8x256xf32>
    %63 = arith.mulf %62, %61 : vector<8x256xf32>
    %64 = math.tanh %63 : vector<8x256xf32>
    %cst_33 = arith.constant 5.000000e-01 : f32
    %65 = vector.broadcast %cst_33 : f32 to vector<8x256xf32>
    %66 = arith.mulf %65, %64 : vector<8x256xf32>
    %cst_34 = arith.constant 5.000000e-01 : f32
    %67 = vector.broadcast %cst_34 : f32 to vector<8x256xf32>
    %68 = arith.addf %66, %67 : vector<8x256xf32>
    %69 = vector.extract_strided_slice %60 {offsets = [0, 256], sizes = [8, 256], strides = [1, 1]} : vector<8x1024xf32> to vector<8x256xf32>
    %cst_35 = arith.constant 5.000000e-01 : f32
    %70 = vector.broadcast %cst_35 : f32 to vector<8x256xf32>
    %71 = arith.mulf %70, %69 : vector<8x256xf32>
    %72 = math.tanh %71 : vector<8x256xf32>
    %cst_36 = arith.constant 5.000000e-01 : f32
    %73 = vector.broadcast %cst_36 : f32 to vector<8x256xf32>
    %74 = arith.mulf %73, %72 : vector<8x256xf32>
    %cst_37 = arith.constant 5.000000e-01 : f32
    %75 = vector.broadcast %cst_37 : f32 to vector<8x256xf32>
    %76 = arith.addf %74, %75 : vector<8x256xf32>
    %77 = vector.extract_strided_slice %60 {offsets = [0, 512], sizes = [8, 256], strides = [1, 1]} : vector<8x1024xf32> to vector<8x256xf32>
    %78 = math.tanh %77 : vector<8x256xf32>
    %79 = vector.extract_strided_slice %60 {offsets = [0, 768], sizes = [8, 256], strides = [1, 1]} : vector<8x1024xf32> to vector<8x256xf32>
    %cst_38 = arith.constant 5.000000e-01 : f32
    %80 = vector.broadcast %cst_38 : f32 to vector<8x256xf32>
    %81 = arith.mulf %80, %79 : vector<8x256xf32>
    %82 = math.tanh %81 : vector<8x256xf32>
    %cst_39 = arith.constant 5.000000e-01 : f32
    %83 = vector.broadcast %cst_39 : f32 to vector<8x256xf32>
    %84 = arith.mulf %83, %82 : vector<8x256xf32>
    %cst_40 = arith.constant 5.000000e-01 : f32
    %85 = vector.broadcast %cst_40 : f32 to vector<8x256xf32>
    %86 = arith.addf %84, %85 : vector<8x256xf32>
    %87 = arith.mulf %76, %49 : vector<8x256xf32>
    %88 = arith.mulf %68, %78 : vector<8x256xf32>
    %89 = arith.addf %87, %88 : vector<8x256xf32>
    %90 = math.tanh %89 : vector<8x256xf32>
    %91 = arith.mulf %86, %90 : vector<8x256xf32>
    %c2_i32 = arith.constant 2 : i32
    %c8_i32_41 = arith.constant 8 : i32
    %92 = arith.muli %c2_i32, %c8_i32_41 : i32
    %93 = tpu.assume_multiple %92, 8 : i32
    %94 = arith.index_cast %93 : i32 to index
    %c0_42 = arith.constant 0 : index
    %95 = vector.load %arg10[%94, %c0_42] : memref<64x1024xf32, #tpu.memory_space<vmem>>, vector<8x1024xf32>
    %96 = arith.truncf %91 : vector<8x256xf32> to vector<8x256xbf16>
    %c0_43 = arith.constant 0 : index
    %c0_44 = arith.constant 0 : index
    %c0_45 = arith.constant 0 : index
    %97 = vector.load %arg4[%c0_43, %c0_44, %c0_45] : memref<1x256x1024xbf16, #tpu.memory_space<vmem>>, vector<1x256x1024xbf16>
    %98 = vector.shape_cast %97 : vector<1x256x1024xbf16> to vector<256x1024xbf16>
    %cst_46 = arith.constant dense<0.000000e+00> : vector<8x1024xf32>
    %99 = tpu.matmul %96, %98, %cst_46 {dimension_numbers = #tpu.dot_dimension_numbers<[1], [0], [0], [1], [0, 0, 1, 1], [], []>} : vector<8x256xbf16>, vector<256x1024xbf16>, vector<8x1024xf32> -> vector<8x1024xf32>
    %100 = arith.addf %95, %99 : vector<8x1024xf32>
    %101 = vector.extract_strided_slice %100 {offsets = [0, 0], sizes = [8, 256], strides = [1, 1]} : vector<8x1024xf32> to vector<8x256xf32>
    %cst_47 = arith.constant 5.000000e-01 : f32
    %102 = vector.broadcast %cst_47 : f32 to vector<8x256xf32>
    %103 = arith.mulf %102, %101 : vector<8x256xf32>
    %104 = math.tanh %103 : vector<8x256xf32>
    %cst_48 = arith.constant 5.000000e-01 : f32
    %105 = vector.broadcast %cst_48 : f32 to vector<8x256xf32>
    %106 = arith.mulf %105, %104 : vector<8x256xf32>
    %cst_49 = arith.constant 5.000000e-01 : f32
    %107 = vector.broadcast %cst_49 : f32 to vector<8x256xf32>
    %108 = arith.addf %106, %107 : vector<8x256xf32>
    %109 = vector.extract_strided_slice %100 {offsets = [0, 256], sizes = [8, 256], strides = [1, 1]} : vector<8x1024xf32> to vector<8x256xf32>
    %cst_50 = arith.constant 5.000000e-01 : f32
    %110 = vector.broadcast %cst_50 : f32 to vector<8x256xf32>
    %111 = arith.mulf %110, %109 : vector<8x256xf32>
    %112 = math.tanh %111 : vector<8x256xf32>
    %cst_51 = arith.constant 5.000000e-01 : f32
    %113 = vector.broadcast %cst_51 : f32 to vector<8x256xf32>
    %114 = arith.mulf %113, %112 : vector<8x256xf32>
    %cst_52 = arith.constant 5.000000e-01 : f32
    %115 = vector.broadcast %cst_52 : f32 to vector<8x256xf32>
    %116 = arith.addf %114, %115 : vector<8x256xf32>
    %117 = vector.extract_strided_slice %100 {offsets = [0, 512], sizes = [8, 256], strides = [1, 1]} : vector<8x1024xf32> to vector<8x256xf32>
    %118 = math.tanh %117 : vector<8x256xf32>
    %119 = vector.extract_strided_slice %100 {offsets = [0, 768], sizes = [8, 256], strides = [1, 1]} : vector<8x1024xf32> to vector<8x256xf32>
    %cst_53 = arith.constant 5.000000e-01 : f32
    %120 = vector.broadcast %cst_53 : f32 to vector<8x256xf32>
    %121 = arith.mulf %120, %119 : vector<8x256xf32>
    %122 = math.tanh %121 : vector<8x256xf32>
    %cst_54 = arith.constant 5.000000e-01 : f32
    %123 = vector.broadcast %cst_54 : f32 to vector<8x256xf32>
    %124 = arith.mulf %123, %122 : vector<8x256xf32>
    %cst_55 = arith.constant 5.000000e-01 : f32
    %125 = vector.broadcast %cst_55 : f32 to vector<8x256xf32>
    %126 = arith.addf %124, %125 : vector<8x256xf32>
    %127 = arith.mulf %116, %89 : vector<8x256xf32>
    %128 = arith.mulf %108, %118 : vector<8x256xf32>
    %129 = arith.addf %127, %128 : vector<8x256xf32>
    %130 = math.tanh %129 : vector<8x256xf32>
    %131 = arith.mulf %126, %130 : vector<8x256xf32>
    %c3_i32 = arith.constant 3 : i32
    %c8_i32_56 = arith.constant 8 : i32
    %132 = arith.muli %c3_i32, %c8_i32_56 : i32
    %133 = tpu.assume_multiple %132, 8 : i32
    %134 = arith.index_cast %133 : i32 to index
    %c0_57 = arith.constant 0 : index
    %135 = vector.load %arg10[%134, %c0_57] : memref<64x1024xf32, #tpu.memory_space<vmem>>, vector<8x1024xf32>
    %136 = arith.truncf %131 : vector<8x256xf32> to vector<8x256xbf16>
    %c0_58 = arith.constant 0 : index
    %c0_59 = arith.constant 0 : index
    %c0_60 = arith.constant 0 : index
    %137 = vector.load %arg4[%c0_58, %c0_59, %c0_60] : memref<1x256x1024xbf16, #tpu.memory_space<vmem>>, vector<1x256x1024xbf16>
    %138 = vector.shape_cast %137 : vector<1x256x1024xbf16> to vector<256x1024xbf16>
    %cst_61 = arith.constant dense<0.000000e+00> : vector<8x1024xf32>
    %139 = tpu.matmul %136, %138, %cst_61 {dimension_numbers = #tpu.dot_dimension_numbers<[1], [0], [0], [1], [0, 0, 1, 1], [], []>} : vector<8x256xbf16>, vector<256x1024xbf16>, vector<8x1024xf32> -> vector<8x1024xf32>
    %140 = arith.addf %135, %139 : vector<8x1024xf32>
    %141 = vector.extract_strided_slice %140 {offsets = [0, 0], sizes = [8, 256], strides = [1, 1]} : vector<8x1024xf32> to vector<8x256xf32>
    %cst_62 = arith.constant 5.000000e-01 : f32
    %142 = vector.broadcast %cst_62 : f32 to vector<8x256xf32>
    %143 = arith.mulf %142, %141 : vector<8x256xf32>
    %144 = math.tanh %143 : vector<8x256xf32>
    %cst_63 = arith.constant 5.000000e-01 : f32
    %145 = vector.broadcast %cst_63 : f32 to vector<8x256xf32>
    %146 = arith.mulf %145, %144 : vector<8x256xf32>
    %cst_64 = arith.constant 5.000000e-01 : f32
    %147 = vector.broadcast %cst_64 : f32 to vector<8x256xf32>
    %148 = arith.addf %146, %147 : vector<8x256xf32>
    %149 = vector.extract_strided_slice %140 {offsets = [0, 256], sizes = [8, 256], strides = [1, 1]} : vector<8x1024xf32> to vector<8x256xf32>
    %cst_65 = arith.constant 5.000000e-01 : f32
    %150 = vector.broadcast %cst_65 : f32 to vector<8x256xf32>
    %151 = arith.mulf %150, %149 : vector<8x256xf32>
    %152 = math.tanh %151 : vector<8x256xf32>
    %cst_66 = arith.constant 5.000000e-01 : f32
    %153 = vector.broadcast %cst_66 : f32 to vector<8x256xf32>
    %154 = arith.mulf %153, %152 : vector<8x256xf32>
    %cst_67 = arith.constant 5.000000e-01 : f32
    %155 = vector.broadcast %cst_67 : f32 to vector<8x256xf32>
    %156 = arith.addf %154, %155 : vector<8x256xf32>
    %157 = vector.extract_strided_slice %140 {offsets = [0, 512], sizes = [8, 256], strides = [1, 1]} : vector<8x1024xf32> to vector<8x256xf32>
    %158 = math.tanh %157 : vector<8x256xf32>
    %159 = vector.extract_strided_slice %140 {offsets = [0, 768], sizes = [8, 256], strides = [1, 1]} : vector<8x1024xf32> to vector<8x256xf32>
    %cst_68 = arith.constant 5.000000e-01 : f32
    %160 = vector.broadcast %cst_68 : f32 to vector<8x256xf32>
    %161 = arith.mulf %160, %159 : vector<8x256xf32>
    %162 = math.tanh %161 : vector<8x256xf32>
    %cst_69 = arith.constant 5.000000e-01 : f32
    %163 = vector.broadcast %cst_69 : f32 to vector<8x256xf32>
    %164 = arith.mulf %163, %162 : vector<8x256xf32>
    %cst_70 = arith.constant 5.000000e-01 : f32
    %165 = vector.broadcast %cst_70 : f32 to vector<8x256xf32>
    %166 = arith.addf %164, %165 : vector<8x256xf32>
    %167 = arith.mulf %156, %129 : vector<8x256xf32>
    %168 = arith.mulf %148, %158 : vector<8x256xf32>
    %169 = arith.addf %167, %168 : vector<8x256xf32>
    %170 = math.tanh %169 : vector<8x256xf32>
    %171 = arith.mulf %166, %170 : vector<8x256xf32>
    %c4_i32 = arith.constant 4 : i32
    %c8_i32_71 = arith.constant 8 : i32
    %172 = arith.muli %c4_i32, %c8_i32_71 : i32
    %173 = tpu.assume_multiple %172, 8 : i32
    %174 = arith.index_cast %173 : i32 to index
    %c0_72 = arith.constant 0 : index
    %175 = vector.load %arg10[%174, %c0_72] : memref<64x1024xf32, #tpu.memory_space<vmem>>, vector<8x1024xf32>
    %176 = arith.truncf %171 : vector<8x256xf32> to vector<8x256xbf16>
    %c0_73 = arith.constant 0 : index
    %c0_74 = arith.constant 0 : index
    %c0_75 = arith.constant 0 : index
    %177 = vector.load %arg4[%c0_73, %c0_74, %c0_75] : memref<1x256x1024xbf16, #tpu.memory_space<vmem>>, vector<1x256x1024xbf16>
    %178 = vector.shape_cast %177 : vector<1x256x1024xbf16> to vector<256x1024xbf16>
    %cst_76 = arith.constant dense<0.000000e+00> : vector<8x1024xf32>
    %179 = tpu.matmul %176, %178, %cst_76 {dimension_numbers = #tpu.dot_dimension_numbers<[1], [0], [0], [1], [0, 0, 1, 1], [], []>} : vector<8x256xbf16>, vector<256x1024xbf16>, vector<8x1024xf32> -> vector<8x1024xf32>
    %180 = arith.addf %175, %179 : vector<8x1024xf32>
    %181 = vector.extract_strided_slice %180 {offsets = [0, 0], sizes = [8, 256], strides = [1, 1]} : vector<8x1024xf32> to vector<8x256xf32>
    %cst_77 = arith.constant 5.000000e-01 : f32
    %182 = vector.broadcast %cst_77 : f32 to vector<8x256xf32>
    %183 = arith.mulf %182, %181 : vector<8x256xf32>
    %184 = math.tanh %183 : vector<8x256xf32>
    %cst_78 = arith.constant 5.000000e-01 : f32
    %185 = vector.broadcast %cst_78 : f32 to vector<8x256xf32>
    %186 = arith.mulf %185, %184 : vector<8x256xf32>
    %cst_79 = arith.constant 5.000000e-01 : f32
    %187 = vector.broadcast %cst_79 : f32 to vector<8x256xf32>
    %188 = arith.addf %186, %187 : vector<8x256xf32>
    %189 = vector.extract_strided_slice %180 {offsets = [0, 256], sizes = [8, 256], strides = [1, 1]} : vector<8x1024xf32> to vector<8x256xf32>
    %cst_80 = arith.constant 5.000000e-01 : f32
    %190 = vector.broadcast %cst_80 : f32 to vector<8x256xf32>
    %191 = arith.mulf %190, %189 : vector<8x256xf32>
    %192 = math.tanh %191 : vector<8x256xf32>
    %cst_81 = arith.constant 5.000000e-01 : f32
    %193 = vector.broadcast %cst_81 : f32 to vector<8x256xf32>
    %194 = arith.mulf %193, %192 : vector<8x256xf32>
    %cst_82 = arith.constant 5.000000e-01 : f32
    %195 = vector.broadcast %cst_82 : f32 to vector<8x256xf32>
    %196 = arith.addf %194, %195 : vector<8x256xf32>
    %197 = vector.extract_strided_slice %180 {offsets = [0, 512], sizes = [8, 256], strides = [1, 1]} : vector<8x1024xf32> to vector<8x256xf32>
    %198 = math.tanh %197 : vector<8x256xf32>
    %199 = vector.extract_strided_slice %180 {offsets = [0, 768], sizes = [8, 256], strides = [1, 1]} : vector<8x1024xf32> to vector<8x256xf32>
    %cst_83 = arith.constant 5.000000e-01 : f32
    %200 = vector.broadcast %cst_83 : f32 to vector<8x256xf32>
    %201 = arith.mulf %200, %199 : vector<8x256xf32>
    %202 = math.tanh %201 : vector<8x256xf32>
    %cst_84 = arith.constant 5.000000e-01 : f32
    %203 = vector.broadcast %cst_84 : f32 to vector<8x256xf32>
    %204 = arith.mulf %203, %202 : vector<8x256xf32>
    %cst_85 = arith.constant 5.000000e-01 : f32
    %205 = vector.broadcast %cst_85 : f32 to vector<8x256xf32>
    %206 = arith.addf %204, %205 : vector<8x256xf32>
    %207 = arith.mulf %196, %169 : vector<8x256xf32>
    %208 = arith.mulf %188, %198 : vector<8x256xf32>
    %209 = arith.addf %207, %208 : vector<8x256xf32>
    %210 = math.tanh %209 : vector<8x256xf32>
    %211 = arith.mulf %206, %210 : vector<8x256xf32>
    %c5_i32 = arith.constant 5 : i32
    %c8_i32_86 = arith.constant 8 : i32
    %212 = arith.muli %c5_i32, %c8_i32_86 : i32
    %213 = tpu.assume_multiple %212, 8 : i32
    %214 = arith.index_cast %213 : i32 to index
    %c0_87 = arith.constant 0 : index
    %215 = vector.load %arg10[%214, %c0_87] : memref<64x1024xf32, #tpu.memory_space<vmem>>, vector<8x1024xf32>
    %216 = arith.truncf %211 : vector<8x256xf32> to vector<8x256xbf16>
    %c0_88 = arith.constant 0 : index
    %c0_89 = arith.constant 0 : index
    %c0_90 = arith.constant 0 : index
    %217 = vector.load %arg4[%c0_88, %c0_89, %c0_90] : memref<1x256x1024xbf16, #tpu.memory_space<vmem>>, vector<1x256x1024xbf16>
    %218 = vector.shape_cast %217 : vector<1x256x1024xbf16> to vector<256x1024xbf16>
    %cst_91 = arith.constant dense<0.000000e+00> : vector<8x1024xf32>
    %219 = tpu.matmul %216, %218, %cst_91 {dimension_numbers = #tpu.dot_dimension_numbers<[1], [0], [0], [1], [0, 0, 1, 1], [], []>} : vector<8x256xbf16>, vector<256x1024xbf16>, vector<8x1024xf32> -> vector<8x1024xf32>
    %220 = arith.addf %215, %219 : vector<8x1024xf32>
    %221 = vector.extract_strided_slice %220 {offsets = [0, 0], sizes = [8, 256], strides = [1, 1]} : vector<8x1024xf32> to vector<8x256xf32>
    %cst_92 = arith.constant 5.000000e-01 : f32
    %222 = vector.broadcast %cst_92 : f32 to vector<8x256xf32>
    %223 = arith.mulf %222, %221 : vector<8x256xf32>
    %224 = math.tanh %223 : vector<8x256xf32>
    %cst_93 = arith.constant 5.000000e-01 : f32
    %225 = vector.broadcast %cst_93 : f32 to vector<8x256xf32>
    %226 = arith.mulf %225, %224 : vector<8x256xf32>
    %cst_94 = arith.constant 5.000000e-01 : f32
    %227 = vector.broadcast %cst_94 : f32 to vector<8x256xf32>
    %228 = arith.addf %226, %227 : vector<8x256xf32>
    %229 = vector.extract_strided_slice %220 {offsets = [0, 256], sizes = [8, 256], strides = [1, 1]} : vector<8x1024xf32> to vector<8x256xf32>
    %cst_95 = arith.constant 5.000000e-01 : f32
    %230 = vector.broadcast %cst_95 : f32 to vector<8x256xf32>
    %231 = arith.mulf %230, %229 : vector<8x256xf32>
    %232 = math.tanh %231 : vector<8x256xf32>
    %cst_96 = arith.constant 5.000000e-01 : f32
    %233 = vector.broadcast %cst_96 : f32 to vector<8x256xf32>
    %234 = arith.mulf %233, %232 : vector<8x256xf32>
    %cst_97 = arith.constant 5.000000e-01 : f32
    %235 = vector.broadcast %cst_97 : f32 to vector<8x256xf32>
    %236 = arith.addf %234, %235 : vector<8x256xf32>
    %237 = vector.extract_strided_slice %220 {offsets = [0, 512], sizes = [8, 256], strides = [1, 1]} : vector<8x1024xf32> to vector<8x256xf32>
    %238 = math.tanh %237 : vector<8x256xf32>
    %239 = vector.extract_strided_slice %220 {offsets = [0, 768], sizes = [8, 256], strides = [1, 1]} : vector<8x1024xf32> to vector<8x256xf32>
    %cst_98 = arith.constant 5.000000e-01 : f32
    %240 = vector.broadcast %cst_98 : f32 to vector<8x256xf32>
    %241 = arith.mulf %240, %239 : vector<8x256xf32>
    %242 = math.tanh %241 : vector<8x256xf32>
    %cst_99 = arith.constant 5.000000e-01 : f32
    %243 = vector.broadcast %cst_99 : f32 to vector<8x256xf32>
    %244 = arith.mulf %243, %242 : vector<8x256xf32>
    %cst_100 = arith.constant 5.000000e-01 : f32
    %245 = vector.broadcast %cst_100 : f32 to vector<8x256xf32>
    %246 = arith.addf %244, %245 : vector<8x256xf32>
    %247 = arith.mulf %236, %209 : vector<8x256xf32>
    %248 = arith.mulf %228, %238 : vector<8x256xf32>
    %249 = arith.addf %247, %248 : vector<8x256xf32>
    %250 = math.tanh %249 : vector<8x256xf32>
    %251 = arith.mulf %246, %250 : vector<8x256xf32>
    %c6_i32 = arith.constant 6 : i32
    %c8_i32_101 = arith.constant 8 : i32
    %252 = arith.muli %c6_i32, %c8_i32_101 : i32
    %253 = tpu.assume_multiple %252, 8 : i32
    %254 = arith.index_cast %253 : i32 to index
    %c0_102 = arith.constant 0 : index
    %255 = vector.load %arg10[%254, %c0_102] : memref<64x1024xf32, #tpu.memory_space<vmem>>, vector<8x1024xf32>
    %256 = arith.truncf %251 : vector<8x256xf32> to vector<8x256xbf16>
    %c0_103 = arith.constant 0 : index
    %c0_104 = arith.constant 0 : index
    %c0_105 = arith.constant 0 : index
    %257 = vector.load %arg4[%c0_103, %c0_104, %c0_105] : memref<1x256x1024xbf16, #tpu.memory_space<vmem>>, vector<1x256x1024xbf16>
    %258 = vector.shape_cast %257 : vector<1x256x1024xbf16> to vector<256x1024xbf16>
    %cst_106 = arith.constant dense<0.000000e+00> : vector<8x1024xf32>
    %259 = tpu.matmul %256, %258, %cst_106 {dimension_numbers = #tpu.dot_dimension_numbers<[1], [0], [0], [1], [0, 0, 1, 1], [], []>} : vector<8x256xbf16>, vector<256x1024xbf16>, vector<8x1024xf32> -> vector<8x1024xf32>
    %260 = arith.addf %255, %259 : vector<8x1024xf32>
    %261 = vector.extract_strided_slice %260 {offsets = [0, 0], sizes = [8, 256], strides = [1, 1]} : vector<8x1024xf32> to vector<8x256xf32>
    %cst_107 = arith.constant 5.000000e-01 : f32
    %262 = vector.broadcast %cst_107 : f32 to vector<8x256xf32>
    %263 = arith.mulf %262, %261 : vector<8x256xf32>
    %264 = math.tanh %263 : vector<8x256xf32>
    %cst_108 = arith.constant 5.000000e-01 : f32
    %265 = vector.broadcast %cst_108 : f32 to vector<8x256xf32>
    %266 = arith.mulf %265, %264 : vector<8x256xf32>
    %cst_109 = arith.constant 5.000000e-01 : f32
    %267 = vector.broadcast %cst_109 : f32 to vector<8x256xf32>
    %268 = arith.addf %266, %267 : vector<8x256xf32>
    %269 = vector.extract_strided_slice %260 {offsets = [0, 256], sizes = [8, 256], strides = [1, 1]} : vector<8x1024xf32> to vector<8x256xf32>
    %cst_110 = arith.constant 5.000000e-01 : f32
    %270 = vector.broadcast %cst_110 : f32 to vector<8x256xf32>
    %271 = arith.mulf %270, %269 : vector<8x256xf32>
    %272 = math.tanh %271 : vector<8x256xf32>
    %cst_111 = arith.constant 5.000000e-01 : f32
    %273 = vector.broadcast %cst_111 : f32 to vector<8x256xf32>
    %274 = arith.mulf %273, %272 : vector<8x256xf32>
    %cst_112 = arith.constant 5.000000e-01 : f32
    %275 = vector.broadcast %cst_112 : f32 to vector<8x256xf32>
    %276 = arith.addf %274, %275 : vector<8x256xf32>
    %277 = vector.extract_strided_slice %260 {offsets = [0, 512], sizes = [8, 256], strides = [1, 1]} : vector<8x1024xf32> to vector<8x256xf32>
    %278 = math.tanh %277 : vector<8x256xf32>
    %279 = vector.extract_strided_slice %260 {offsets = [0, 768], sizes = [8, 256], strides = [1, 1]} : vector<8x1024xf32> to vector<8x256xf32>
    %cst_113 = arith.constant 5.000000e-01 : f32
    %280 = vector.broadcast %cst_113 : f32 to vector<8x256xf32>
    %281 = arith.mulf %280, %279 : vector<8x256xf32>
    %282 = math.tanh %281 : vector<8x256xf32>
    %cst_114 = arith.constant 5.000000e-01 : f32
    %283 = vector.broadcast %cst_114 : f32 to vector<8x256xf32>
    %284 = arith.mulf %283, %282 : vector<8x256xf32>
    %cst_115 = arith.constant 5.000000e-01 : f32
    %285 = vector.broadcast %cst_115 : f32 to vector<8x256xf32>
    %286 = arith.addf %284, %285 : vector<8x256xf32>
    %287 = arith.mulf %276, %249 : vector<8x256xf32>
    %288 = arith.mulf %268, %278 : vector<8x256xf32>
    %289 = arith.addf %287, %288 : vector<8x256xf32>
    %290 = math.tanh %289 : vector<8x256xf32>
    %291 = arith.mulf %286, %290 : vector<8x256xf32>
    %c7_i32 = arith.constant 7 : i32
    %c8_i32_116 = arith.constant 8 : i32
    %292 = arith.muli %c7_i32, %c8_i32_116 : i32
    %293 = tpu.assume_multiple %292, 8 : i32
    %294 = arith.index_cast %293 : i32 to index
    %c0_117 = arith.constant 0 : index
    %295 = vector.load %arg10[%294, %c0_117] : memref<64x1024xf32, #tpu.memory_space<vmem>>, vector<8x1024xf32>
    %296 = arith.truncf %291 : vector<8x256xf32> to vector<8x256xbf16>
    %c0_118 = arith.constant 0 : index
    %c0_119 = arith.constant 0 : index
    %c0_120 = arith.constant 0 : index
    %297 = vector.load %arg4[%c0_118, %c0_119, %c0_120] : memref<1x256x1024xbf16, #tpu.memory_space<vmem>>, vector<1x256x1024xbf16>
    %298 = vector.shape_cast %297 : vector<1x256x1024xbf16> to vector<256x1024xbf16>
    %cst_121 = arith.constant dense<0.000000e+00> : vector<8x1024xf32>
    %299 = tpu.matmul %296, %298, %cst_121 {dimension_numbers = #tpu.dot_dimension_numbers<[1], [0], [0], [1], [0, 0, 1, 1], [], []>} : vector<8x256xbf16>, vector<256x1024xbf16>, vector<8x1024xf32> -> vector<8x1024xf32>
    %300 = arith.addf %295, %299 : vector<8x1024xf32>
    %301 = vector.extract_strided_slice %300 {offsets = [0, 0], sizes = [8, 256], strides = [1, 1]} : vector<8x1024xf32> to vector<8x256xf32>
    %cst_122 = arith.constant 5.000000e-01 : f32
    %302 = vector.broadcast %cst_122 : f32 to vector<8x256xf32>
    %303 = arith.mulf %302, %301 : vector<8x256xf32>
    %304 = math.tanh %303 : vector<8x256xf32>
    %cst_123 = arith.constant 5.000000e-01 : f32
    %305 = vector.broadcast %cst_123 : f32 to vector<8x256xf32>
    %306 = arith.mulf %305, %304 : vector<8x256xf32>
    %cst_124 = arith.constant 5.000000e-01 : f32
    %307 = vector.broadcast %cst_124 : f32 to vector<8x256xf32>
    %308 = arith.addf %306, %307 : vector<8x256xf32>
    %309 = vector.extract_strided_slice %300 {offsets = [0, 256], sizes = [8, 256], strides = [1, 1]} : vector<8x1024xf32> to vector<8x256xf32>
    %cst_125 = arith.constant 5.000000e-01 : f32
    %310 = vector.broadcast %cst_125 : f32 to vector<8x256xf32>
    %311 = arith.mulf %310, %309 : vector<8x256xf32>
    %312 = math.tanh %311 : vector<8x256xf32>
    %cst_126 = arith.constant 5.000000e-01 : f32
    %313 = vector.broadcast %cst_126 : f32 to vector<8x256xf32>
    %314 = arith.mulf %313, %312 : vector<8x256xf32>
    %cst_127 = arith.constant 5.000000e-01 : f32
    %315 = vector.broadcast %cst_127 : f32 to vector<8x256xf32>
    %316 = arith.addf %314, %315 : vector<8x256xf32>
    %317 = vector.extract_strided_slice %300 {offsets = [0, 512], sizes = [8, 256], strides = [1, 1]} : vector<8x1024xf32> to vector<8x256xf32>
    %318 = math.tanh %317 : vector<8x256xf32>
    %319 = vector.extract_strided_slice %300 {offsets = [0, 768], sizes = [8, 256], strides = [1, 1]} : vector<8x1024xf32> to vector<8x256xf32>
    %cst_128 = arith.constant 5.000000e-01 : f32
    %320 = vector.broadcast %cst_128 : f32 to vector<8x256xf32>
    %321 = arith.mulf %320, %319 : vector<8x256xf32>
    %322 = math.tanh %321 : vector<8x256xf32>
    %cst_129 = arith.constant 5.000000e-01 : f32
    %323 = vector.broadcast %cst_129 : f32 to vector<8x256xf32>
    %324 = arith.mulf %323, %322 : vector<8x256xf32>
    %cst_130 = arith.constant 5.000000e-01 : f32
    %325 = vector.broadcast %cst_130 : f32 to vector<8x256xf32>
    %326 = arith.addf %324, %325 : vector<8x256xf32>
    %327 = arith.mulf %316, %289 : vector<8x256xf32>
    %328 = arith.mulf %308, %318 : vector<8x256xf32>
    %329 = arith.addf %327, %328 : vector<8x256xf32>
    %330 = math.tanh %329 : vector<8x256xf32>
    %331 = arith.mulf %326, %330 : vector<8x256xf32>
    %c8_i32_131 = arith.constant 8 : i32
    %c0_i32_132 = arith.constant 0 : i32
    %332 = arith.cmpi eq, %arg0, %c0_i32_132 : i32
    %333 = arith.extui %332 : i1 to i32
    %c0_i32_133 = arith.constant 0 : i32
    %334 = arith.cmpi ne, %333, %c0_i32_133 : i32
    scf.if %334 {
      %c0_136 = arith.constant 0 : index
      %c0_137 = arith.constant 0 : index
      %338 = vector.load %arg11[%c0_136, %c0_137] : memref<8x256xf32, #tpu.memory_space<vmem>>, vector<8x256xf32>
      tpu.vector_store %arg11[%c0_136, %c0_137], %331 {strides = array<i32>} : memref<8x256xf32, #tpu.memory_space<vmem>>, vector<8x256xf32>,
    } else {
    }
    %c1_i32_134 = arith.constant 1 : i32
    %335 = arith.cmpi eq, %arg0, %c1_i32_134 : i32
    %336 = arith.extui %335 : i1 to i32
    %c0_i32_135 = arith.constant 0 : i32
    %337 = arith.cmpi ne, %336, %c0_i32_135 : i32
    scf.if %337 {
      %c0_136 = arith.constant 0 : index
      %c0_137 = arith.constant 0 : index
      %338 = vector.load %arg11[%c0_136, %c0_137] : memref<8x256xf32, #tpu.memory_space<vmem>>, vector<8x256xf32>
      %339 = vector.extract_strided_slice %338 {offsets = [0, 0], sizes = [1, 256], strides = [1, 1]} : vector<8x256xf32> to vector<1x256xf32>
      %340 = vector.extract_strided_slice %331 {offsets = [0, 0], sizes = [1, 256], strides = [1, 1]} : vector<8x256xf32> to vector<1x256xf32>
      %341 = tpu.concatenate %339, %340 in 0 : vector<1x256xf32>, vector<1x256xf32> -> vector<2x256xf32>
      %342 = vector.extract_strided_slice %338 {offsets = [1, 0], sizes = [1, 256], strides = [1, 1]} : vector<8x256xf32> to vector<1x256xf32>
      %343 = vector.extract_strided_slice %331 {offsets = [1, 0], sizes = [1, 256], strides = [1, 1]} : vector<8x256xf32> to vector<1x256xf32>
      %344 = tpu.concatenate %342, %343 in 0 : vector<1x256xf32>, vector<1x256xf32> -> vector<2x256xf32>
      %345 = tpu.concatenate %341, %344 in 1 : vector<2x256xf32>, vector<2x256xf32> -> vector<2x512xf32>
      %346 = arith.truncf %345 : vector<2x512xf32> to vector<2x512xbf16>
      %c0_138 = arith.constant 0 : index
      %c0_139 = arith.constant 0 : index
      %347 = vector.load %arg5[%c0_138, %c0_139] : memref<512x128xbf16, #tpu.memory_space<vmem>>, vector<512x128xbf16>
      %cst_140 = arith.constant dense<0.000000e+00> : vector<2x128xf32>
      %348 = tpu.matmul %346, %347, %cst_140 {dimension_numbers = #tpu.dot_dimension_numbers<[1], [0], [0], [1], [0, 0, 1, 1], [], []>} : vector<2x512xbf16>, vector<512x128xbf16>, vector<2x128xf32> -> vector<2x128xf32>
      %c0_141 = arith.constant 0 : index
      %c0_142 = arith.constant 0 : index
      %349 = vector.load %arg6[%c0_141, %c0_142] : memref<1x128xf32, #tpu.memory_space<vmem>>, vector<1x128xf32>
      %350 = vector.broadcast %349 : vector<1x128xf32> to vector<2x128xf32>
      %351 = arith.addf %348, %350 : vector<2x128xf32>
      %cst_143 = arith.constant 0.000000e+00 : f32
      %352 = vector.broadcast %cst_143 : f32 to vector<2x128xf32>
      %353 = arith.maximumf %351, %352 : vector<2x128xf32>
      %354 = arith.truncf %353 : vector<2x128xf32> to vector<2x128xbf16>
      %c0_144 = arith.constant 0 : index
      %c0_145 = arith.constant 0 : index
      %355 = vector.load %arg7[%c0_144, %c0_145] : memref<128x16xbf16, #tpu.memory_space<vmem>>, vector<128x16xbf16>
      %cst_146 = arith.constant dense<0.000000e+00> : vector<2x16xf32>
      %356 = tpu.matmul %354, %355, %cst_146 {dimension_numbers = #tpu.dot_dimension_numbers<[1], [0], [0], [1], [0, 0, 1, 1], [], []>} : vector<2x128xbf16>, vector<128x16xbf16>, vector<2x16xf32> -> vector<2x16xf32>
      %c0_147 = arith.constant 0 : index
      %c0_148 = arith.constant 0 : index
      %357 = vector.load %arg8[%c0_147, %c0_148] : memref<1x16xf32, #tpu.memory_space<vmem>>, vector<1x16xf32>
      %358 = vector.broadcast %357 : vector<1x16xf32> to vector<2x16xf32>
      %359 = arith.addf %356, %358 : vector<2x16xf32>
      %c0_149 = arith.constant 0 : index
      %c0_150 = arith.constant 0 : index
      %360 = vector.load %arg9[%c0_149, %c0_150] : memref<2x16xf32, #tpu.memory_space<vmem>>, vector<2x16xf32>
      tpu.vector_store %arg9[%c0_149, %c0_150], %359 {strides = array<i32>} : memref<2x16xf32, #tpu.memory_space<vmem>>, vector<2x16xf32>,
    } else {
    }
    return
  }
  func.func @transform_0(%arg0: i32) -> (i32, i32, i32) {
    %c0_i32 = arith.constant 0 : i32
    %c0_i32_0 = arith.constant 0 : i32
    %c0_i32_1 = arith.constant 0 : i32
    return %arg0, %c0_i32, %c0_i32_0 : i32, i32, i32
  }
  func.func @transform_1(%arg0: i32) -> (i32, i32, i32) {
    %c0_i32 = arith.constant 0 : i32
    %c0_i32_0 = arith.constant 0 : i32
    %c0_i32_1 = arith.constant 0 : i32
    return %arg0, %c0_i32, %c0_i32_0 : i32, i32, i32
  }
  func.func @transform_2(%arg0: i32) -> (i32, i32, i32) {
    %c0_i32 = arith.constant 0 : i32
    %c0_i32_0 = arith.constant 0 : i32
    %c0_i32_1 = arith.constant 0 : i32
    return %arg0, %c0_i32, %c0_i32_0 : i32, i32, i32
  }
  func.func @transform_3(%arg0: i32) -> (i32, i32, i32) {
    %c0_i32 = arith.constant 0 : i32
    %c0_i32_0 = arith.constant 0 : i32
    %c0_i32_1 = arith.constant 0 : i32
    return %arg0, %c0_i32, %c0_i32_0 : i32, i32, i32
  }
  func.func @transform_4(%arg0: i32) -> (i32, i32) {
    %c0_i32 = arith.constant 0 : i32
    %c0_i32_0 = arith.constant 0 : i32
    %c0_i32_1 = arith.constant 0 : i32
    return %c0_i32, %c0_i32_0 : i32, i32
  }
  func.func @transform_5(%arg0: i32) -> (i32, i32) {
    %c0_i32 = arith.constant 0 : i32
    %c0_i32_0 = arith.constant 0 : i32
    %c0_i32_1 = arith.constant 0 : i32
    return %c0_i32, %c0_i32_0 : i32, i32
  }
  func.func @transform_6(%arg0: i32) -> (i32, i32) {
    %c0_i32 = arith.constant 0 : i32
    %c0_i32_0 = arith.constant 0 : i32
    %c0_i32_1 = arith.constant 0 : i32
    return %c0_i32, %c0_i32_0 : i32, i32
  }
  func.func @transform_7(%arg0: i32) -> (i32, i32) {
    %c0_i32 = arith.constant 0 : i32
    %c0_i32_0 = arith.constant 0 : i32
    %c0_i32_1 = arith.constant 0 : i32
    return %c0_i32, %c0_i32_0 : i32, i32
  }
  func.func @transform_8(%arg0: i32) -> (i32, i32) {
    %c0_i32 = arith.constant 0 : i32
    %c0_i32_0 = arith.constant 0 : i32
    %c0_i32_1 = arith.constant 0 : i32
    return %c0_i32, %c0_i32_0 : i32, i32
  }
}

</mosaic_0001>

<bundles_post_ra>
// kernel: tpu_custom_call.1
= control target key start
LH: loop header
LB: loop body
LE: loop exit
PB: predicated region body
PF: predicated region fallthrough
CT: control target
= control target key end

     0   :  { %13 = vsyncpa [#allocation5], 0  ;;  %s7103_s0 = inlined_call_operand.vmem [shape: bf16[2,64,66], index: 0, kind: input, shape index: {}]   ;;  %s7104_s1 = inlined_call_operand.vmem [shape: bf16[2,66,1024], index: 1, kind: input, shape index: {}]   ;;  %s7105_s2 = inlined_call_operand.vmem [shape: f32[2,1,1024], index: 2, kind: input, shape index: {}]   ;;  %s7106_s3 = inlined_call_operand.hbm [shape: bf16[2,256,1024], index: 3, kind: input, shape index: {}]   ;;  %s7107_s4 = inlined_call_operand.vmem [shape: bf16[512,128], index: 4, kind: input, shape index: {}]   ;;  %s7108_s5 = inlined_call_operand.vmem [shape: f32[1,128], index: 5, kind: input, shape index: {}]   ;;  %s7109_s6 = inlined_call_operand.vmem [shape: bf16[128,16], index: 6, kind: input, shape index: {}]   ;;  %s7110_s7 = inlined_call_operand.vmem [shape: f32[1,16], index: 7, kind: input, shape index: {}]   ;;  %s7111_s8 = inlined_call_operand.hbm [shape: f32[2,16], index: 8, kind: output, shape index: {}]  }
   0x1   :  { %15 = vsyncpa [#allocation5 + $0x1], 0 }
   0x2   :  { %16 = vsyncpa [#allocation6], 0  ;;  %s4913_s27 = smov 0   ;;  %s4915_s28 = smov 0  }
   0x3   :  { %s4917_s29 = smov 0   ;;  %s4919_s30 = smov 0  }
   0x4 LB: > { %s4932_s9 = sadd.s32 4294967295, %s4859_s30   ;;  %s4935_s10 = sadd.s32 1, %s4859_s30   ;;  %s4859_s30 = sphi %s4919_s30, %s8207_s30   ;;  %s4855_s29 = sphi %s4917_s29, %s8206_s29   ;;  %s4851_s28 = sphi %s4915_s28, %s8205_s28   ;;  %s4847_s27 = sphi %s4913_s27, %s8204_s27  }
   0x5   : > { %s104_s11 = ssub.s32 %s4859_s30, %s4935_s10  ;;  %s107_s12 = sadd.s32 1, %s4855_s29 }
   0x6   : > { %p105_p0 = scmp.eq.s32.totalorder %s104_s11, 0  ;;  %p114_p1 = scmp.ne.s32.totalorder %s4855_s29, %s4851_s28 }
   0x7   : > { %p115_p2 = scmp.eq.s32.totalorder %s4859_s30, 0  ;;  %p120_p3 = scmp.ne.s32.totalorder %s4851_s28, %s4847_s27 }
   0x8   : > { %s4945_s13 = scalar_select %p105_p0, %s4855_s29, %s107_s12  }
   0x9   : > { %p116_p4 = por %p115_p2, %p114_p1  ;;  %p121_p5 = scmp.eq.s32.totalorder %s4932_s9, 0 }
   0xa   : > { %p4512_p6 = scmp.lt.s32.totalorder %s4859_s30, 2  ;;  %s284_s15 = sand.u32 1, %s4855_s29  }
   0xb   : > { %p4949_p7 = por %p121_p5, %p120_p3  ;;  %s4177_s16 = sshll.u32 %s284_s15, 10 }
   0xc   : > { %s4426_s17 = sshll.u32 %s4859_s30, 14  ;;  %s288_s21 = scalar_lea.vmem [#allocation4], %s4177_s16 }
   0xd   : > { %s4958_s20 = scalar_lea.hbm %s7106_s3, %s4426_s17  ;;  %s295_s22 = sshll.u32 %s288_s21, 4  ;;  %s4960_s22 = int_to_ptr.vmem [resolvable:$true] %s295_s22 }
   0xe   : > { %p4962_p8 = pnand %p4512_p6, %p116_p4  ;;  %s4967_s24 = scalar_lea.sflag [#allocation5], %s284_s15 }
   0xf   : > { %s4765_s25 = scalar_lea.hbm %s4958_s20, 16384  ;;  %s4770_s11 = scalar_lea.hbm %s7106_s3, 32768 }
  0x10   : > { %p4766_p10 = scmp.ne.s32.totalorder %s4958_s20, %s4765_s25  ;;  %p4767_p11 = pneg %p4962_p8 }
  0x11   : > { %p4771_p0 = scmp.lt.u32.totalorder %s4958_s20, %s7106_s3  ;;  %p4772_p1 = scmp.lt.u32.totalorder %s4770_s11, %s4765_s25 }
  0x12   : > { %p4768_p12 = pnand %p4767_p11, %p4766_p10  ;;  %p4774_p3 = scmp.lt.u32.totalorder %s4765_s25, %s4958_s20 }
  0x13   : > { %p4773_p2 = por %p4772_p1, %p4771_p0 }
  0x14   : > { %p4769_p13 = pneg %p4768_p12 }
  0x15   : > { %p4775_p4 = por %p4774_p3, %p4773_p2 }
  0x17   : > { %p4776_p5 = pnand %p4775_p4, %p4769_p13 }
  0x19   : > { %4779 = shalt.err (!%p4776_p5)
}
  0x1a   : > { %s4780_s15 = scalar_lea.vmem %s4960_s22, 16384  ;;  %s4861_s17 = smov [#allocation4]  }
  0x1b   : > { %p4781_p6 = scmp.ne.s32.totalorder %s4960_s22, %s4780_s15  ;;  %s4785_s18 = sshll.u32 %s4861_s17, 4  ;;  %s4786_s18 = int_to_ptr.vmem [resolvable:$false] %s4785_s18 }
  0x1c   : > { %s4787_s19 = scalar_lea.vmem %s4786_s18, 32768  ;;  %p4788_p9 = scmp.lt.s32.totalorder %s4960_s22, %s4786_s18 }
  0x1d   : > { %p4783_p10 = pnand %p4781_p6, %p4767_p11  ;;  %p4789_p0 = scmp.lt.s32.totalorder %s4787_s19, %s4780_s15 }
  0x1f   : > { %p4784_p12 = pneg %p4783_p10  ;;  %p4790_p1 = por %p4789_p0, %p4788_p9 }
  0x21   : > { %p4791_p2 = pnand %p4790_p1, %p4784_p12 }
  0x23   : > { %4794 = shalt.err (!%p4791_p2)
}
  0x24   : > { %s4862_s21 = smov 512   ;;  %s4863_s25 = smov 32  }
  0x25   : > { %4511 = dma.hbm_to_vmem [thread:$0]  (!%p4962_p8), %s4958_s20, 16384, %s4960_s22, %s4967_s24, %s4862_s21, %s4862_s21, %s4863_s25  }
  0x26   : > { %p303_p11 = scmp.lt.s32.totalorder %s4859_s30, 3  ;;  %p7382_p13 = scmp.ge.s32.totalorder %s4859_s30, 1 }
  0x28   : > { %p304_p3 = pnand %p7382_p13, %p303_p11 }
  0x2a   : > { %307 = sbr.rel (%p304_p3) target bundleno = 3156 (0xc54), region = 52 }
  0x31   : > { %s309_s26 = sand.u32 1, %s4851_s28  }
  0x32   : > { %s4181_s27 = sshll.u32 %s309_s26, 10  ;;  %s310_s11 = scalar_lea.sflag [#allocation5], %s309_s26 }
  0x33   : > { %s4999_s12 = scalar_lea.vmem [#allocation4], %s4181_s27 }
  0x34   : > { %4838 = dma.done.wait (%p4949_p7), %s310_s11, 16384  }
  0x35   : > { %4840 = vsyncadd (%p4949_p7), %s310_s11, 4294950912  ;;  %p355_p9 = scmp.lt.s32.totalorder %s4932_s9, 1  ;;  %v7112_v0 = vmov 0   ;;  %vm669_vm0 = vcmask 1040384   ;;  %vm656_vm1 = vcmask 539648   ;;  %p4378_p7 = scmp.ne.s32.totalorder %s4932_s9, 0 }
  0x36   : > { %726 = vmatprep.mubr.bf16.mxu0 %v7112_v0  ;;  %799 = vmatprep.mubr.bf16.mxu1 %v7112_v0 }
  0x37   : > { %s5009_s30 = scalar_select %p355_p9, %s4932_s9, 1 }
  0x39   : > { %s4501_s20 = smul.u32 288, %s5009_s30  ;;  %s4427_s14 = sshll.u32 %s5009_s30, 5 }
  0x3a   : > { %s5034_s17 = scalar_lea.vmem %s7103_s0, %s4427_s14  ;;  %s4185_s18 = sshll.u32 %s5009_s30, 3 }
  0x3b   : > { %s5015_s24 = scalar_lea.vmem %s7104_s1, %s4501_s20  ;;  %v5050_v47 = vld [vmem:[%s5034_s17] sm:$0xff]   ;;  %v5067_v63 = vld [vmem:[%s5034_s17 + $0x8] sm:$0xff]   ;;  %s368_s25 = scalar_lea.vmem %s7105_s2, %s4185_s18 }
  0x3c   : > { %v378_v1 = vld [vmem:[%s5015_s24] sm:$0xff]  ;;  %v379_v3 = vld [vmem:[%s5015_s24 + $0x8] sm:$0xff]  ;;  %v380_v37 = vld [vmem:[%s5015_s24 + $0x10] sm:$0xff] }
  0x3d   : > { %v382_v2 = vld [vmem:[%s5015_s24 + $0x20] sm:$0xff]  ;;  %v383_v5 = vld [vmem:[%s5015_s24 + $0x28] sm:$0xff]  ;;  %v384_v40 = vld [vmem:[%s5015_s24 + $0x30] sm:$0xff] }
  0x3e   : > { %v4191_v4 = vcombine.high %v378_v1, %v382_v2  ;;  %v4190_v6 = vcombine.low %v378_v1, %v382_v2  ;;  %v386_v7 = vld [vmem:[%s5015_s24 + $0x40] sm:$0xff]  ;;  %v4193_v9 = vcombine.high %v379_v3, %v383_v5  ;;  %v4192_v10 = vcombine.low %v379_v3, %v383_v5  ;;  %v387_v12 = vld [vmem:[%s5015_s24 + $0x48] sm:$0xff]  ;;  %v381_v41 = vld [vmem:[%s5015_s24 + $0x18] sm:$0xff] }
  0x3f   : > { %v390_v8 = vld [vmem:[%s5015_s24 + $0x60] sm:$0xff]  ;;  %v391_v13 = vld [vmem:[%s5015_s24 + $0x68] sm:$0xff]  ;;  %v385_v42 = vld [vmem:[%s5015_s24 + $0x38] sm:$0xff]  ;;  %v4195_v44 = vcombine.high %v380_v37, %v384_v40  ;;  %v4194_v50 = vcombine.low %v380_v37, %v384_v40 }
  0x40   : > { %v4199_v11 = vcombine.high %v386_v7, %v390_v8  ;;  %v394_v14 = vld [vmem:[%s5015_s24 + $0x80] sm:$0xff]  ;;  %694 = vmatprep.subr.bf16.mxu0 %v4191_v4  ;;  %v4201_v15 = vcombine.high %v387_v12, %v391_v13  ;;  %v395_v17 = vld [vmem:[%s5015_s24 + $0x88] sm:$0xff]  ;;  %767 = vmatprep.subr.bf16.mxu1 %v4193_v9  ;;  %v4198_v19 = vcombine.low %v386_v7, %v390_v8  ;;  %v388_v48 = vld [vmem:[%s5015_s24 + $0x50] sm:$0xff] }
  0x41   : > { %v398_v16 = vld [vmem:[%s5015_s24 + $0xa0] sm:$0xff]  ;;  %v399_v18 = vld [vmem:[%s5015_s24 + $0xa8] sm:$0xff]  ;;  %695 = vmatpush1.bf16.msra.mxu0 %v4190_v6  ;;  %768 = vmatpush1.bf16.msra.mxu1 %v4192_v10  ;;  %v4200_v20 = vcombine.low %v387_v12, %v391_v13  ;;  %v4197_v46 = vcombine.high %v381_v41, %v385_v42  ;;  %v392_v49 = vld [vmem:[%s5015_s24 + $0x70] sm:$0xff]  ;;  %v4196_v54 = vcombine.low %v381_v41, %v385_v42 }
  0x42   : > { %696 = vmatprep.subr.bf16.mxu0 %v4199_v11  ;;  %v4207_v21 = vcombine.high %v394_v14, %v398_v16  ;;  %v402_v22 = vld [vmem:[%s5015_s24 + $0xc0] sm:$0xff]  ;;  %769 = vmatprep.subr.bf16.mxu1 %v4201_v15  ;;  %v4209_v23 = vcombine.high %v395_v17, %v399_v18  ;;  %v403_v25 = vld [vmem:[%s5015_s24 + $0xc8] sm:$0xff]  ;;  %v4206_v27 = vcombine.low %v394_v14, %v398_v16  ;;  %v389_v51 = vld [vmem:[%s5015_s24 + $0x58] sm:$0xff] }
  0x43   : > { %v406_v24 = vld [vmem:[%s5015_s24 + $0xe0] sm:$0xff]  ;;  %v407_v26 = vld [vmem:[%s5015_s24 + $0xe8] sm:$0xff]  ;;  %v4208_v28 = vcombine.low %v395_v17, %v399_v18  ;;  %v393_v52 = vld [vmem:[%s5015_s24 + $0x78] sm:$0xff]  ;;  %v4203_v53 = vcombine.high %v388_v48, %v392_v49  ;;  %v4202_v58 = vcombine.low %v388_v48, %v392_v49 }
  0x44   : > { %v4215_v29 = vcombine.high %v402_v22, %v406_v24  ;;  %v4217_v30 = vcombine.high %v403_v25, %v407_v26  ;;  %v410_v31 = vld [vmem:[%s5015_s24 + $0x100] sm:$0x11]  ;;  %v411_v32 = vld [vmem:[%s5015_s24 + $0x108] sm:$0x11]  ;;  %v4214_v33 = vcombine.low %v402_v22, %v406_v24  ;;  %v4216_v34 = vcombine.low %v403_v25, %v407_v26  ;;  %v396_v55 = vld [vmem:[%s5015_s24 + $0x90] sm:$0xff] }
  0x45   : > { %697 = vmatpush1.bf16.msra.mxu0 %v4198_v19  ;;  %770 = vmatpush1.bf16.msra.mxu1 %v4200_v20  ;;  %v4223_v35 = vcombine.high %v410_v31, %v410_v31  ;;  %v4222_v36 = vcombine.low %v410_v31, %v410_v31  ;;  %v4225_v38 = vcombine.high %v411_v32, %v411_v32  ;;  %v400_v56 = vld [vmem:[%s5015_s24 + $0xb0] sm:$0xff]  ;;  %v397_v59 = vld [vmem:[%s5015_s24 + $0x98] sm:$0xff] }
  0x46   : > { %698 = vmatprep.subr.bf16.mxu0 %v4207_v21  ;;  %771 = vmatprep.subr.bf16.mxu1 %v4209_v23  ;;  %v4224_v39 = vcombine.low %v411_v32, %v411_v32  ;;  %v4205_v57 = vcombine.high %v389_v51, %v393_v52  ;;  %v401_v60 = vld [vmem:[%s5015_s24 + $0xb8] sm:$0xff]  ;;  %v4211_v61 = vcombine.high %v396_v55, %v400_v56  ;;  %v404_v2 = vld [vmem:[%s5015_s24 + $0xd0] sm:$0xff] }
  0x47   : > { %v671_v43 = vsel %vm669_vm0, %v4222_v36, 0  ;;  %v4204_v62 = vcombine.low %v389_v51, %v393_v52  ;;  %v4213_v1 = vcombine.high %v397_v59, %v401_v60  ;;  %v408_v3 = vld [vmem:[%s5015_s24 + $0xf0] sm:$0xff]  ;;  %v4210_v4 = vcombine.low %v396_v55, %v400_v56  ;;  %v405_v5 = vld [vmem:[%s5015_s24 + $0xd8] sm:$0xff] }
  0x48   : > { %v677_v45 = vsel %vm669_vm0, %v4224_v39, 0  ;;  %v409_v6 = vld [vmem:[%s5015_s24 + $0xf8] sm:$0xff]  ;;  %v4212_v7 = vcombine.low %v397_v59, %v401_v60  ;;  %v4219_v8 = vcombine.high %v404_v2, %v408_v3  ;;  %v412_v9 = vld [vmem:[%s5015_s24 + $0x110] sm:$0x11]  ;;  %v4218_v11 = vcombine.low %v404_v2, %v408_v3 }
  0x49   : > { %699 = vmatpush1.bf16.msra.mxu0 %v4206_v27  ;;  %772 = vmatpush1.bf16.msra.mxu1 %v4208_v28  ;;  %v4221_v10 = vcombine.high %v405_v5, %v409_v6  ;;  %v413_v12 = vld [vmem:[%s5015_s24 + $0x118] sm:$0x11]  ;;  %v4227_v13 = vcombine.high %v412_v9, %v412_v9  ;;  %v4220_v14 = vcombine.low %v405_v5, %v409_v6  ;;  %v5082_v16 = vld [vmem:[%s5034_s17 + $0x10] sm:$0xff]  }
  0x4a   : > { %700 = vmatprep.subr.bf16.mxu0 %v4215_v29  ;;  %773 = vmatprep.subr.bf16.mxu1 %v4217_v30  ;;  %v4226_v15 = vcombine.low %v412_v9, %v412_v9  ;;  %v4229_v17 = vcombine.high %v413_v12, %v413_v12  ;;  %v4228_v18 = vcombine.low %v413_v12, %v413_v12  ;;  %v1061_v19 = vld [vmem:[%s4999_s12] sm:$0xff]  ;;  %v1062_v21 = vld [vmem:[%s4999_s12 + $0x8] sm:$0xff] }
  0x4b   : > { %v1065_v20 = vld [vmem:[%s4999_s12 + $0x20] sm:$0xff]  ;;  %v1066_v22 = vld [vmem:[%s4999_s12 + $0x28] sm:$0xff] }
  0x4c   : > { %v683_v23 = vsel %vm669_vm0, %v4226_v15, 0  ;;  %v5090_v24 = vcombine.high %v1061_v19, %v1065_v20  ;;  %v689_v25 = vsel %vm669_vm0, %v4228_v18, 0  ;;  %v5096_v26 = vcombine.high %v1062_v21, %v1066_v22  ;;  %v5104_v27 = vld [vmem:[%s5034_s17 + $0x18] sm:$0xff]   ;;  %v1069_v28 = vld [vmem:[%s4999_s12 + $0x40] sm:$0xff] }
  0x4d   : > { %701 = vmatpush1.bf16.msra.mxu0 %v4214_v33  ;;  %774 = vmatpush1.bf16.msra.mxu1 %v4216_v34  ;;  %v1073_v29 = vld [vmem:[%s4999_s12 + $0x60] sm:$0xff]  ;;  %v1070_v30 = vld [vmem:[%s4999_s12 + $0x48] sm:$0xff]  ;;  %v5117_v32 = vcombine.low %v1061_v19, %v1065_v20  ;;  %v5119_v33 = vcombine.low %v1062_v21, %v1066_v22 }
  0x4e   : > { %4230 = vmatprep.subr.msk.bf16.mxu0 %vm669_vm0, %v4223_v35  ;;  %4235 = vmatprep.subr.msk.bf16.mxu1 %vm669_vm0, %v4225_v38  ;;  %7383 = vst [vmem:[#allocation10_spill] sm:$0xff] %v5090_v24  ;;  %7384 = vst [vmem:[#allocation11_spill] sm:$0xff] %v5096_v26  ;;  %v1074_v31 = vld [vmem:[%s4999_s12 + $0x68] sm:$0xff]  ;;  %v5121_v34 = vcombine.high %v1069_v28, %v1073_v29  ;;  %v1077_v36 = vld [vmem:[%s4999_s12 + $0x80] sm:$0xff]  ;;  %v5134_v40 = vcombine.low %v1069_v28, %v1073_v29 }
  0x4f   : > { %7385 = vst [vmem:[#allocation12_spill] sm:$0xff] %v5117_v32  ;;  %7386 = vst [vmem:[#allocation13_spill] sm:$0xff] %v5119_v33  ;;  %v5123_v35 = vcombine.high %v1070_v30, %v1074_v31  ;;  %v1081_v37 = vld [vmem:[%s4999_s12 + $0xa0] sm:$0xff]  ;;  %v1078_v38 = vld [vmem:[%s4999_s12 + $0x88] sm:$0xff]  ;;  %v5138_v41 = vcombine.low %v1070_v30, %v1074_v31 }
  0x50   : > { %7387 = vst [vmem:[#allocation14_spill] sm:$0xff] %v5121_v34  ;;  %v1082_v39 = vld [vmem:[%s4999_s12 + $0xa8] sm:$0xff]  ;;  %7389 = vst [vmem:[#allocation16_spill] sm:$0xff] %v5134_v40  ;;  %v5140_v42 = vcombine.high %v1077_v36, %v1081_v37  ;;  %v5152_v48 = vcombine.low %v1077_v36, %v1081_v37  ;;  %v1093_v52 = vld [vmem:[%s4999_s12 + $0x100] sm:$0xff] }
  0x51   : > { %703 = vmatpush1.bf16.msra.mxu0 %v671_v43  ;;  %776 = vmatpush1.bf16.msra.mxu1 %v677_v45  ;;  %7388 = vst [vmem:[#allocation15_spill] sm:$0xff] %v5123_v35  ;;  %7390 = vst [vmem:[#allocation17_spill] sm:$0xff] %v5138_v41  ;;  %v5143_v43 = vcombine.high %v1078_v38, %v1082_v39  ;;  %v1089_v45 = vld [vmem:[%s4999_s12 + $0xe0] sm:$0xff]  ;;  %v5156_v49 = vcombine.low %v1078_v38, %v1082_v39  ;;  %v1098_v55 = vld [vmem:[%s4999_s12 + $0x128] sm:$0xff] }
  0x52   : > { %840 = vmatprep.subr.bf16.mxu0 %v4195_v44  ;;  %913 = vmatprep.subr.bf16.mxu1 %v4197_v46  ;;  %7391 = vst [vmem:[#allocation18_spill] sm:$0xff] %v5140_v42  ;;  %v1085_v44 = vld [vmem:[%s4999_s12 + $0xc0] sm:$0xff]  ;;  %v1086_v46 = vld [vmem:[%s4999_s12 + $0xc8] sm:$0xff]  ;;  %7393 = vst [vmem:[#allocation20_spill] sm:$0xff] %v5152_v48 }
  0x53   : > { %7392 = vst [vmem:[#allocation19_spill] sm:$0xff] %v5143_v43  ;;  %7394 = vst [vmem:[#allocation21_spill] sm:$0xff] %v5156_v49  ;;  %v5170_v56 = vcombine.low %v1085_v44, %v1089_v45  ;;  %v1101_v60 = vld [vmem:[%s4999_s12 + $0x140] sm:$0xff]  ;;  %v1118_v15 = vld [vmem:[%s4999_s12 + $0x1c8] sm:$0xff] }
  0x54   : > { %4231 = vmatmul.mubr.msk.bf16.vlgmr.msra.gmra.mrb[0].mxu0 %vm656_vm1, %v5050_v47  ;;  %4236 = vmatmul.mubr.msk.bf16.vlgmr.msra.gmra.mrb[0].mxu1 %vm656_vm1, %v5050_v47  ;;  %v1109_v5 = vld [vmem:[%s4999_s12 + $0x180] sm:$0xff]  ;;  %v1138_v38 = vld [vmem:[%s4999_s12 + $0x268] sm:$0xff] }
  0x55   : > { %841 = vmatpush1.bf16.msra.mxu0 %v4194_v50  ;;  %736 = vmatprep.mubr.bf16.mxu0 %v7112_v0  ;;  %v5158_v50 = vcombine.high %v1085_v44, %v1089_v45  ;;  %7397 = vst [vmem:[#allocation24_spill] sm:$0xff] %v5170_v56  ;;  %v1113_v6 = vld [vmem:[%s4999_s12 + $0x1a0] sm:$0xff] }
  0x56   : > { %809 = vmatprep.mubr.bf16.mxu1 %v7112_v0  ;;  %842 = vmatprep.subr.bf16.mxu0 %v4203_v53  ;;  %v1097_v53 = vld [vmem:[%s4999_s12 + $0x120] sm:$0xff] }
  0x57   : > { %914 = vmatpush1.bf16.msra.mxu1 %v4196_v54  ;;  %7395 = vst [vmem:[#allocation22_spill] sm:$0xff] %v5158_v50  ;;  %v1094_v54 = vld [vmem:[%s4999_s12 + $0x108] sm:$0xff]  ;;  %v1125_v21 = vld [vmem:[%s4999_s12 + $0x200] sm:$0xff] }
  0x58   : > { %915 = vmatprep.subr.bf16.mxu1 %v4205_v57  ;;  %v5181_v59 = vcombine.high %v1094_v54, %v1098_v55  ;;  %v5194_v2 = vcombine.low %v1094_v54, %v1098_v55  ;;  %v1129_v22 = vld [vmem:[%s4999_s12 + $0x220] sm:$0xff]  ;;  %v1146_v54 = vld [vmem:[%s4999_s12 + $0x2a8] sm:$0xff] }
  0x59   : > { %843 = vmatpush1.bf16.msra.mxu0 %v4202_v58  ;;  %v5178_v58 = vcombine.high %v1093_v52, %v1097_v53  ;;  %v5254_v30 = vcombine.high %v1125_v21, %v1129_v22  ;;  %v1133_v36 = vld [vmem:[%s4999_s12 + $0x240] sm:$0xff]  ;;  %v5266_v39 = vcombine.low %v1125_v21, %v1129_v22  ;;  %v1158_v22 = vld [vmem:[%s4999_s12 + $0x308] sm:$0xff] }
  0x5a   : > { %844 = vmatprep.subr.bf16.mxu0 %v4211_v61  ;;  %7400 = vst [vmem:[#allocation27_spill] sm:$0xff] %v5181_v59  ;;  %v1105_v61 = vld [vmem:[%s4999_s12 + $0x160] sm:$0xff]  ;;  %7402 = vst [vmem:[#allocation29_spill] sm:$0xff] %v5194_v2 }
  0x5b   : > { %916 = vmatpush1.bf16.msra.mxu1 %v4204_v62  ;;  %7399 = vst [vmem:[#allocation26_spill] sm:$0xff] %v5178_v58  ;;  %v1102_v62 = vld [vmem:[%s4999_s12 + $0x148] sm:$0xff]  ;;  %v5196_v3 = vcombine.high %v1101_v60, %v1105_v61  ;;  %v5208_v9 = vcombine.low %v1101_v60, %v1105_v61  ;;  %7415 = vst [vmem:[#allocation42_spill] sm:$0xff] %v5254_v30  ;;  %v1137_v37 = vld [vmem:[%s4999_s12 + $0x260] sm:$0xff] }
  0x5c   : > { %4232 = vmatmul.mubr.msk.bf16.gmra.mrb[4].mxu0 %vm656_vm1, %v5067_v63  ;;  %917 = vmatprep.subr.bf16.mxu1 %v4213_v1  ;;  %v5190_v1 = vcombine.low %v1093_v52, %v1097_v53  ;;  %7417 = vst [vmem:[#allocation44_spill] sm:$0xff] %v5266_v39  ;;  %v5272_v45 = vcombine.high %v1133_v36, %v1137_v37  ;;  %v1145_v52 = vld [vmem:[%s4999_s12 + $0x2a0] sm:$0xff]  ;;  %v1142_v53 = vld [vmem:[%s4999_s12 + $0x288] sm:$0xff] }
  0x5d   : > { %4237 = vmatmul.mubr.msk.bf16.gmra.mrb[4].mxu1 %vm656_vm1, %v5067_v63  ;;  %845 = vmatpush1.bf16.msra.mxu0 %v4210_v4  ;;  %7403 = vst [vmem:[#allocation30_spill] sm:$0xff] %v5196_v3  ;;  %7405 = vst [vmem:[#allocation32_spill] sm:$0xff] %v5208_v9  ;;  %v5282_v55 = vcombine.low %v1133_v36, %v1137_v37  ;;  %v1161_v21 = vld [vmem:[%s4999_s12 + $0x320] sm:$0xff] }
  0x5e   : > { %746 = vmatprep.mubr.bf16.mxu0 %v7112_v0  ;;  %819 = vmatprep.mubr.bf16.mxu1 %v7112_v0  ;;  %7401 = vst [vmem:[#allocation28_spill] sm:$0xff] %v5190_v1  ;;  %7419 = vst [vmem:[#allocation46_spill] sm:$0xff] %v5272_v45 }
  0x5f   : > { %846 = vmatprep.subr.bf16.mxu0 %v4219_v8  ;;  %918 = vmatpush1.bf16.msra.mxu1 %v4212_v7  ;;  %v1110_v7 = vld [vmem:[%s4999_s12 + $0x188] sm:$0xff]  ;;  %7421 = vst [vmem:[#allocation48_spill] sm:$0xff] %v5282_v55 }
  0x60   : > { %919 = vmatprep.subr.bf16.mxu1 %v4221_v10  ;;  %v1114_v8 = vld [vmem:[%s4999_s12 + $0x1a8] sm:$0xff] }
  0x61   : > { %847 = vmatpush1.bf16.msra.mxu0 %v4218_v11  ;;  %v5216_v11 = vcombine.high %v1109_v5, %v1113_v6  ;;  %v5219_v12 = vcombine.high %v1110_v7, %v1114_v8  ;;  %v5232_v18 = vcombine.low %v1110_v7, %v1114_v8  ;;  %v1154_v7 = vld [vmem:[%s4999_s12 + $0x2e8] sm:$0xff] }
  0x62   : > { %4240 = vmatprep.subr.msk.bf16.mxu0 %vm669_vm0, %v4227_v13  ;;  %v1117_v13 = vld [vmem:[%s4999_s12 + $0x1c0] sm:$0xff] }
  0x63   : > { %920 = vmatpush1.bf16.msra.mxu1 %v4220_v14  ;;  %7407 = vst [vmem:[#allocation34_spill] sm:$0xff] %v5216_v11  ;;  %7408 = vst [vmem:[#allocation35_spill] sm:$0xff] %v5219_v12  ;;  %v1121_v14 = vld [vmem:[%s4999_s12 + $0x1e0] sm:$0xff] }
  0x64   : > { %4233 = vmatmul.mubr.msk.bf16.gmra.mrb[8].mxu0 %vm656_vm1, %v5082_v16  ;;  %4245 = vmatprep.subr.msk.bf16.mxu1 %vm669_vm0, %v4229_v17  ;;  %v5228_v17 = vcombine.low %v1109_v5, %v1113_v6  ;;  %7410 = vst [vmem:[#allocation37_spill] sm:$0xff] %v5232_v18  ;;  %v5234_v19 = vcombine.high %v1117_v13, %v1121_v14  ;;  %v1153_v5 = vld [vmem:[%s4999_s12 + $0x2e0] sm:$0xff]  ;;  %v1150_v6 = vld [vmem:[%s4999_s12 + $0x2c8] sm:$0xff] }
  0x65   : > { %4238 = vmatmul.mubr.msk.bf16.gmra.mrb[8].mxu1 %vm656_vm1, %v5082_v16  ;;  %756 = vmatprep.mubr.bf16.mxu0 %v7112_v0  ;;  %v5246_v28 = vcombine.low %v1117_v13, %v1121_v14  ;;  %v5302_v13 = vcombine.low %v1142_v53, %v1146_v54  ;;  %v5318_v36 = vcombine.low %v1150_v6, %v1154_v7 }
  0x66   : > { %829 = vmatprep.mubr.bf16.mxu1 %v7112_v0  ;;  %849 = vmatpush1.bf16.msra.mxu0 %v683_v23  ;;  %7409 = vst [vmem:[#allocation36_spill] sm:$0xff] %v5228_v17  ;;  %7411 = vst [vmem:[#allocation38_spill] sm:$0xff] %v5234_v19  ;;  %v1126_v23 = vld [vmem:[%s4999_s12 + $0x208] sm:$0xff] }
  0x67   : > { %922 = vmatpush1.bf16.msra.mxu1 %v689_v25  ;;  %1829 = vmatprep.subr.bf16.mxu0 %v5090_v24  ;;  %v1130_v25 = vld [vmem:[%s4999_s12 + $0x228] sm:$0xff]  ;;  %7413 = vst [vmem:[#allocation40_spill] sm:$0xff] %v5246_v28  ;;  %7426 = vst [vmem:[#allocation53_spill] sm:$0xff] %v5302_v13 }
  0x68   : > { %1870 = vmatprep.subr.bf16.mxu1 %v5096_v26  ;;  %v5257_v31 = vcombine.high %v1126_v23, %v1130_v25  ;;  %v5270_v44 = vcombine.low %v1126_v23, %v1130_v25  ;;  %v1162_v23 = vld [vmem:[%s4999_s12 + $0x328] sm:$0xff]  ;;  %7430 = vst [vmem:[#allocation57_spill] sm:$0xff] %v5318_v36 }
  0x6a   : > { %7416 = vst [vmem:[#allocation43_spill] sm:$0xff] %v5257_v31  ;;  %7418 = vst [vmem:[#allocation45_spill] sm:$0xff] %v5270_v44 }
  0x6c   : > { %4234 = vmatmul.mubr.msk.bf16.gmra.mrb[12].mxu0 %vm656_vm1, %v5104_v27 }
  0x6d   : > { %4239 = vmatmul.mubr.msk.bf16.gmra.mrb[12].mxu1 %vm656_vm1, %v5104_v27  ;;  %872 = vmatprep.mubr.bf16.mxu0 %v7112_v0 }
  0x6e   : > { %945 = vmatprep.mubr.bf16.mxu1 %v7112_v0 }
  0x74   : > { %4241 = vmatmul.mubr.msk.bf16.vlgmr.msra.gmra.mrb[16].mxu0 %vm656_vm1, %v5050_v47 }
  0x75   : > { %4246 = vmatmul.mubr.msk.bf16.vlgmr.msra.gmra.mrb[16].mxu1 %vm656_vm1, %v5050_v47  ;;  %1830 = vmatpush1.bf16.msra.mxu0 %v5117_v32  ;;  %v1090_v47 = vld [vmem:[%s4999_s12 + $0xe8] sm:$0xff] }
  0x76   : > { %1871 = vmatpush1.bf16.msra.mxu1 %v5119_v33  ;;  %1831 = vmatprep.subr.bf16.mxu0 %v5121_v34  ;;  %v5161_v51 = vcombine.high %v1086_v46, %v1090_v47  ;;  %v5176_v57 = vcombine.low %v1086_v46, %v1090_v47  ;;  %v1141_v47 = vld [vmem:[%s4999_s12 + $0x280] sm:$0xff] }
  0x77   : > { %1872 = vmatprep.subr.bf16.mxu1 %v5123_v35  ;;  %882 = vmatprep.mubr.bf16.mxu0 %v7112_v0  ;;  %v5288_v61 = vcombine.high %v1141_v47, %v1145_v52  ;;  %v5298_v8 = vcombine.low %v1141_v47, %v1145_v52  ;;  %v1169_v47 = vld [vmem:[%s4999_s12 + $0x360] sm:$0xff]  ;;  %v1166_v52 = vld [vmem:[%s4999_s12 + $0x348] sm:$0xff] }
  0x78   : > { %955 = vmatprep.mubr.bf16.mxu1 %v7112_v0  ;;  %7396 = vst [vmem:[#allocation23_spill] sm:$0xff] %v5161_v51  ;;  %7398 = vst [vmem:[#allocation25_spill] sm:$0xff] %v5176_v57 }
  0x79   : > { %1832 = vmatpush1.bf16.msra.mxu0 %v5134_v40  ;;  %7423 = vst [vmem:[#allocation50_spill] sm:$0xff] %v5288_v61  ;;  %7425 = vst [vmem:[#allocation52_spill] sm:$0xff] %v5298_v8 }
  0x7a   : > { %1873 = vmatpush1.bf16.msra.mxu1 %v5138_v41  ;;  %1833 = vmatprep.subr.bf16.mxu0 %v5140_v42 }
  0x7b   : > { %1874 = vmatprep.subr.bf16.mxu1 %v5143_v43 }
  0x7c   : > { %4242 = vmatmul.mubr.msk.bf16.gmra.mrb[20].mxu0 %vm656_vm1, %v5067_v63 }
  0x7d   : > { %1834 = vmatpush1.bf16.msra.mxu0 %v5152_v48  ;;  %4247 = vmatmul.mubr.msk.bf16.gmra.mrb[20].mxu1 %vm656_vm1, %v5067_v63  ;;  %v1106_v63 = vld [vmem:[%s4999_s12 + $0x168] sm:$0xff] }
  0x7e   : > { %1875 = vmatpush1.bf16.msra.mxu1 %v5156_v49  ;;  %1835 = vmatprep.subr.bf16.mxu0 %v5158_v50  ;;  %v5199_v4 = vcombine.high %v1102_v62, %v1106_v63  ;;  %v5214_v10 = vcombine.low %v1102_v62, %v1106_v63  ;;  %v5291_v62 = vcombine.high %v1142_v53, %v1146_v54  ;;  %v1149_v63 = vld [vmem:[%s4999_s12 + $0x2c0] sm:$0xff]  ;;  %v1170_v53 = vld [vmem:[%s4999_s12 + $0x368] sm:$0xff] }
  0x7f   : > { %1876 = vmatprep.subr.bf16.mxu1 %v5161_v51  ;;  %892 = vmatprep.mubr.bf16.mxu0 %v7112_v0  ;;  %v5304_v14 = vcombine.high %v1149_v63, %v1153_v5  ;;  %v5314_v25 = vcombine.low %v1149_v63, %v1153_v5  ;;  %v5334_v63 = vcombine.low %v1158_v22, %v1162_v23 }
  0x80   : > { %965 = vmatprep.mubr.bf16.mxu1 %v7112_v0  ;;  %7404 = vst [vmem:[#allocation31_spill] sm:$0xff] %v5199_v4  ;;  %7406 = vst [vmem:[#allocation33_spill] sm:$0xff] %v5214_v10 }
  0x81   : > { %1836 = vmatpush1.bf16.msra.mxu0 %v5170_v56  ;;  %7424 = vst [vmem:[#allocation51_spill] sm:$0xff] %v5291_v62  ;;  %7427 = vst [vmem:[#allocation54_spill] sm:$0xff] %v5304_v14 }
  0x82   : > { %1877 = vmatpush1.bf16.msra.mxu1 %v5176_v57  ;;  %1837 = vmatprep.subr.bf16.mxu0 %v5178_v58  ;;  %7429 = vst [vmem:[#allocation56_spill] sm:$0xff] %v5314_v25  ;;  %7434 = vst [vmem:[#allocation61_spill] sm:$0xff] %v5334_v63 }
  0x83   : > { %1878 = vmatprep.subr.bf16.mxu1 %v5181_v59 }
  0x84   : > { %4243 = vmatmul.mubr.msk.bf16.gmra.mrb[24].mxu0 %vm656_vm1, %v5082_v16 }
  0x85   : > { %1838 = vmatpush1.bf16.msra.mxu0 %v5190_v1  ;;  %4248 = vmatmul.mubr.msk.bf16.gmra.mrb[24].mxu1 %vm656_vm1, %v5082_v16  ;;  %v1122_v16 = vld [vmem:[%s4999_s12 + $0x1e8] sm:$0xff] }
  0x86   : > { %1879 = vmatpush1.bf16.msra.mxu1 %v5194_v2  ;;  %1839 = vmatprep.subr.bf16.mxu0 %v5196_v3  ;;  %v5237_v20 = vcombine.high %v1118_v15, %v1122_v16  ;;  %v5252_v29 = vcombine.low %v1118_v15, %v1122_v16  ;;  %v5307_v15 = vcombine.high %v1150_v6, %v1154_v7  ;;  %v1157_v16 = vld [vmem:[%s4999_s12 + $0x300] sm:$0xff] }
  0x87   : > { %1880 = vmatprep.subr.bf16.mxu1 %v5199_v4  ;;  %902 = vmatprep.mubr.bf16.mxu0 %v7112_v0  ;;  %v5320_v37 = vcombine.high %v1157_v16, %v1161_v21  ;;  %v5330_v54 = vcombine.low %v1157_v16, %v1161_v21  ;;  %v5339_v6 = vcombine.high %v1166_v52, %v1170_v53  ;;  %v1173_v7 = vld [vmem:[%s4999_s12 + $0x380] sm:$0xff]  ;;  %v1174_v16 = vld [vmem:[%s4999_s12 + $0x388] sm:$0xff] }
  0x88   : > { %975 = vmatprep.mubr.bf16.mxu1 %v7112_v0  ;;  %7412 = vst [vmem:[#allocation39_spill] sm:$0xff] %v5237_v20  ;;  %7414 = vst [vmem:[#allocation41_spill] sm:$0xff] %v5252_v29  ;;  %v1178_v21 = vld [vmem:[%s4999_s12 + $0x3a8] sm:$0xff] }
  0x89   : > { %1840 = vmatpush1.bf16.msra.mxu0 %v5208_v9  ;;  %7428 = vst [vmem:[#allocation55_spill] sm:$0xff] %v5307_v15  ;;  %7431 = vst [vmem:[#allocation58_spill] sm:$0xff] %v5320_v37 }
  0x8a   : > { %1881 = vmatpush1.bf16.msra.mxu1 %v5214_v10  ;;  %1841 = vmatprep.subr.bf16.mxu0 %v5216_v11  ;;  %7433 = vst [vmem:[#allocation60_spill] sm:$0xff] %v5330_v54  ;;  %7436 = vst [vmem:[#allocation63_spill] sm:$0xff] %v5339_v6 }
  0x8b   : > { %1882 = vmatprep.subr.bf16.mxu1 %v5219_v12 }
  0x8c   : > { %4244 = vmatmul.mubr.msk.bf16.gmra.mrb[28].mxu0 %vm656_vm1, %v5104_v27 }
  0x8d   : > { %1842 = vmatpush1.bf16.msra.mxu0 %v5228_v17  ;;  %4249 = vmatmul.mubr.msk.bf16.gmra.mrb[28].mxu1 %vm656_vm1, %v5104_v27  ;;  %v1134_v27 = vld [vmem:[%s4999_s12 + $0x248] sm:$0xff] }
  0x8e   : > { %1883 = vmatpush1.bf16.msra.mxu1 %v5232_v18  ;;  %1843 = vmatprep.subr.bf16.mxu0 %v5234_v19  ;;  %v5275_v46 = vcombine.high %v1134_v27, %v1138_v38  ;;  %v5286_v60 = vcombine.low %v1134_v27, %v1138_v38  ;;  %v5323_v27 = vcombine.high %v1158_v22, %v1162_v23  ;;  %v1165_v38 = vld [vmem:[%s4999_s12 + $0x340] sm:$0xff] }
  0x8f   : > { %1884 = vmatprep.subr.bf16.mxu1 %v5237_v20  ;;  %1861 = vmatprep.mubr.bf16.mxu0 %v7112_v0  ;;  %v5336_v5 = vcombine.high %v1165_v38, %v1169_v47  ;;  %v5350_v22 = vcombine.low %v1166_v52, %v1170_v53  ;;  %v5366_v52 = vcombine.low %v1174_v16, %v1178_v21 }
  0x90   : > { %1902 = vmatprep.mubr.bf16.mxu1 %v7112_v0  ;;  %7420 = vst [vmem:[#allocation47_spill] sm:$0xff] %v5275_v46  ;;  %7422 = vst [vmem:[#allocation49_spill] sm:$0xff] %v5286_v60  ;;  %v1177_v0 = vld [vmem:[%s4999_s12 + $0x3a0] sm:$0xff] }
  0x91   : > { %1844 = vmatpush1.bf16.msra.mxu0 %v5246_v28  ;;  %7432 = vst [vmem:[#allocation59_spill] sm:$0xff] %v5323_v27  ;;  %7435 = vst [vmem:[#allocation62_spill] sm:$0xff] %v5336_v5  ;;  %v5352_v23 = vcombine.high %v1173_v7, %v1177_v0 }
  0x92   : > { %1885 = vmatpush1.bf16.msra.mxu1 %v5252_v29  ;;  %1845 = vmatprep.subr.bf16.mxu0 %v5254_v30  ;;  %7438 = vst [vmem:[#allocation65_spill] sm:$0xff] %v5350_v22  ;;  %7442 = vst [vmem:[#allocation69_spill] sm:$0xff] %v5366_v52 }
  0x93   : > { %1886 = vmatprep.subr.bf16.mxu1 %v5257_v31  ;;  %7439 = vst [vmem:[#allocation66_spill] sm:$0xff] %v5352_v23 }
  0x95   : > { %1846 = vmatpush1.bf16.msra.mxu0 %v5266_v39 }
  0x96   : > { %1887 = vmatpush1.bf16.msra.mxu1 %v5270_v44  ;;  %1847 = vmatprep.subr.bf16.mxu0 %v5272_v45 }
  0x97   : > { %1888 = vmatprep.subr.bf16.mxu1 %v5275_v46 }
  0x99   : > { %1848 = vmatpush1.bf16.msra.mxu0 %v5282_v55 }
  0x9a   : > { %1889 = vmatpush1.bf16.msra.mxu1 %v5286_v60  ;;  %1849 = vmatprep.subr.bf16.mxu0 %v5288_v61 }
  0x9b   : > { %1890 = vmatprep.subr.bf16.mxu1 %v5291_v62 }
  0x9d   : > { %1850 = vmatpush1.bf16.msra.mxu0 %v5298_v8 }
  0x9e   : > { %1891 = vmatpush1.bf16.msra.mxu1 %v5302_v13  ;;  %1851 = vmatprep.subr.bf16.mxu0 %v5304_v14  ;;  %v1184_v14 = vld [vmem:[%s4999_s12 + $0x3d8] sm:$0xff] }
  0x9f   : > { %1892 = vmatprep.subr.bf16.mxu1 %v5307_v15  ;;  %v7453_v15 = vmov 0   ;;  %v1188_v13 = vld [vmem:[%s4999_s12 + $0x3f8] sm:$0xff] }
  0xa1   : > { %1852 = vmatpush1.bf16.msra.mxu0 %v5314_v25  ;;  %v1083_v25 = vld [vmem:[%s4999_s12 + $0xb0] sm:$0xff] }
  0xa2   : > { %1893 = vmatpush1.bf16.msra.mxu1 %v5318_v36  ;;  %1853 = vmatprep.subr.bf16.mxu0 %v5320_v37  ;;  %v5346_v36 = vcombine.low %v1165_v38, %v1169_v47  ;;  %v1181_v37 = vld [vmem:[%s4999_s12 + $0x3c0] sm:$0xff]  ;;  %v1182_v38 = vld [vmem:[%s4999_s12 + $0x3c8] sm:$0xff] }
  0xa3   : > { %1894 = vmatprep.subr.bf16.mxu1 %v5323_v27  ;;  %v5355_v27 = vcombine.high %v1174_v16, %v1178_v21  ;;  %v1186_v47 = vld [vmem:[%s4999_s12 + $0x3e8] sm:$0xff] }
  0xa4   : > { %7437 = vst [vmem:[#allocation64_spill] sm:$0xff] %v5346_v36  ;;  %v5382_v16 = vcombine.low %v1182_v38, %v1186_v47 }
  0xa5   : > { %1854 = vmatpush1.bf16.msra.mxu0 %v5330_v54  ;;  %7440 = vst [vmem:[#allocation67_spill] sm:$0xff] %v5355_v27  ;;  %v1185_v54 = vld [vmem:[%s4999_s12 + $0x3e0] sm:$0xff] }
  0xa6   : > { %1895 = vmatpush1.bf16.msra.mxu1 %v5334_v63  ;;  %1855 = vmatprep.subr.bf16.mxu0 %v5336_v5  ;;  %v5362_v63 = vcombine.low %v1173_v7, %v1177_v0  ;;  %v5368_v53 = vcombine.high %v1181_v37, %v1185_v54  ;;  %v1063_v5 = vld [vmem:[%s4999_s12 + $0x10] sm:$0xff]  ;;  %v1064_v0 = vld [vmem:[%s4999_s12 + $0x18] sm:$0xff]  ;;  %7446 = vst [vmem:[#allocation73_spill] sm:$0xff] %v5382_v16 }
  0xa7   : > { %1896 = vmatprep.subr.bf16.mxu1 %v5339_v6  ;;  %v5371_v6 = vcombine.high %v1182_v38, %v1186_v47  ;;  %v1068_v7 = vld [vmem:[%s4999_s12 + $0x38] sm:$0xff] }
  0xa8   : > { %7441 = vst [vmem:[#allocation68_spill] sm:$0xff] %v5362_v63  ;;  %7443 = vst [vmem:[#allocation70_spill] sm:$0xff] %v5368_v53  ;;  %v5398_v38 = vcombine.low %v1064_v0, %v1068_v7 }
  0xa9   : > { %1856 = vmatpush1.bf16.msra.mxu0 %v5346_v36  ;;  %7444 = vst [vmem:[#allocation71_spill] sm:$0xff] %v5371_v6  ;;  %v1067_v36 = vld [vmem:[%s4999_s12 + $0x30] sm:$0xff] }
  0xaa   : > { %1897 = vmatpush1.bf16.msra.mxu1 %v5350_v22  ;;  %1857 = vmatprep.subr.bf16.mxu0 %v5352_v23  ;;  %v5378_v22 = vcombine.low %v1181_v37, %v1185_v54  ;;  %v5384_v21 = vcombine.high %v1063_v5, %v1067_v36  ;;  %v1071_v23 = vld [vmem:[%s4999_s12 + $0x50] sm:$0xff]  ;;  %v1072_v37 = vld [vmem:[%s4999_s12 + $0x58] sm:$0xff]  ;;  %7450 = vst [vmem:[#allocation77_spill] sm:$0xff] %v5398_v38 }
  0xab   : > { %1898 = vmatprep.subr.bf16.mxu1 %v5355_v27  ;;  %v5387_v27 = vcombine.high %v1064_v0, %v1068_v7  ;;  %v1076_v54 = vld [vmem:[%s4999_s12 + $0x78] sm:$0xff] }
  0xac   : > { %7445 = vst [vmem:[#allocation72_spill] sm:$0xff] %v5378_v22  ;;  %7447 = vst [vmem:[#allocation74_spill] sm:$0xff] %v5384_v21  ;;  %v5416_v7 = vcombine.low %v1072_v37, %v1076_v54 }
  0xad   : > { %1858 = vmatpush1.bf16.msra.mxu0 %v5362_v63  ;;  %7448 = vst [vmem:[#allocation75_spill] sm:$0xff] %v5387_v27  ;;  %v1075_v63 = vld [vmem:[%s4999_s12 + $0x70] sm:$0xff] }
  0xae   : > { %1899 = vmatpush1.bf16.msra.mxu1 %v5366_v52  ;;  %1859 = vmatprep.subr.bf16.mxu0 %v5368_v53  ;;  %v5394_v52 = vcombine.low %v1063_v5, %v1067_v36  ;;  %v5400_v47 = vcombine.high %v1071_v23, %v1075_v63  ;;  %v1079_v53 = vld [vmem:[%s4999_s12 + $0x90] sm:$0xff]  ;;  %v1080_v36 = vld [vmem:[%s4999_s12 + $0x98] sm:$0xff]  ;;  %v5412_v0 = vcombine.low %v1071_v23, %v1075_v63 }
  0xaf   : > { %1900 = vmatprep.subr.bf16.mxu1 %v5371_v6  ;;  %v5403_v6 = vcombine.high %v1072_v37, %v1076_v54  ;;  %v1084_v5 = vld [vmem:[%s4999_s12 + $0xb8] sm:$0xff]  ;;  %7455 = vst [vmem:[#allocation81_spill] sm:$0xff] %v5416_v7  ;;  %v5430_v37 = vcombine.low %v1079_v53, %v1083_v25 }
  0xb0   : > { %7449 = vst [vmem:[#allocation76_spill] sm:$0xff] %v5394_v52  ;;  %7451 = vst [vmem:[#allocation78_spill] sm:$0xff] %v5400_v47  ;;  %v1088_v63 = vld [vmem:[%s4999_s12 + $0xd8] sm:$0xff]  ;;  %v5434_v54 = vcombine.low %v1080_v36, %v1084_v5 }
  0xb1   : > { %1860 = vmatpush1.bf16.msra.mxu0 %v5378_v22  ;;  %7452 = vst [vmem:[#allocation79_spill] sm:$0xff] %v5403_v6  ;;  %7454 = vst [vmem:[#allocation80_spill] sm:$0xff] %v5412_v0  ;;  %v1091_v22 = vld [vmem:[%s4999_s12 + $0xf0] sm:$0xff]  ;;  %v1092_v23 = vld [vmem:[%s4999_s12 + $0xf8] sm:$0xff] }
  0xb2   : > { %1901 = vmatpush1.bf16.msra.mxu1 %v5382_v16  ;;  %1911 = vmatprep.subr.bf16.mxu0 %v5384_v21  ;;  %v5421_v21 = vcombine.high %v1080_v36, %v1084_v5  ;;  %v1087_v16 = vld [vmem:[%s4999_s12 + $0xd0] sm:$0xff]  ;;  %7458 = vst [vmem:[#allocation84_spill] sm:$0xff] %v5430_v37  ;;  %7459 = vst [vmem:[#allocation85_spill] sm:$0xff] %v5434_v54  ;;  %v5450_v36 = vcombine.low %v1088_v63, %v1092_v23 }
  0xb3   : > { %1952 = vmatprep.subr.bf16.mxu1 %v5387_v27  ;;  %v5418_v27 = vcombine.high %v1079_v53, %v1083_v25  ;;  %v1096_v25 = vld [vmem:[%s4999_s12 + $0x118] sm:$0xff] }
  0xb4   : > { %1862 = vmatmul.mubr.bf16.vlgmr.msra.gmra.mrb[32].mxu0 %v7453_v15  ;;  %7457 = vst [vmem:[#allocation83_spill] sm:$0xff] %v5421_v21  ;;  %v1100_v53 = vld [vmem:[%s4999_s12 + $0x138] sm:$0xff]  ;;  %7463 = vst [vmem:[#allocation89_spill] sm:$0xff] %v5450_v36 }
  0xb5   : > { %1903 = vmatmul.mubr.bf16.vlgmr.msra.gmra.mrb[32].mxu1 %v7453_v15  ;;  %1912 = vmatpush1.bf16.msra.mxu0 %v5394_v52  ;;  %7456 = vst [vmem:[#allocation82_spill] sm:$0xff] %v5418_v27  ;;  %v1187_v52 = vld [vmem:[%s4999_s12 + $0x3f0] sm:$0xff] }
  0xb6   : > { %1953 = vmatpush1.bf16.msra.mxu1 %v5398_v38  ;;  %1913 = vmatprep.subr.bf16.mxu0 %v5400_v47  ;;  %v5439_v47 = vcombine.high %v1088_v63, %v1092_v23  ;;  %v1095_v38 = vld [vmem:[%s4999_s12 + $0x110] sm:$0xff]  ;;  %v5466_v63 = vcombine.low %v1096_v25, %v1100_v53 }
  0xb7   : > { %1954 = vmatprep.subr.bf16.mxu1 %v5403_v6  ;;  %1943 = vmatprep.mubr.bf16.mxu0 %v7453_v15  ;;  %v5436_v6 = vcombine.high %v1087_v16, %v1091_v22 }
  0xb8   : > { %1984 = vmatprep.mubr.bf16.mxu1 %v7453_v15  ;;  %7461 = vst [vmem:[#allocation87_spill] sm:$0xff] %v5439_v47  ;;  %7467 = vst [vmem:[#allocation93_spill] sm:$0xff] %v5466_v63 }
  0xb9   : > { %1914 = vmatpush1.bf16.msra.mxu0 %v5412_v0  ;;  %7460 = vst [vmem:[#allocation86_spill] sm:$0xff] %v5436_v6  ;;  %v1099_v0 = vld [vmem:[%s4999_s12 + $0x130] sm:$0xff] }
  0xba   : > { %1955 = vmatpush1.bf16.msra.mxu1 %v5416_v7  ;;  %1915 = vmatprep.subr.bf16.mxu0 %v5418_v27  ;;  %v5446_v7 = vcombine.low %v1087_v16, %v1091_v22  ;;  %v5452_v5 = vcombine.high %v1095_v38, %v1099_v0  ;;  %v1103_v27 = vld [vmem:[%s4999_s12 + $0x150] sm:$0xff]  ;;  %v1104_v22 = vld [vmem:[%s4999_s12 + $0x158] sm:$0xff] }
  0xbb   : > { %1956 = vmatprep.subr.bf16.mxu1 %v5421_v21  ;;  %v5455_v21 = vcombine.high %v1096_v25, %v1100_v53  ;;  %v1108_v16 = vld [vmem:[%s4999_s12 + $0x178] sm:$0xff] }
  0xbc   : > { %7462 = vst [vmem:[#allocation88_spill] sm:$0xff] %v5446_v7  ;;  %7464 = vst [vmem:[#allocation90_spill] sm:$0xff] %v5452_v5  ;;  %v5482_v25 = vcombine.low %v1104_v22, %v1108_v16 }
  0xbd   : > { %1916 = vmatpush1.bf16.msra.mxu0 %v5430_v37  ;;  %7465 = vst [vmem:[#allocation91_spill] sm:$0xff] %v5455_v21  ;;  %v1107_v37 = vld [vmem:[%s4999_s12 + $0x170] sm:$0xff] }
  0xbe   : > { %1957 = vmatpush1.bf16.msra.mxu1 %v5434_v54  ;;  %1917 = vmatprep.subr.bf16.mxu0 %v5436_v6  ;;  %v5462_v54 = vcombine.low %v1095_v38, %v1099_v0  ;;  %v5468_v23 = vcombine.high %v1103_v27, %v1107_v37  ;;  %v1111_v6 = vld [vmem:[%s4999_s12 + $0x190] sm:$0xff]  ;;  %v1112_v38 = vld [vmem:[%s4999_s12 + $0x198] sm:$0xff]  ;;  %7471 = vst [vmem:[#allocation97_spill] sm:$0xff] %v5482_v25 }
  0xbf   : > { %1958 = vmatprep.subr.bf16.mxu1 %v5439_v47  ;;  %v5471_v47 = vcombine.high %v1104_v22, %v1108_v16  ;;  %v1116_v0 = vld [vmem:[%s4999_s12 + $0x1b8] sm:$0xff] }
  0xc0   : > { %7466 = vst [vmem:[#allocation92_spill] sm:$0xff] %v5462_v54  ;;  %7468 = vst [vmem:[#allocation94_spill] sm:$0xff] %v5468_v23  ;;  %v5498_v22 = vcombine.low %v1112_v38, %v1116_v0 }
  0xc1   : > { %1918 = vmatpush1.bf16.msra.mxu0 %v5446_v7  ;;  %7469 = vst [vmem:[#allocation95_spill] sm:$0xff] %v5471_v47  ;;  %v1115_v7 = vld [vmem:[%s4999_s12 + $0x1b0] sm:$0xff] }
  0xc2   : > { %1959 = vmatpush1.bf16.msra.mxu1 %v5450_v36  ;;  %1919 = vmatprep.subr.bf16.mxu0 %v5452_v5  ;;  %v5478_v36 = vcombine.low %v1103_v27, %v1107_v37  ;;  %v5484_v53 = vcombine.high %v1111_v6, %v1115_v7  ;;  %v1119_v5 = vld [vmem:[%s4999_s12 + $0x1d0] sm:$0xff]  ;;  %v1120_v27 = vld [vmem:[%s4999_s12 + $0x1d8] sm:$0xff]  ;;  %7475 = vst [vmem:[#allocation101_spill] sm:$0xff] %v5498_v22 }
  0xc3   : > { %1960 = vmatprep.subr.bf16.mxu1 %v5455_v21  ;;  %v5487_v21 = vcombine.high %v1112_v38, %v1116_v0  ;;  %v1124_v37 = vld [vmem:[%s4999_s12 + $0x1f8] sm:$0xff] }
  0xc4   : > { %7470 = vst [vmem:[#allocation96_spill] sm:$0xff] %v5478_v36  ;;  %7472 = vst [vmem:[#allocation98_spill] sm:$0xff] %v5484_v53  ;;  %v5514_v38 = vcombine.low %v1120_v27, %v1124_v37 }
  0xc5   : > { %1920 = vmatpush1.bf16.msra.mxu0 %v5462_v54  ;;  %7473 = vst [vmem:[#allocation99_spill] sm:$0xff] %v5487_v21  ;;  %v1123_v54 = vld [vmem:[%s4999_s12 + $0x1f0] sm:$0xff] }
  0xc6   : > { %1961 = vmatpush1.bf16.msra.mxu1 %v5466_v63  ;;  %1921 = vmatprep.subr.bf16.mxu0 %v5468_v23  ;;  %v5494_v63 = vcombine.low %v1111_v6, %v1115_v7  ;;  %v5500_v16 = vcombine.high %v1119_v5, %v1123_v54  ;;  %v1127_v23 = vld [vmem:[%s4999_s12 + $0x210] sm:$0xff]  ;;  %v1128_v6 = vld [vmem:[%s4999_s12 + $0x218] sm:$0xff]  ;;  %7479 = vst [vmem:[#allocation105_spill] sm:$0xff] %v5514_v38 }
  0xc7   : > { %1962 = vmatprep.subr.bf16.mxu1 %v5471_v47  ;;  %v5503_v47 = vcombine.high %v1120_v27, %v1124_v37  ;;  %v1132_v7 = vld [vmem:[%s4999_s12 + $0x238] sm:$0xff] }
  0xc8   : > { %7474 = vst [vmem:[#allocation100_spill] sm:$0xff] %v5494_v63  ;;  %7476 = vst [vmem:[#allocation102_spill] sm:$0xff] %v5500_v16  ;;  %v5530_v27 = vcombine.low %v1128_v6, %v1132_v7 }
  0xc9   : > { %1922 = vmatpush1.bf16.msra.mxu0 %v5478_v36  ;;  %7477 = vst [vmem:[#allocation103_spill] sm:$0xff] %v5503_v47  ;;  %v1131_v36 = vld [vmem:[%s4999_s12 + $0x230] sm:$0xff] }
  0xca   : > { %1963 = vmatpush1.bf16.msra.mxu1 %v5482_v25  ;;  %1923 = vmatprep.subr.bf16.mxu0 %v5484_v53  ;;  %v5510_v25 = vcombine.low %v1119_v5, %v1123_v54  ;;  %v5516_v0 = vcombine.high %v1127_v23, %v1131_v36  ;;  %v1135_v53 = vld [vmem:[%s4999_s12 + $0x250] sm:$0xff]  ;;  %v1136_v54 = vld [vmem:[%s4999_s12 + $0x258] sm:$0xff]  ;;  %7483 = vst [vmem:[#allocation109_spill] sm:$0xff] %v5530_v27 }
  0xcb   : > { %1964 = vmatprep.subr.bf16.mxu1 %v5487_v21  ;;  %v5519_v21 = vcombine.high %v1128_v6, %v1132_v7  ;;  %v1140_v5 = vld [vmem:[%s4999_s12 + $0x278] sm:$0xff] }
  0xcc   : > { %7478 = vst [vmem:[#allocation104_spill] sm:$0xff] %v5510_v25  ;;  %7480 = vst [vmem:[#allocation106_spill] sm:$0xff] %v5516_v0  ;;  %v5546_v6 = vcombine.low %v1136_v54, %v1140_v5 }
  0xcd   : > { %1924 = vmatpush1.bf16.msra.mxu0 %v5494_v63  ;;  %7481 = vst [vmem:[#allocation107_spill] sm:$0xff] %v5519_v21  ;;  %v1139_v63 = vld [vmem:[%s4999_s12 + $0x270] sm:$0xff] }
  0xce   : > { %1965 = vmatpush1.bf16.msra.mxu1 %v5498_v22  ;;  %1925 = vmatprep.subr.bf16.mxu0 %v5500_v16  ;;  %v5526_v22 = vcombine.low %v1127_v23, %v1131_v36  ;;  %v5532_v37 = vcombine.high %v1135_v53, %v1139_v63  ;;  %v1143_v16 = vld [vmem:[%s4999_s12 + $0x290] sm:$0xff]  ;;  %v1144_v36 = vld [vmem:[%s4999_s12 + $0x298] sm:$0xff]  ;;  %7487 = vst [vmem:[#allocation113_spill] sm:$0xff] %v5546_v6 }
  0xcf   : > { %1966 = vmatprep.subr.bf16.mxu1 %v5503_v47  ;;  %v5535_v47 = vcombine.high %v1136_v54, %v1140_v5  ;;  %v1148_v23 = vld [vmem:[%s4999_s12 + $0x2b8] sm:$0xff] }
  0xd0   : > { %7482 = vst [vmem:[#allocation108_spill] sm:$0xff] %v5526_v22  ;;  %7484 = vst [vmem:[#allocation110_spill] sm:$0xff] %v5532_v37  ;;  %v5562_v54 = vcombine.low %v1144_v36, %v1148_v23 }
  0xd1   : > { %1926 = vmatpush1.bf16.msra.mxu0 %v5510_v25  ;;  %7485 = vst [vmem:[#allocation111_spill] sm:$0xff] %v5535_v47  ;;  %v1147_v25 = vld [vmem:[%s4999_s12 + $0x2b0] sm:$0xff] }
  0xd2   : > { %1967 = vmatpush1.bf16.msra.mxu1 %v5514_v38  ;;  %1927 = vmatprep.subr.bf16.mxu0 %v5516_v0  ;;  %v5542_v38 = vcombine.low %v1135_v53, %v1139_v63  ;;  %v5548_v7 = vcombine.high %v1143_v16, %v1147_v25  ;;  %v1151_v0 = vld [vmem:[%s4999_s12 + $0x2d0] sm:$0xff]  ;;  %v1152_v63 = vld [vmem:[%s4999_s12 + $0x2d8] sm:$0xff]  ;;  %7491 = vst [vmem:[#allocation117_spill] sm:$0xff] %v5562_v54 }
  0xd3   : > { %1968 = vmatprep.subr.bf16.mxu1 %v5519_v21  ;;  %v5551_v21 = vcombine.high %v1144_v36, %v1148_v23  ;;  %v1156_v53 = vld [vmem:[%s4999_s12 + $0x2f8] sm:$0xff] }
  0xd4   : > { %7486 = vst [vmem:[#allocation112_spill] sm:$0xff] %v5542_v38  ;;  %7488 = vst [vmem:[#allocation114_spill] sm:$0xff] %v5548_v7  ;;  %v5578_v36 = vcombine.low %v1152_v63, %v1156_v53 }
  0xd5   : > { %1928 = vmatpush1.bf16.msra.mxu0 %v5526_v22  ;;  %7489 = vst [vmem:[#allocation115_spill] sm:$0xff] %v5551_v21  ;;  %v1155_v22 = vld [vmem:[%s4999_s12 + $0x2f0] sm:$0xff] }
  0xd6   : > { %1969 = vmatpush1.bf16.msra.mxu1 %v5530_v27  ;;  %1929 = vmatprep.subr.bf16.mxu0 %v5532_v37  ;;  %v5558_v27 = vcombine.low %v1143_v16, %v1147_v25  ;;  %v5564_v5 = vcombine.high %v1151_v0, %v1155_v22  ;;  %v1159_v37 = vld [vmem:[%s4999_s12 + $0x310] sm:$0xff]  ;;  %v1160_v25 = vld [vmem:[%s4999_s12 + $0x318] sm:$0xff]  ;;  %7495 = vst [vmem:[#allocation121_spill] sm:$0xff] %v5578_v36 }
  0xd7   : > { %1970 = vmatprep.subr.bf16.mxu1 %v5535_v47  ;;  %v5567_v47 = vcombine.high %v1152_v63, %v1156_v53  ;;  %v1164_v16 = vld [vmem:[%s4999_s12 + $0x338] sm:$0xff] }
  0xd8   : > { %7490 = vst [vmem:[#allocation116_spill] sm:$0xff] %v5558_v27  ;;  %7492 = vst [vmem:[#allocation118_spill] sm:$0xff] %v5564_v5  ;;  %v5594_v63 = vcombine.low %v1160_v25, %v1164_v16 }
  0xd9   : > { %1930 = vmatpush1.bf16.msra.mxu0 %v5542_v38  ;;  %7493 = vst [vmem:[#allocation119_spill] sm:$0xff] %v5567_v47  ;;  %v1163_v38 = vld [vmem:[%s4999_s12 + $0x330] sm:$0xff] }
  0xda   : > { %1971 = vmatpush1.bf16.msra.mxu1 %v5546_v6  ;;  %1931 = vmatprep.subr.bf16.mxu0 %v5548_v7  ;;  %v5574_v6 = vcombine.low %v1151_v0, %v1155_v22  ;;  %v5580_v23 = vcombine.high %v1159_v37, %v1163_v38  ;;  %v1167_v7 = vld [vmem:[%s4999_s12 + $0x350] sm:$0xff]  ;;  %v1168_v22 = vld [vmem:[%s4999_s12 + $0x358] sm:$0xff]  ;;  %7499 = vst [vmem:[#allocation125_spill] sm:$0xff] %v5594_v63 }
  0xdb   : > { %1972 = vmatprep.subr.bf16.mxu1 %v5551_v21  ;;  %v5583_v21 = vcombine.high %v1160_v25, %v1164_v16  ;;  %v1172_v0 = vld [vmem:[%s4999_s12 + $0x378] sm:$0xff] }
  0xdc   : > { %7494 = vst [vmem:[#allocation120_spill] sm:$0xff] %v5574_v6  ;;  %7496 = vst [vmem:[#allocation122_spill] sm:$0xff] %v5580_v23  ;;  %v5610_v25 = vcombine.low %v1168_v22, %v1172_v0 }
  0xdd   : > { %1932 = vmatpush1.bf16.msra.mxu0 %v5558_v27  ;;  %7497 = vst [vmem:[#allocation123_spill] sm:$0xff] %v5583_v21  ;;  %v1171_v27 = vld [vmem:[%s4999_s12 + $0x370] sm:$0xff] }
  0xde   : > { %1973 = vmatpush1.bf16.msra.mxu1 %v5562_v54  ;;  %1933 = vmatprep.subr.bf16.mxu0 %v5564_v5  ;;  %v5590_v54 = vcombine.low %v1159_v37, %v1163_v38  ;;  %v5596_v53 = vcombine.high %v1167_v7, %v1171_v27  ;;  %v1175_v5 = vld [vmem:[%s4999_s12 + $0x390] sm:$0xff]  ;;  %v1176_v38 = vld [vmem:[%s4999_s12 + $0x398] sm:$0xff]  ;;  %7503 = vst [vmem:[#allocation129_spill] sm:$0xff] %v5610_v25 }
  0xdf   : > { %1974 = vmatprep.subr.bf16.mxu1 %v5567_v47  ;;  %v5599_v47 = vcombine.high %v1168_v22, %v1172_v0  ;;  %v1180_v37 = vld [vmem:[%s4999_s12 + $0x3b8] sm:$0xff]  ;;  %v5631_v0 = vcombine.high %v1184_v14, %v1188_v13 }
  0xe0   : > { %7498 = vst [vmem:[#allocation124_spill] sm:$0xff] %v5590_v54  ;;  %7500 = vst [vmem:[#allocation126_spill] sm:$0xff] %v5596_v53 }
  0xe1   : > { %1934 = vmatpush1.bf16.msra.mxu0 %v5574_v6  ;;  %7501 = vst [vmem:[#allocation127_spill] sm:$0xff] %v5599_v47  ;;  %v1179_v6 = vld [vmem:[%s4999_s12 + $0x3b0] sm:$0xff]  ;;  %7509 = vst [vmem:[#allocation135_spill] sm:$0xff] %v5631_v0 }
  0xe2   : > { %1975 = vmatpush1.bf16.msra.mxu1 %v5578_v36  ;;  %1935 = vmatprep.subr.bf16.mxu0 %v5580_v23  ;;  %v5606_v36 = vcombine.low %v1167_v7, %v1171_v27  ;;  %v5612_v16 = vcombine.high %v1175_v5, %v1179_v6  ;;  %v1183_v23 = vld [vmem:[%s4999_s12 + $0x3d0] sm:$0xff]  ;;  %v5622_v27 = vcombine.low %v1175_v5, %v1179_v6 }
  0xe3   : > { %1976 = vmatprep.subr.bf16.mxu1 %v5583_v21  ;;  %v5615_v21 = vcombine.high %v1176_v38, %v1180_v37  ;;  %v5626_v7 = vcombine.low %v1176_v38, %v1180_v37  ;;  %v5628_v22 = vcombine.high %v1183_v23, %v1187_v52  ;;  %v5638_v6 = vcombine.low %v1184_v14, %v1188_v13  ;;  %v7514_v5 = vld [vmem:[#allocation55_spill] sm:$0xff] }
  0xe4   : > { %7502 = vst [vmem:[#allocation128_spill] sm:$0xff] %v5606_v36  ;;  %7504 = vst [vmem:[#allocation130_spill] sm:$0xff] %v5612_v16  ;;  %v416_v13 = vlaneseq  ;;  %v5698_v38 = vld [vmem:[%s368_s25] sm:$0xff] }
  0xe5   : > { %1936 = vmatpush1.bf16.msra.mxu0 %v5590_v54  ;;  %7505 = vst [vmem:[#allocation131_spill] sm:$0xff] %v5615_v21  ;;  %7506 = vst [vmem:[#allocation132_spill] sm:$0xff] %v5622_v27 }
  0xe6   : > { %1977 = vmatpush1.bf16.msra.mxu1 %v5594_v63  ;;  %1937 = vmatprep.subr.bf16.mxu0 %v5596_v53  ;;  %7507 = vst [vmem:[#allocation133_spill] sm:$0xff] %v5626_v7  ;;  %7508 = vst [vmem:[#allocation134_spill] sm:$0xff] %v5628_v22  ;;  %v5688_v14 = vshrl.u32 %v416_v13, 7 }
  0xe7   : > { %1978 = vmatprep.subr.bf16.mxu1 %v5599_v47  ;;  %v5634_v47 = vcombine.low %v1183_v23, %v1187_v52  ;;  %7511 = vst [vmem:[#allocation137_spill] sm:$0xff] %v5638_v6  ;;  %v7513_v52 = vld [vmem:[#allocation54_spill] sm:$0xff] }
  0xe8   : > { %v418_v23 = vsub.s32 0, %v5688_v14  ;;  %v422_v37 = vsub.s32 1, %v5688_v14  ;;  %v426_v13 = vsub.s32 2, %v5688_v14 }
  0xe9   : > { %1938 = vmatpush1.bf16.msra.mxu0 %v5606_v36  ;;  %7510 = vst [vmem:[#allocation136_spill] sm:$0xff] %v5634_v47 }
  0xea   : > { %1979 = vmatpush1.bf16.msra.mxu1 %v5610_v25  ;;  %1939 = vmatprep.subr.bf16.mxu0 %v5612_v16 }
  0xeb   : > { %1980 = vmatprep.subr.bf16.mxu1 %v5615_v21 }
  0xed   : > { %1940 = vmatpush1.bf16.msra.mxu0 %v5622_v27 }
  0xee   : > { %1981 = vmatpush1.bf16.msra.mxu1 %v5626_v7  ;;  %1941 = vmatprep.subr.bf16.mxu0 %v5628_v22 }
  0xef   : > { %1982 = vmatprep.subr.bf16.mxu1 %v5631_v0 }
  0xf1   : > { %1942 = vmatpush1.bf16.msra.mxu0 %v5634_v47 }
  0xf2   : > { %1983 = vmatpush1.bf16.msra.mxu1 %v5638_v6  ;;  %2050 = vmatprep.subr.bf16.mxu0 %v5090_v24 }
  0xf3   : > { %2091 = vmatprep.subr.bf16.mxu1 %v5096_v26 }
  0xf4   : > { %1944 = vmatmul.mubr.bf16.vlgmr.msra.gmra.mrb[36].mxu0 %v7453_v15 }
  0xf5   : > { %1985 = vmatmul.mubr.bf16.vlgmr.msra.gmra.mrb[36].mxu1 %v7453_v15  ;;  %2051 = vmatpush1.bf16.msra.mxu0 %v5117_v32  ;;  %v7512_v15 = vld [vmem:[#allocation53_spill] sm:$0xff] }
  0xf6   : > { %2092 = vmatpush1.bf16.msra.mxu1 %v5119_v33  ;;  %2052 = vmatprep.subr.bf16.mxu0 %v5121_v34 }
  0xf7   : > { %2093 = vmatprep.subr.bf16.mxu1 %v5123_v35 }
  0xf9   : > { %2053 = vmatpush1.bf16.msra.mxu0 %v5134_v40 }
  0xfa   : > { %2094 = vmatpush1.bf16.msra.mxu1 %v5138_v41  ;;  %2054 = vmatprep.subr.bf16.mxu0 %v5140_v42 }
  0xfb   : > { %2095 = vmatprep.subr.bf16.mxu1 %v5143_v43 }
  0xfd   : > { %2055 = vmatpush1.bf16.msra.mxu0 %v5152_v48 }
  0xfe   : > { %2096 = vmatpush1.bf16.msra.mxu1 %v5156_v49  ;;  %2056 = vmatprep.subr.bf16.mxu0 %v5158_v50 }
  0xff   : > { %2097 = vmatprep.subr.bf16.mxu1 %v5161_v51 }
 0x101   : > { %2057 = vmatpush1.bf16.msra.mxu0 %v5170_v56 }
 0x102   : > { %2098 = vmatpush1.bf16.msra.mxu1 %v5176_v57  ;;  %2058 = vmatprep.subr.bf16.mxu0 %v5178_v58 }
 0x103   : > { %2099 = vmatprep.subr.bf16.mxu1 %v5181_v59 }
 0x105   : > { %2059 = vmatpush1.bf16.msra.mxu0 %v5190_v1 }
 0x106   : > { %2100 = vmatpush1.bf16.msra.mxu1 %v5194_v2  ;;  %2060 = vmatprep.subr.bf16.mxu0 %v5196_v3 }
 0x107   : > { %2101 = vmatprep.subr.bf16.mxu1 %v5199_v4 }
 0x109   : > { %2061 = vmatpush1.bf16.msra.mxu0 %v5208_v9 }
 0x10a   : > { %2102 = vmatpush1.bf16.msra.mxu1 %v5214_v10  ;;  %2062 = vmatprep.subr.bf16.mxu0 %v5216_v11 }
 0x10b   : > { %2103 = vmatprep.subr.bf16.mxu1 %v5219_v12 }
 0x10d   : > { %2063 = vmatpush1.bf16.msra.mxu0 %v5228_v17 }
 0x10e   : > { %2104 = vmatpush1.bf16.msra.mxu1 %v5232_v18  ;;  %2064 = vmatprep.subr.bf16.mxu0 %v5234_v19  ;;  %v7542_v19 = vld [vmem:[#allocation74_spill] sm:$0xff] }
 0x10f   : > { %2105 = vmatprep.subr.bf16.mxu1 %v5237_v20  ;;  %v7533_v20 = vld [vmem:[#allocation70_spill] sm:$0xff] }
 0x111   : > { %2065 = vmatpush1.bf16.msra.mxu0 %v5246_v28 }
 0x112   : > { %2106 = vmatpush1.bf16.msra.mxu1 %v5252_v29  ;;  %2066 = vmatprep.subr.bf16.mxu0 %v5254_v30  ;;  %v7525_v30 = vld [vmem:[#allocation65_spill] sm:$0xff]  ;;  %v7526_v29 = vld [vmem:[#allocation66_spill] sm:$0xff] }
 0x113   : > { %2107 = vmatprep.subr.bf16.mxu1 %v5257_v31  ;;  %v7523_v31 = vld [vmem:[#allocation64_spill] sm:$0xff] }
 0x115   : > { %2067 = vmatpush1.bf16.msra.mxu0 %v5266_v39 }
 0x116   : > { %2108 = vmatpush1.bf16.msra.mxu1 %v5270_v44  ;;  %2068 = vmatprep.subr.bf16.mxu0 %v5272_v45  ;;  %v7520_v45 = vld [vmem:[#allocation61_spill] sm:$0xff] }
 0x117   : > { %2109 = vmatprep.subr.bf16.mxu1 %v5275_v46  ;;  %v7519_v46 = vld [vmem:[#allocation60_spill] sm:$0xff] }
 0x119   : > { %2069 = vmatpush1.bf16.msra.mxu0 %v5282_v55  ;;  %v5714_v55 = vrot.slane %v5698_v38, %v426_v13 }
 0x11a   : > { %2110 = vmatpush1.bf16.msra.mxu1 %v5286_v60  ;;  %2070 = vmatprep.subr.bf16.mxu0 %v5288_v61  ;;  %v7516_v61 = vld [vmem:[#allocation57_spill] sm:$0xff]  ;;  %v7517_v60 = vld [vmem:[#allocation58_spill] sm:$0xff] }
 0x11b   : > { %2111 = vmatprep.subr.bf16.mxu1 %v5291_v62  ;;  %v7515_v62 = vld [vmem:[#allocation56_spill] sm:$0xff] }
 0x11d   : > { %2071 = vmatpush1.bf16.msra.mxu0 %v5298_v8  ;;  %v430_v8 = vsub.s32 3, %v5688_v14 }
 0x11e   : > { %2112 = vmatpush1.bf16.msra.mxu1 %v7512_v15  ;;  %2072 = vmatprep.subr.bf16.mxu0 %v7513_v52  ;;  %v7518_v15 = vld [vmem:[#allocation59_spill] sm:$0xff]  ;;  %v5711_v52 = vrot.slane %v5698_v38, %v422_v37 }
 0x11f   : > { %2113 = vmatprep.subr.bf16.mxu1 %v7514_v5  ;;  %v5708_v5 = vrot.slane %v5698_v38, %v418_v23 }
 0x121   : > { %2073 = vmatpush1.bf16.msra.mxu0 %v7515_v62  ;;  %v5718_v62 = vrot.slane %v5698_v38, %v430_v8 }
 0x122   : > { %2114 = vmatpush1.bf16.msra.mxu1 %v7516_v61  ;;  %2074 = vmatprep.subr.bf16.mxu0 %v7517_v60  ;;  %v7521_v61 = vld [vmem:[#allocation62_spill] sm:$0xff] }
 0x123   : > { %2115 = vmatprep.subr.bf16.mxu1 %v7518_v15  ;;  %v7522_v15 = vld [vmem:[#allocation63_spill] sm:$0xff] }
 0x125   : > { %2075 = vmatpush1.bf16.msra.mxu0 %v7519_v46 }
 0x126   : > { %2116 = vmatpush1.bf16.msra.mxu1 %v7520_v45  ;;  %2076 = vmatprep.subr.bf16.mxu0 %v7521_v61 }
 0x127   : > { %v728_v60 = vpop.f32.mrb[0].mxu0  ;;  %2117 = vmatprep.subr.bf16.mxu1 %v7522_v15  ;;  %v801_v44 = vpop.f32.mrb[0].mxu1 }
 0x128   : > { %v5724_v23 = vadd.f32 %v728_v60, %v5708_v5  ;;  %v730_v37 = vpop.f32.mrb[1].mxu0  ;;  %v5730_v46 = vadd.f32 %v801_v44, %v5714_v55  ;;  %v803_v8 = vpop.f32.mrb[1].mxu1 }
 0x129   : > { %v5727_v13 = vadd.f32 %v730_v37, %v5711_v52  ;;  %v732_v39 = vpop.f32.mrb[2].mxu0  ;;  %2077 = vmatpush1.bf16.msra.mxu0 %v7523_v31  ;;  %v5737_v15 = vadd.f32 %v803_v8, %v5718_v62  ;;  %v805_v60 = vpop.f32.mrb[2].mxu1  ;;  %v7529_v31 = vld [vmem:[#allocation67_spill] sm:$0xff]  ;;  %v7532_v8 = vld [vmem:[#allocation69_spill] sm:$0xff] }
 0x12a   : > { %v5734_v61 = vadd.f32 %v732_v39, %v5708_v5  ;;  %v734_v45 = vpop.f32.mrb[3].mxu0  ;;  %2118 = vmatpush1.bf16.msra.mxu1 %v7525_v30  ;;  %2078 = vmatprep.subr.bf16.mxu0 %v7526_v29  ;;  %v5745_v44 = vadd.f32 %v805_v60, %v5714_v55  ;;  %v807_v28 = vpop.f32.mrb[3].mxu1  ;;  %v7534_v29 = vld [vmem:[#allocation71_spill] sm:$0xff] }
 0x12b   : > { %v5742_v37 = vadd.f32 %v734_v45, %v5711_v52  ;;  %2119 = vmatprep.subr.bf16.mxu1 %v7529_v31  ;;  %v5749_v39 = vadd.f32 %v807_v28, %v5718_v62 }
 0x12c   : > { %7524 = vst [vmem:[#allocation138_spill] sm:$0xff] %v5734_v61  ;;  %7528 = vst [vmem:[#allocation140_spill] sm:$0xff] %v5745_v44  ;;  %v7531_v61 = vld [vmem:[#allocation68_spill] sm:$0xff] }
 0x12d   : > { %7527 = vst [vmem:[#allocation139_spill] sm:$0xff] %v5742_v37  ;;  %7530 = vst [vmem:[#allocation141_spill] sm:$0xff] %v5749_v39  ;;  %2079 = vmatpush1.bf16.msra.mxu0 %v7531_v61  ;;  %v7538_v61 = vld [vmem:[#allocation72_spill] sm:$0xff] }
 0x12e   : > { %2120 = vmatpush1.bf16.msra.mxu1 %v7532_v8  ;;  %2080 = vmatprep.subr.bf16.mxu0 %v7533_v20 }
 0x12f   : > { %v738_v30 = vpop.f32.mrb[4].mxu0  ;;  %2121 = vmatprep.subr.bf16.mxu1 %v7534_v29 }
 0x130   : > { %v5756_v45 = vadd.f32 %v738_v30, %v5708_v5  ;;  %v740_v60 = vpop.f32.mrb[5].mxu0  ;;  %v811_v37 = vpop.f32.mrb[4].mxu1 }
 0x131   : > { %v5759_v44 = vadd.f32 %v740_v60, %v5711_v52  ;;  %v742_v31 = vpop.f32.mrb[6].mxu0  ;;  %v5762_v28 = vadd.f32 %v811_v37, %v5714_v55  ;;  %v813_v39 = vpop.f32.mrb[5].mxu1  ;;  %2081 = vmatpush1.bf16.msra.mxu0 %v7538_v61 }
 0x132   : > { %7535 = vst [vmem:[#allocation142_spill] sm:$0xff] %v5756_v45  ;;  %v5766_v20 = vadd.f32 %v742_v31, %v5708_v5  ;;  %v744_v8 = vpop.f32.mrb[7].mxu0  ;;  %v5769_v29 = vadd.f32 %v813_v39, %v5718_v62  ;;  %v815_v30 = vpop.f32.mrb[6].mxu1  ;;  %v7541_v45 = vld [vmem:[#allocation73_spill] sm:$0xff]  ;;  %2132 = vmatprep.subr.bf16.mxu0 %v7542_v19 }
 0x133   : > { %7536 = vst [vmem:[#allocation143_spill] sm:$0xff] %v5759_v44  ;;  %7537 = vst [vmem:[#allocation144_spill] sm:$0xff] %v5762_v28  ;;  %2122 = vmatpush1.bf16.msra.mxu1 %v7541_v45  ;;  %v5774_v60 = vadd.f32 %v744_v8, %v5711_v52  ;;  %v5777_v37 = vadd.f32 %v815_v30, %v5714_v55  ;;  %v817_v44 = vpop.f32.mrb[7].mxu1  ;;  %v7545_v28 = vld [vmem:[#allocation75_spill] sm:$0xff] }
 0x134   : > { %7539 = vst [vmem:[#allocation145_spill] sm:$0xff] %v5766_v20  ;;  %7540 = vst [vmem:[#allocation146_spill] sm:$0xff] %v5769_v29  ;;  %2173 = vmatprep.subr.bf16.mxu1 %v7545_v28  ;;  %v5781_v31 = vadd.f32 %v817_v44, %v5718_v62 }
 0x135   : > { %7543 = vst [vmem:[#allocation147_spill] sm:$0xff] %v5774_v60  ;;  %7544 = vst [vmem:[#allocation148_spill] sm:$0xff] %v5777_v37 }
 0x136   : > { %7546 = vst [vmem:[#allocation149_spill] sm:$0xff] %v5781_v31 }
 0x137   : > { %v748_v20 = vpop.f32.mrb[8].mxu0 }
 0x138   : > { %v5784_v39 = vadd.f32 %v748_v20, %v5708_v5  ;;  %v750_v29 = vpop.f32.mrb[9].mxu0  ;;  %v821_v45 = vpop.f32.mrb[8].mxu1 }
 0x139   : > { %v5787_v19 = vadd.f32 %v750_v29, %v5711_v52  ;;  %v752_v8 = vpop.f32.mrb[10].mxu0  ;;  %v5790_v60 = vadd.f32 %v821_v45, %v5714_v55  ;;  %v823_v30 = vpop.f32.mrb[9].mxu1 }
 0x13a   : > { %7547 = vst [vmem:[#allocation150_spill] sm:$0xff] %v5784_v39  ;;  %v5793_v37 = vadd.f32 %v752_v8, %v5708_v5  ;;  %v754_v28 = vpop.f32.mrb[11].mxu0  ;;  %v5796_v44 = vadd.f32 %v823_v30, %v5718_v62  ;;  %v825_v31 = vpop.f32.mrb[10].mxu1  ;;  %v434_v30 = vsub.s32 4, %v5688_v14 }
 0x13b   : > { %7548 = vst [vmem:[#allocation151_spill] sm:$0xff] %v5787_v19  ;;  %7549 = vst [vmem:[#allocation152_spill] sm:$0xff] %v5790_v60  ;;  %v5799_v20 = vadd.f32 %v754_v28, %v5711_v52  ;;  %v5802_v39 = vadd.f32 %v825_v31, %v5714_v55  ;;  %v827_v29 = vpop.f32.mrb[11].mxu1 }
 0x13c   : > { %7550 = vst [vmem:[#allocation153_spill] sm:$0xff] %v5793_v37  ;;  %7551 = vst [vmem:[#allocation154_spill] sm:$0xff] %v5796_v44  ;;  %v5805_v19 = vadd.f32 %v827_v29, %v5718_v62  ;;  %v442_v29 = vsub.s32 6, %v5688_v14  ;;  %v435_v18 = vrot.slane %v5698_v38, %v434_v30 }
 0x13d   : > { %7552 = vst [vmem:[#allocation155_spill] sm:$0xff] %v5799_v20  ;;  %7553 = vst [vmem:[#allocation156_spill] sm:$0xff] %v5802_v39  ;;  %v438_v39 = vsub.s32 5, %v5688_v14 }
 0x13e   : > { %7554 = vst [vmem:[#allocation157_spill] sm:$0xff] %v5805_v19 }
 0x13f   : > { %v758_v45 = vpop.f32.mrb[12].mxu0 }
 0x140   : > { %v5808_v60 = vadd.f32 %v758_v45, %v5708_v5  ;;  %v760_v8 = vpop.f32.mrb[13].mxu0  ;;  %v831_v37 = vpop.f32.mrb[12].mxu1 }
 0x141   : > { %v5812_v44 = vadd.f32 %v760_v8, %v5711_v52  ;;  %v762_v28 = vpop.f32.mrb[14].mxu0  ;;  %v5815_v20 = vadd.f32 %v831_v37, %v5714_v55  ;;  %v833_v31 = vpop.f32.mrb[13].mxu1  ;;  %v446_v8 = vsub.s32 7, %v5688_v14 }
 0x142   : > { %7555 = vst [vmem:[#allocation158_spill] sm:$0xff] %v5808_v60  ;;  %v5820_v19 = vadd.f32 %v762_v28, %v5708_v5  ;;  %v764_v45 = vpop.f32.mrb[15].mxu0  ;;  %v5823_v60 = vadd.f32 %v833_v31, %v5718_v62  ;;  %v835_v61 = vpop.f32.mrb[14].mxu1  ;;  %v5837_v5 = vrot.slane %v5698_v38, %v438_v39  ;;  %v5840_v28 = vrot.slane %v5698_v38, %v442_v29 }
 0x143   : > { %7556 = vst [vmem:[#allocation159_spill] sm:$0xff] %v5812_v44  ;;  %7557 = vst [vmem:[#allocation160_spill] sm:$0xff] %v5815_v20  ;;  %v5827_v44 = vadd.f32 %v764_v45, %v5711_v52  ;;  %v5830_v37 = vadd.f32 %v835_v61, %v5714_v55  ;;  %v837_v20 = vpop.f32.mrb[15].mxu1  ;;  %v5843_v14 = vrot.slane %v5698_v38, %v446_v8 }
 0x144   : > { %7558 = vst [vmem:[#allocation161_spill] sm:$0xff] %v5820_v19  ;;  %7559 = vst [vmem:[#allocation162_spill] sm:$0xff] %v5823_v60  ;;  %v5834_v17 = vadd.f32 %v837_v20, %v5718_v62 }
 0x145   : > { %7560 = vst [vmem:[#allocation163_spill] sm:$0xff] %v5827_v44  ;;  %7561 = vst [vmem:[#allocation164_spill] sm:$0xff] %v5830_v37 }
 0x146   : > { %7562 = vst [vmem:[#allocation165_spill] sm:$0xff] %v5834_v17 }
 0x147   : > { %v874_v52 = vpop.f32.mrb[16].mxu0 }
 0x148   : > { %v5845_v31 = vadd.f32 %v874_v52, %v435_v18  ;;  %v876_v55 = vpop.f32.mrb[17].mxu0  ;;  %v947_v61 = vpop.f32.mrb[16].mxu1 }
 0x149   : > { %v5848_v45 = vadd.f32 %v876_v55, %v5837_v5  ;;  %v878_v30 = vpop.f32.mrb[18].mxu0  ;;  %v5851_v62 = vadd.f32 %v947_v61, %v5840_v28  ;;  %v949_v39 = vpop.f32.mrb[17].mxu1 }
 0x14a   : > { %v5853_v20 = vadd.f32 %v878_v30, %v435_v18  ;;  %v880_v29 = vpop.f32.mrb[19].mxu0  ;;  %v5856_v17 = vadd.f32 %v949_v39, %v5843_v14  ;;  %v951_v38 = vpop.f32.mrb[18].mxu1 }
 0x14b   : > { %v5859_v8 = vadd.f32 %v880_v29, %v5837_v5  ;;  %v5862_v52 = vadd.f32 %v951_v38, %v5840_v28  ;;  %v953_v55 = vpop.f32.mrb[19].mxu1 }
 0x14c   : > { %7563 = vst [vmem:[#allocation166_spill] sm:$0xff] %v5853_v20  ;;  %v5865_v44 = vadd.f32 %v953_v55, %v5843_v14 }
 0x14d   : > { %7564 = vst [vmem:[#allocation167_spill] sm:$0xff] %v5859_v8  ;;  %7565 = vst [vmem:[#allocation168_spill] sm:$0xff] %v5862_v52 }
 0x14e   : > { %7566 = vst [vmem:[#allocation169_spill] sm:$0xff] %v5865_v44 }
 0x14f   : > { %v884_v61 = vpop.f32.mrb[20].mxu0 }
 0x150   : > { %v5867_v37 = vadd.f32 %v884_v61, %v435_v18  ;;  %v886_v30 = vpop.f32.mrb[21].mxu0  ;;  %v957_v19 = vpop.f32.mrb[20].mxu1 }
 0x151   : > { %v5870_v60 = vadd.f32 %v886_v30, %v5837_v5  ;;  %v888_v39 = vpop.f32.mrb[22].mxu0  ;;  %v5873_v20 = vadd.f32 %v957_v19, %v5840_v28  ;;  %v959_v29 = vpop.f32.mrb[21].mxu1 }
 0x152   : > { %7567 = vst [vmem:[#allocation170_spill] sm:$0xff] %v5867_v37  ;;  %v5875_v8 = vadd.f32 %v888_v39, %v435_v18  ;;  %v890_v38 = vpop.f32.mrb[23].mxu0  ;;  %v5878_v52 = vadd.f32 %v959_v29, %v5843_v14  ;;  %v961_v55 = vpop.f32.mrb[22].mxu1 }
 0x153   : > { %7568 = vst [vmem:[#allocation171_spill] sm:$0xff] %v5870_v60  ;;  %7569 = vst [vmem:[#allocation172_spill] sm:$0xff] %v5873_v20  ;;  %v5881_v61 = vadd.f32 %v890_v38, %v5837_v5  ;;  %v5884_v37 = vadd.f32 %v961_v55, %v5840_v28  ;;  %v963_v30 = vpop.f32.mrb[23].mxu1 }
 0x154   : > { %7570 = vst [vmem:[#allocation173_spill] sm:$0xff] %v5875_v8  ;;  %7571 = vst [vmem:[#allocation174_spill] sm:$0xff] %v5878_v52  ;;  %v5887_v60 = vadd.f32 %v963_v30, %v5843_v14 }
 0x155   : > { %7572 = vst [vmem:[#allocation175_spill] sm:$0xff] %v5881_v61  ;;  %7573 = vst [vmem:[#allocation176_spill] sm:$0xff] %v5884_v37 }
 0x156   : > { %7574 = vst [vmem:[#allocation177_spill] sm:$0xff] %v5887_v60 }
 0x157   : > { %v894_v19 = vpop.f32.mrb[24].mxu0 }
 0x158   : > { %v5889_v20 = vadd.f32 %v894_v19, %v435_v18  ;;  %v896_v39 = vpop.f32.mrb[25].mxu0  ;;  %v967_v8 = vpop.f32.mrb[24].mxu1 }
 0x159   : > { %v5892_v44 = vadd.f32 %v896_v39, %v5837_v5  ;;  %v898_v29 = vpop.f32.mrb[26].mxu0  ;;  %v5895_v52 = vadd.f32 %v967_v8, %v5840_v28  ;;  %v969_v38 = vpop.f32.mrb[25].mxu1 }
 0x15a   : > { %7575 = vst [vmem:[#allocation178_spill] sm:$0xff] %v5889_v20  ;;  %v5897_v61 = vadd.f32 %v898_v29, %v435_v18  ;;  %v900_v55 = vpop.f32.mrb[27].mxu0  ;;  %v5900_v37 = vadd.f32 %v969_v38, %v5843_v14  ;;  %v971_v30 = vpop.f32.mrb[26].mxu1 }
 0x15b   : > { %7576 = vst [vmem:[#allocation179_spill] sm:$0xff] %v5892_v44  ;;  %7577 = vst [vmem:[#allocation180_spill] sm:$0xff] %v5895_v52  ;;  %v5903_v19 = vadd.f32 %v900_v55, %v5837_v5  ;;  %v5906_v20 = vadd.f32 %v971_v30, %v5840_v28  ;;  %v973_v39 = vpop.f32.mrb[27].mxu1 }
 0x15c   : > { %7578 = vst [vmem:[#allocation181_spill] sm:$0xff] %v5897_v61  ;;  %7579 = vst [vmem:[#allocation182_spill] sm:$0xff] %v5900_v37  ;;  %v5909_v44 = vadd.f32 %v973_v39, %v5843_v14 }
 0x15d   : > { %7580 = vst [vmem:[#allocation183_spill] sm:$0xff] %v5903_v19  ;;  %7581 = vst [vmem:[#allocation184_spill] sm:$0xff] %v5906_v20 }
 0x15e   : > { %7582 = vst [vmem:[#allocation185_spill] sm:$0xff] %v5909_v44 }
 0x15f   : > { %v904_v8 = vpop.f32.mrb[28].mxu0 }
 0x160   : > { %v5911_v52 = vadd.f32 %v904_v8, %v435_v18  ;;  %v906_v29 = vpop.f32.mrb[29].mxu0  ;;  %v977_v61 = vpop.f32.mrb[28].mxu1 }
 0x161   : > { %v5914_v60 = vadd.f32 %v906_v29, %v5837_v5  ;;  %v908_v38 = vpop.f32.mrb[30].mxu0  ;;  %v5917_v37 = vadd.f32 %v977_v61, %v5840_v28  ;;  %v979_v55 = vpop.f32.mrb[29].mxu1 }
 0x162   : > { %7583 = vst [vmem:[#allocation186_spill] sm:$0xff] %v5911_v52  ;;  %v5919_v19 = vadd.f32 %v908_v38, %v435_v18  ;;  %v910_v30 = vpop.f32.mrb[31].mxu0  ;;  %v5922_v20 = vadd.f32 %v979_v55, %v5843_v14  ;;  %v981_v39 = vpop.f32.mrb[30].mxu1 }
 0x163   : > { %7584 = vst [vmem:[#allocation187_spill] sm:$0xff] %v5914_v60  ;;  %7585 = vst [vmem:[#allocation188_spill] sm:$0xff] %v5917_v37  ;;  %v5925_v8 = vadd.f32 %v910_v30, %v5837_v5  ;;  %v5928_v52 = vadd.f32 %v981_v39, %v5840_v28  ;;  %v983_v29 = vpop.f32.mrb[31].mxu1 }
 0x164   : > { %7586 = vst [vmem:[#allocation189_spill] sm:$0xff] %v5919_v19  ;;  %7587 = vst [vmem:[#allocation190_spill] sm:$0xff] %v5922_v20  ;;  %v5931_v60 = vadd.f32 %v983_v29, %v5843_v14 }
 0x165   : > { %7588 = vst [vmem:[#allocation191_spill] sm:$0xff] %v5925_v8  ;;  %7589 = vst [vmem:[#allocation192_spill] sm:$0xff] %v5928_v52 }
 0x166   : > { %7590 = vst [vmem:[#allocation193_spill] sm:$0xff] %v5931_v60  ;;  %v7612_v60 = vld [vmem:[#allocation97_spill] sm:$0xff] }
 0x187   : > { %v1863_v61 = vpop.f32.mrb[32].mxu0 }
 0x188   : > { %v1993_v37 = vadd.f32 %v1863_v61, %v5724_v23  ;;  %v1904_v18 = vpop.f32.mrb[32].mxu1  ;;  %v1865_v38 = vpop.f32.mrb[33].mxu0 }
 0x189   : > { %v1995_v19 = vadd.f32 %v1904_v18, %v5730_v46  ;;  %v1994_v55 = vadd.f32 %v1865_v38, %v5727_v13  ;;  %v1906_v20 = vpop.f32.mrb[33].mxu1  ;;  %v1867_v44 = vpop.f32.mrb[34].mxu0 }
 0x18a   : > { %v1996_v5 = vadd.f32 %v1906_v20, %v5737_v15  ;;  %v1868_v30 = vpop.f32.mrb[35].mxu0  ;;  %v1908_v28 = vpop.f32.mrb[34].mxu1  ;;  %v2001_v14 = vmul.f32 0.5, %v1993_v37 }
 0x18b   : > { %v1909_v39 = vpop.f32.mrb[35].mxu1  ;;  %v2009_v8 = vmul.f32 0.5, %v1995_v19  ;;  %v2002_v29 = vmul.f32 0.5, %v1994_v55 }
 0x18c   : > { %v2010_v52 = vmul.f32 0.5, %v1996_v5 }
 0x18d   : > { %4565 = vtanh.f32 %v2009_v8 }
 0x18e   : > { %4567 = vtanh.f32 %v2010_v52 }
 0x18f   : > { %4569 = vtanh.f32 %v2001_v14 }
 0x190   : > { %4571 = vtanh.f32 %v2002_v29 }
 0x197   : > { %v4566_v38 = vpop.eup %4565 }
 0x198   : > { %v4568_v52 = vpop.eup %4567 }
 0x199   : > { %v4570_v5 = vpop.eup %4569  ;;  %v2014_v39 = vmul.f32 0.5, %v4568_v52 }
 0x19a   : > { %v4572_v30 = vpop.eup %4571 }
 0x19b   : > { %v2006_v29 = vmul.f32 0.5, %v4572_v30 }
 0x1c7   : > { %v1945_v23 = vpop.f32.mrb[36].mxu0 }
 0x1c8   : > { %v1997_v46 = vadd.f32 %v1945_v23, %v5845_v31  ;;  %v1986_v61 = vpop.f32.mrb[36].mxu1  ;;  %v1947_v13 = vpop.f32.mrb[37].mxu0  ;;  %v2013_v31 = vmul.f32 0.5, %v4566_v38  ;;  %v2016_v23 = vadd.f32 0.5, %v2014_v39 }
 0x1c9   : > { %v1999_v44 = vadd.f32 %v1986_v61, %v5851_v62  ;;  %v1998_v15 = vadd.f32 %v1947_v13, %v5848_v45  ;;  %v1988_v20 = vpop.f32.mrb[37].mxu1  ;;  %v1949_v18 = vpop.f32.mrb[38].mxu0  ;;  %v2005_v62 = vmul.f32 0.5, %v4570_v5 }
 0x1ca   : > { %4573 = vtanh.f32 %v1997_v46  ;;  %v2000_v37 = vadd.f32 %v1988_v20, %v5856_v17  ;;  %v1950_v19 = vpop.f32.mrb[39].mxu0  ;;  %v1990_v8 = vpop.f32.mrb[38].mxu1  ;;  %v2015_v45 = vadd.f32 0.5, %v2013_v31  ;;  %v2008_v17 = vadd.f32 0.5, %v2006_v29 }
 0x1cb   : > { %4575 = vtanh.f32 %v1998_v15  ;;  %v1991_v55 = vpop.f32.mrb[39].mxu1  ;;  %v2019_v28 = vmul.f32 0.5, %v1999_v44  ;;  %v2007_v46 = vadd.f32 0.5, %v2005_v62  ;;  %v2028_v15 = vmul.f32 0.0, %v2016_v23  ;;  %v7592_v23 = vld [vmem:[#allocation77_spill] sm:$0xff] }
 0x1cc   : > { %v2020_v14 = vmul.f32 0.5, %v2000_v37  ;;  %v2027_v20 = vmul.f32 0.0, %v2015_v45  ;;  %v7591_v45 = vld [vmem:[#allocation76_spill] sm:$0xff] }
 0x1cd   : > { %4577 = vtanh.f32 %v2019_v28 }
 0x1ce   : > { %4579 = vtanh.f32 %v2020_v14 }
 0x1d4   : > { %v4574_v61 = vpop.eup %4573 }
 0x1d5   : > { %v4576_v13 = vpop.eup %4575  ;;  %v2029_v18 = vmul.f32 %v4574_v61, %v2007_v46  ;;  %v7593_v46 = vld [vmem:[#allocation78_spill] sm:$0xff]  ;;  %v7594_v61 = vld [vmem:[#allocation79_spill] sm:$0xff] }
 0x1d6   : > { %v2030_v19 = vmul.f32 %v4576_v13, %v2008_v17  ;;  %v7595_v17 = vld [vmem:[#allocation80_spill] sm:$0xff]  ;;  %v7596_v13 = vld [vmem:[#allocation81_spill] sm:$0xff] }
 0x1d7   : > { %v5941_v8 = vadd.f32 %v2029_v18, %v2027_v20  ;;  %v4578_v44 = vpop.eup %4577  ;;  %v7597_v20 = vld [vmem:[#allocation82_spill] sm:$0xff]  ;;  %v7598_v18 = vld [vmem:[#allocation83_spill] sm:$0xff] }
 0x1d8   : > { %v5943_v38 = vadd.f32 %v2030_v19, %v2028_v15  ;;  %v4580_v37 = vpop.eup %4579  ;;  %v2023_v52 = vmul.f32 0.5, %v4578_v44  ;;  %v7599_v15 = vld [vmem:[#allocation84_spill] sm:$0xff]  ;;  %v7600_v19 = vld [vmem:[#allocation85_spill] sm:$0xff]  ;;  %v7601_v44 = vld [vmem:[#allocation86_spill] sm:$0xff] }
 0x1d9   : > { %4581 = vtanh.f32 %v5941_v8  ;;  %v2024_v55 = vmul.f32 0.5, %v4580_v37  ;;  %v7602_v37 = vld [vmem:[#allocation87_spill] sm:$0xff] }
 0x1da   : > { %4583 = vtanh.f32 %v5943_v38  ;;  %v2025_v5 = vadd.f32 0.5, %v2023_v52  ;;  %v7603_v52 = vld [vmem:[#allocation88_spill] sm:$0xff] }
 0x1db   : > { %v2026_v31 = vadd.f32 0.5, %v2024_v55  ;;  %v7604_v55 = vld [vmem:[#allocation89_spill] sm:$0xff] }
 0x1e3   : > { %v4582_v30 = vpop.eup %4581 }
 0x1e4   : > { %v4584_v28 = vpop.eup %4583  ;;  %v2035_v39 = vmul.f32 %v4582_v30, %v2025_v5  ;;  %v7605_v5 = vld [vmem:[#allocation90_spill] sm:$0xff]  ;;  %v7606_v30 = vld [vmem:[#allocation91_spill] sm:$0xff] }
 0x1e5   : > { %v2036_v14 = vmul.f32 %v4584_v28, %v2026_v31  ;;  %v7607_v31 = vld [vmem:[#allocation92_spill] sm:$0xff]  ;;  %v7608_v28 = vld [vmem:[#allocation93_spill] sm:$0xff] }
 0x1e6   : > { %v5947_v29 = vpack.c.bf16 %v2035_v39, %v2035_v39  ;;  %v7609_v39 = vld [vmem:[#allocation94_spill] sm:$0xff] }
 0x1e7   : > { %v2049_v62 = vpack.c.bf16 %v2036_v14, %v2036_v14  ;;  %v7610_v14 = vld [vmem:[#allocation95_spill] sm:$0xff] }
 0x1e9   : > { %2082 = vmatprep.mubr.bf16.mxu0 %v2049_v62  ;;  %2123 = vmatprep.mubr.bf16.mxu1 %v2049_v62 }
 0x1ea   : > { %2083 = vmatmul.mubr.bf16.vlgmr.msra.gmra.mrb[40].mxu0 %v5947_v29  ;;  %2124 = vmatmul.mubr.bf16.vlgmr.msra.gmra.mrb[40].mxu1 %v5947_v29 }
 0x1eb   : > { %2133 = vmatpush1.bf16.msra.mxu0 %v7591_v45  ;;  %2174 = vmatpush1.bf16.msra.mxu1 %v7592_v23 }
 0x1ec   : > { %2164 = vmatprep.mubr.bf16.mxu0 %v2049_v62  ;;  %2205 = vmatprep.mubr.bf16.mxu1 %v2049_v62  ;;  %v7611_v62 = vld [vmem:[#allocation96_spill] sm:$0xff] }
 0x1ed   : > { %2134 = vmatprep.subr.bf16.mxu0 %v7593_v46  ;;  %2175 = vmatprep.subr.bf16.mxu1 %v7594_v61 }
 0x1ef   : > { %2135 = vmatpush1.bf16.msra.mxu0 %v7595_v17  ;;  %2176 = vmatpush1.bf16.msra.mxu1 %v7596_v13 }
 0x1f0   : > { %2136 = vmatprep.subr.bf16.mxu0 %v7597_v20  ;;  %2177 = vmatprep.subr.bf16.mxu1 %v7598_v18 }
 0x1f3   : > { %2137 = vmatpush1.bf16.msra.mxu0 %v7599_v15  ;;  %2178 = vmatpush1.bf16.msra.mxu1 %v7600_v19 }
 0x1f4   : > { %2138 = vmatprep.subr.bf16.mxu0 %v7601_v44  ;;  %2179 = vmatprep.subr.bf16.mxu1 %v7602_v37  ;;  %v7613_v37 = vld [vmem:[#allocation98_spill] sm:$0xff] }
 0x1f7   : > { %2139 = vmatpush1.bf16.msra.mxu0 %v7603_v52  ;;  %2180 = vmatpush1.bf16.msra.mxu1 %v7604_v55  ;;  %v7614_v52 = vld [vmem:[#allocation99_spill] sm:$0xff]  ;;  %v7615_v55 = vld [vmem:[#allocation100_spill] sm:$0xff] }
 0x1f8   : > { %2140 = vmatprep.subr.bf16.mxu0 %v7605_v5  ;;  %2181 = vmatprep.subr.bf16.mxu1 %v7606_v30  ;;  %v7616_v5 = vld [vmem:[#allocation101_spill] sm:$0xff]  ;;  %v7617_v30 = vld [vmem:[#allocation102_spill] sm:$0xff] }
 0x1fb   : > { %2141 = vmatpush1.bf16.msra.mxu0 %v7607_v31  ;;  %2182 = vmatpush1.bf16.msra.mxu1 %v7608_v28  ;;  %v7618_v31 = vld [vmem:[#allocation103_spill] sm:$0xff]  ;;  %v7619_v28 = vld [vmem:[#allocation104_spill] sm:$0xff] }
 0x1fc   : > { %2142 = vmatprep.subr.bf16.mxu0 %v7609_v39  ;;  %2183 = vmatprep.subr.bf16.mxu1 %v7610_v14  ;;  %v7620_v39 = vld [vmem:[#allocation105_spill] sm:$0xff]  ;;  %v7621_v14 = vld [vmem:[#allocation106_spill] sm:$0xff] }
 0x1ff   : > { %2143 = vmatpush1.bf16.msra.mxu0 %v7611_v62  ;;  %2184 = vmatpush1.bf16.msra.mxu1 %v7612_v60  ;;  %v7622_v62 = vld [vmem:[#allocation107_spill] sm:$0xff]  ;;  %v7623_v60 = vld [vmem:[#allocation108_spill] sm:$0xff] }
 0x200   : > { %2144 = vmatprep.subr.bf16.mxu0 %v7613_v37  ;;  %2185 = vmatprep.subr.bf16.mxu1 %v7614_v52  ;;  %v7624_v37 = vld [vmem:[#allocation109_spill] sm:$0xff]  ;;  %v7625_v52 = vld [vmem:[#allocation110_spill] sm:$0xff] }
 0x203   : > { %2145 = vmatpush1.bf16.msra.mxu0 %v7615_v55  ;;  %2186 = vmatpush1.bf16.msra.mxu1 %v7616_v5  ;;  %v7626_v55 = vld [vmem:[#allocation111_spill] sm:$0xff]  ;;  %v7627_v5 = vld [vmem:[#allocation112_spill] sm:$0xff] }
 0x204   : > { %2146 = vmatprep.subr.bf16.mxu0 %v7617_v30  ;;  %2187 = vmatprep.subr.bf16.mxu1 %v7618_v31  ;;  %v7628_v30 = vld [vmem:[#allocation113_spill] sm:$0xff]  ;;  %v7629_v31 = vld [vmem:[#allocation114_spill] sm:$0xff] }
 0x207   : > { %2147 = vmatpush1.bf16.msra.mxu0 %v7619_v28  ;;  %2188 = vmatpush1.bf16.msra.mxu1 %v7620_v39  ;;  %v7630_v28 = vld [vmem:[#allocation115_spill] sm:$0xff]  ;;  %v7631_v39 = vld [vmem:[#allocation116_spill] sm:$0xff] }
 0x208   : > { %2148 = vmatprep.subr.bf16.mxu0 %v7621_v14  ;;  %2189 = vmatprep.subr.bf16.mxu1 %v7622_v62  ;;  %v7632_v14 = vld [vmem:[#allocation117_spill] sm:$0xff]  ;;  %v7633_v62 = vld [vmem:[#allocation118_spill] sm:$0xff] }
 0x20b   : > { %2149 = vmatpush1.bf16.msra.mxu0 %v7623_v60  ;;  %2190 = vmatpush1.bf16.msra.mxu1 %v7624_v37  ;;  %v7634_v60 = vld [vmem:[#allocation119_spill] sm:$0xff]  ;;  %v7635_v37 = vld [vmem:[#allocation120_spill] sm:$0xff] }
 0x20c   : > { %2150 = vmatprep.subr.bf16.mxu0 %v7625_v52  ;;  %2191 = vmatprep.subr.bf16.mxu1 %v7626_v55  ;;  %v7636_v52 = vld [vmem:[#allocation121_spill] sm:$0xff]  ;;  %v7637_v55 = vld [vmem:[#allocation122_spill] sm:$0xff] }
 0x20f   : > { %2151 = vmatpush1.bf16.msra.mxu0 %v7627_v5  ;;  %2192 = vmatpush1.bf16.msra.mxu1 %v7628_v30  ;;  %v7638_v5 = vld [vmem:[#allocation123_spill] sm:$0xff] }
 0x210   : > { %2152 = vmatprep.subr.bf16.mxu0 %v7629_v31  ;;  %2193 = vmatprep.subr.bf16.mxu1 %v7630_v28 }
 0x213   : > { %2153 = vmatpush1.bf16.msra.mxu0 %v7631_v39  ;;  %2194 = vmatpush1.bf16.msra.mxu1 %v7632_v14  ;;  %v7639_v39 = vld [vmem:[#allocation127_spill] sm:$0xff] }
 0x214   : > { %2154 = vmatprep.subr.bf16.mxu0 %v7633_v62  ;;  %2195 = vmatprep.subr.bf16.mxu1 %v7634_v60 }
 0x217   : > { %2155 = vmatpush1.bf16.msra.mxu0 %v7635_v37  ;;  %2196 = vmatpush1.bf16.msra.mxu1 %v7636_v52 }
 0x218   : > { %2156 = vmatprep.subr.bf16.mxu0 %v7637_v55  ;;  %2197 = vmatprep.subr.bf16.mxu1 %v7638_v5 }
 0x21b   : > { %2157 = vmatpush1.bf16.msra.mxu0 %v5590_v54  ;;  %2198 = vmatpush1.bf16.msra.mxu1 %v5594_v63 }
 0x21c   : > { %2158 = vmatprep.subr.bf16.mxu0 %v5596_v53  ;;  %2199 = vmatprep.subr.bf16.mxu1 %v7639_v39 }
 0x21f   : > { %2159 = vmatpush1.bf16.msra.mxu0 %v5606_v36  ;;  %2200 = vmatpush1.bf16.msra.mxu1 %v5610_v25 }
 0x220   : > { %2160 = vmatprep.subr.bf16.mxu0 %v5612_v16  ;;  %2201 = vmatprep.subr.bf16.mxu1 %v5615_v21 }
 0x223   : > { %2161 = vmatpush1.bf16.msra.mxu0 %v5622_v27  ;;  %2202 = vmatpush1.bf16.msra.mxu1 %v5626_v7 }
 0x224   : > { %2162 = vmatprep.subr.bf16.mxu0 %v5628_v22  ;;  %2203 = vmatprep.subr.bf16.mxu1 %v5631_v0 }
 0x227   : > { %2163 = vmatpush1.bf16.msra.mxu0 %v5634_v47  ;;  %2204 = vmatpush1.bf16.msra.mxu1 %v5638_v6 }
 0x228   : > { %2271 = vmatprep.subr.bf16.mxu0 %v5090_v24  ;;  %2312 = vmatprep.subr.bf16.mxu1 %v5096_v26 }
 0x22a   : > { %2165 = vmatmul.mubr.bf16.vlgmr.msra.gmra.mrb[44].mxu0 %v5947_v29  ;;  %2206 = vmatmul.mubr.bf16.vlgmr.msra.gmra.mrb[44].mxu1 %v5947_v29  ;;  %v7640_v29 = vld [vmem:[#allocation36_spill] sm:$0xff] }
 0x22b   : > { %2272 = vmatpush1.bf16.msra.mxu0 %v5117_v32  ;;  %2313 = vmatpush1.bf16.msra.mxu1 %v5119_v33 }
 0x22c   : > { %2273 = vmatprep.subr.bf16.mxu0 %v5121_v34  ;;  %2314 = vmatprep.subr.bf16.mxu1 %v5123_v35 }
 0x22f   : > { %2274 = vmatpush1.bf16.msra.mxu0 %v5134_v40  ;;  %2315 = vmatpush1.bf16.msra.mxu1 %v5138_v41  ;;  %v7685_v40 = vld [vmem:[#allocation168_spill] sm:$0xff] }
 0x230   : > { %2275 = vmatprep.subr.bf16.mxu0 %v5140_v42  ;;  %2316 = vmatprep.subr.bf16.mxu1 %v5143_v43 }
 0x233   : > { %2276 = vmatpush1.bf16.msra.mxu0 %v5152_v48  ;;  %2317 = vmatpush1.bf16.msra.mxu1 %v5156_v49  ;;  %v7683_v49 = vld [vmem:[#allocation141_spill] sm:$0xff] }
 0x234   : > { %2277 = vmatprep.subr.bf16.mxu0 %v5158_v50  ;;  %2318 = vmatprep.subr.bf16.mxu1 %v5161_v51  ;;  %v7682_v50 = vld [vmem:[#allocation139_spill] sm:$0xff] }
 0x237   : > { %2278 = vmatpush1.bf16.msra.mxu0 %v5170_v56  ;;  %2319 = vmatpush1.bf16.msra.mxu1 %v5176_v57  ;;  %v7680_v57 = vld [vmem:[#allocation138_spill] sm:$0xff]  ;;  %v7681_v56 = vld [vmem:[#allocation140_spill] sm:$0xff] }
 0x238   : > { %2279 = vmatprep.subr.bf16.mxu0 %v5178_v58  ;;  %2320 = vmatprep.subr.bf16.mxu1 %v5181_v59  ;;  %v7641_v58 = vld [vmem:[#allocation37_spill] sm:$0xff]  ;;  %v7642_v59 = vld [vmem:[#allocation38_spill] sm:$0xff] }
 0x23b   : > { %2280 = vmatpush1.bf16.msra.mxu0 %v5190_v1  ;;  %2321 = vmatpush1.bf16.msra.mxu1 %v5194_v2  ;;  %v7643_v1 = vld [vmem:[#allocation39_spill] sm:$0xff]  ;;  %v7644_v2 = vld [vmem:[#allocation40_spill] sm:$0xff] }
 0x23c   : > { %2281 = vmatprep.subr.bf16.mxu0 %v5196_v3  ;;  %2322 = vmatprep.subr.bf16.mxu1 %v5199_v4  ;;  %v7645_v3 = vld [vmem:[#allocation41_spill] sm:$0xff]  ;;  %v7646_v4 = vld [vmem:[#allocation42_spill] sm:$0xff] }
 0x23f   : > { %2282 = vmatpush1.bf16.msra.mxu0 %v5208_v9  ;;  %2323 = vmatpush1.bf16.msra.mxu1 %v5214_v10  ;;  %v7647_v9 = vld [vmem:[#allocation43_spill] sm:$0xff]  ;;  %v7648_v10 = vld [vmem:[#allocation44_spill] sm:$0xff] }
 0x240   : > { %2283 = vmatprep.subr.bf16.mxu0 %v5216_v11  ;;  %2324 = vmatprep.subr.bf16.mxu1 %v5219_v12  ;;  %v7649_v11 = vld [vmem:[#allocation45_spill] sm:$0xff]  ;;  %v7650_v12 = vld [vmem:[#allocation46_spill] sm:$0xff] }
 0x243   : > { %2284 = vmatpush1.bf16.msra.mxu0 %v7640_v29  ;;  %2325 = vmatpush1.bf16.msra.mxu1 %v7641_v58  ;;  %v7651_v29 = vld [vmem:[#allocation47_spill] sm:$0xff]  ;;  %v7652_v58 = vld [vmem:[#allocation48_spill] sm:$0xff] }
 0x244   : > { %2285 = vmatprep.subr.bf16.mxu0 %v7642_v59  ;;  %2326 = vmatprep.subr.bf16.mxu1 %v7643_v1  ;;  %v7653_v59 = vld [vmem:[#allocation49_spill] sm:$0xff]  ;;  %v7654_v1 = vld [vmem:[#allocation50_spill] sm:$0xff] }
 0x247   : > { %2286 = vmatpush1.bf16.msra.mxu0 %v7644_v2  ;;  %2327 = vmatpush1.bf16.msra.mxu1 %v7645_v3  ;;  %v7655_v2 = vld [vmem:[#allocation51_spill] sm:$0xff]  ;;  %v7656_v3 = vld [vmem:[#allocation52_spill] sm:$0xff] }
 0x248   : > { %2287 = vmatprep.subr.bf16.mxu0 %v7646_v4  ;;  %2328 = vmatprep.subr.bf16.mxu1 %v7647_v9  ;;  %v7657_v4 = vld [vmem:[#allocation53_spill] sm:$0xff]  ;;  %v7658_v9 = vld [vmem:[#allocation54_spill] sm:$0xff] }
 0x24b   : > { %2288 = vmatpush1.bf16.msra.mxu0 %v7648_v10  ;;  %2329 = vmatpush1.bf16.msra.mxu1 %v7649_v11  ;;  %v7659_v10 = vld [vmem:[#allocation55_spill] sm:$0xff]  ;;  %v7660_v11 = vld [vmem:[#allocation56_spill] sm:$0xff] }
 0x24c   : > { %2289 = vmatprep.subr.bf16.mxu0 %v7650_v12  ;;  %2330 = vmatprep.subr.bf16.mxu1 %v7651_v29  ;;  %v7661_v12 = vld [vmem:[#allocation57_spill] sm:$0xff]  ;;  %v7662_v29 = vld [vmem:[#allocation58_spill] sm:$0xff] }
 0x24f   : > { %2290 = vmatpush1.bf16.msra.mxu0 %v7652_v58  ;;  %2331 = vmatpush1.bf16.msra.mxu1 %v7653_v59  ;;  %v7663_v58 = vld [vmem:[#allocation59_spill] sm:$0xff]  ;;  %v7664_v59 = vld [vmem:[#allocation60_spill] sm:$0xff] }
 0x250   : > { %2291 = vmatprep.subr.bf16.mxu0 %v7654_v1  ;;  %2332 = vmatprep.subr.bf16.mxu1 %v7655_v2  ;;  %v7665_v1 = vld [vmem:[#allocation61_spill] sm:$0xff]  ;;  %v7666_v2 = vld [vmem:[#allocation62_spill] sm:$0xff] }
 0x253   : > { %2292 = vmatpush1.bf16.msra.mxu0 %v7656_v3  ;;  %2333 = vmatpush1.bf16.msra.mxu1 %v7657_v4  ;;  %v7667_v3 = vld [vmem:[#allocation63_spill] sm:$0xff]  ;;  %v7668_v4 = vld [vmem:[#allocation64_spill] sm:$0xff] }
 0x254   : > { %2293 = vmatprep.subr.bf16.mxu0 %v7658_v9  ;;  %2334 = vmatprep.subr.bf16.mxu1 %v7659_v10  ;;  %v7669_v9 = vld [vmem:[#allocation65_spill] sm:$0xff]  ;;  %v7670_v10 = vld [vmem:[#allocation66_spill] sm:$0xff] }
 0x257   : > { %2294 = vmatpush1.bf16.msra.mxu0 %v7660_v11  ;;  %2335 = vmatpush1.bf16.msra.mxu1 %v7661_v12  ;;  %v7671_v11 = vld [vmem:[#allocation67_spill] sm:$0xff]  ;;  %v7672_v12 = vld [vmem:[#allocation68_spill] sm:$0xff] }
 0x258   : > { %2295 = vmatprep.subr.bf16.mxu0 %v7662_v29  ;;  %2336 = vmatprep.subr.bf16.mxu1 %v7663_v58  ;;  %v7673_v29 = vld [vmem:[#allocation69_spill] sm:$0xff]  ;;  %v7674_v58 = vld [vmem:[#allocation70_spill] sm:$0xff] }
 0x25b   : > { %2296 = vmatpush1.bf16.msra.mxu0 %v7664_v59  ;;  %2337 = vmatpush1.bf16.msra.mxu1 %v7665_v1  ;;  %v7675_v59 = vld [vmem:[#allocation71_spill] sm:$0xff]  ;;  %v7676_v1 = vld [vmem:[#allocation72_spill] sm:$0xff] }
 0x25c   : > { %2297 = vmatprep.subr.bf16.mxu0 %v7666_v2  ;;  %2338 = vmatprep.subr.bf16.mxu1 %v7667_v3  ;;  %v7677_v2 = vld [vmem:[#allocation73_spill] sm:$0xff]  ;;  %v7678_v3 = vld [vmem:[#allocation74_spill] sm:$0xff] }
 0x25f   : > { %2298 = vmatpush1.bf16.msra.mxu0 %v7668_v4  ;;  %2339 = vmatpush1.bf16.msra.mxu1 %v7669_v9  ;;  %v7679_v4 = vld [vmem:[#allocation75_spill] sm:$0xff] }
 0x260   : > { %2299 = vmatprep.subr.bf16.mxu0 %v7670_v10  ;;  %2340 = vmatprep.subr.bf16.mxu1 %v7671_v11 }
 0x263   : > { %2300 = vmatpush1.bf16.msra.mxu0 %v7672_v12  ;;  %2341 = vmatpush1.bf16.msra.mxu1 %v7673_v29 }
 0x264   : > { %2301 = vmatprep.subr.bf16.mxu0 %v7674_v58  ;;  %2342 = vmatprep.subr.bf16.mxu1 %v7675_v59 }
 0x267   : > { %2302 = vmatpush1.bf16.msra.mxu0 %v7676_v1  ;;  %2343 = vmatpush1.bf16.msra.mxu1 %v7677_v2 }
 0x268   : > { %2353 = vmatprep.subr.bf16.mxu0 %v7678_v3  ;;  %2394 = vmatprep.subr.bf16.mxu1 %v7679_v4 }
 0x2bd   : > { %v2084_v9 = vpop.f32.mrb[40].mxu0  ;;  %v2125_v10 = vpop.f32.mrb[40].mxu1 }
 0x2be   : > { %v2214_v11 = vadd.f32 %v2084_v9, %v7680_v57  ;;  %v2216_v12 = vadd.f32 %v2125_v10, %v7681_v56  ;;  %v2086_v51 = vpop.f32.mrb[41].mxu0  ;;  %v2127_v29 = vpop.f32.mrb[41].mxu1  ;;  %v7684_v9 = vld [vmem:[#allocation166_spill] sm:$0xff] }
 0x2bf   : > { %v2215_v58 = vadd.f32 %v2086_v51, %v7682_v50  ;;  %v2217_v59 = vadd.f32 %v2127_v29, %v7683_v49  ;;  %v2088_v48 = vpop.f32.mrb[42].mxu0  ;;  %v2129_v1 = vpop.f32.mrb[42].mxu1 }
 0x2c0   : > { %v2089_v43 = vpop.f32.mrb[43].mxu0  ;;  %v2130_v2 = vpop.f32.mrb[43].mxu1  ;;  %v2230_v42 = vmul.f32 0.5, %v2216_v12  ;;  %v2222_v41 = vmul.f32 0.5, %v2214_v11  ;;  %v7686_v48 = vld [vmem:[#allocation167_spill] sm:$0xff] }
 0x2c1   : > { %v2231_v3 = vmul.f32 0.5, %v2217_v59  ;;  %v2223_v4 = vmul.f32 0.5, %v2215_v58  ;;  %v7687_v43 = vld [vmem:[#allocation169_spill] sm:$0xff] }
 0x2c2   : > { %4585 = vtanh.f32 %v2230_v42 }
 0x2c3   : > { %4587 = vtanh.f32 %v2231_v3 }
 0x2c4   : > { %4589 = vtanh.f32 %v2222_v41 }
 0x2c5   : > { %4591 = vtanh.f32 %v2223_v4 }
 0x2cc   : > { %v4586_v11 = vpop.eup %4585 }
 0x2cd   : > { %v4588_v41 = vpop.eup %4587  ;;  %v2234_v29 = vmul.f32 0.5, %v4586_v11 }
 0x2ce   : > { %v4590_v3 = vpop.eup %4589 }
 0x2cf   : > { %v4592_v4 = vpop.eup %4591  ;;  %v2236_v34 = vadd.f32 0.5, %v2234_v29 }
 0x2d0   : > { %v2227_v35 = vmul.f32 0.5, %v4592_v4 }
 0x2fd   : > { %v2166_v57 = vpop.f32.mrb[44].mxu0  ;;  %v2207_v56 = vpop.f32.mrb[44].mxu1 }
 0x2fe   : > { %v2218_v10 = vadd.f32 %v2166_v57, %v7684_v9  ;;  %v2220_v50 = vadd.f32 %v2207_v56, %v7685_v40  ;;  %v2168_v51 = vpop.f32.mrb[45].mxu0  ;;  %v2209_v49 = vpop.f32.mrb[45].mxu1  ;;  %v2235_v9 = vmul.f32 0.5, %v4588_v41  ;;  %v2226_v56 = vmul.f32 0.5, %v4590_v3 }
 0x2ff   : > { %v2219_v1 = vadd.f32 %v2168_v51, %v7686_v48  ;;  %v2221_v2 = vadd.f32 %v2209_v49, %v7687_v43  ;;  %v2170_v12 = vpop.f32.mrb[46].mxu0  ;;  %v2211_v59 = vpop.f32.mrb[46].mxu1  ;;  %v2229_v43 = vadd.f32 0.5, %v2227_v35 }
 0x300   : > { %4593 = vtanh.f32 %v2218_v10  ;;  %v2171_v42 = vpop.f32.mrb[47].mxu0  ;;  %v2212_v58 = vpop.f32.mrb[47].mxu1  ;;  %v2240_v57 = vmul.f32 0.5, %v2220_v50  ;;  %v2237_v51 = vadd.f32 0.5, %v2235_v9  ;;  %v2228_v49 = vadd.f32 0.5, %v2226_v56  ;;  %v7689_v56 = vld [vmem:[#allocation88_spill] sm:$0xff] }
 0x301   : > { %4595 = vtanh.f32 %v2219_v1  ;;  %v2241_v40 = vmul.f32 0.5, %v2221_v2  ;;  %v2248_v12 = vmul.f32 %v2236_v34, %v5941_v8 }
 0x302   : > { %4597 = vtanh.f32 %v2240_v57  ;;  %v2249_v1 = vmul.f32 %v2237_v51, %v5943_v38  ;;  %v7690_v51 = vld [vmem:[#allocation89_spill] sm:$0xff] }
 0x303   : > { %4599 = vtanh.f32 %v2241_v40  ;;  %v7688_v40 = vld [vmem:[#allocation87_spill] sm:$0xff] }
 0x30a   : > { %v4594_v48 = vpop.eup %4593 }
 0x30b   : > { %v4596_v10 = vpop.eup %4595  ;;  %v2250_v59 = vmul.f32 %v4594_v48, %v2228_v49  ;;  %v7691_v49 = vld [vmem:[#allocation90_spill] sm:$0xff]  ;;  %v7692_v48 = vld [vmem:[#allocation91_spill] sm:$0xff] }
 0x30c   : > { %v2251_v42 = vmul.f32 %v4596_v10, %v2229_v43  ;;  %v4598_v2 = vpop.eup %4597  ;;  %v7693_v43 = vld [vmem:[#allocation92_spill] sm:$0xff]  ;;  %v7694_v10 = vld [vmem:[#allocation93_spill] sm:$0xff] }
 0x30d   : > { %v6091_v11 = vadd.f32 %v2250_v59, %v2248_v12  ;;  %v4600_v58 = vpop.eup %4599  ;;  %v2244_v41 = vmul.f32 0.5, %v4598_v2  ;;  %v7695_v12 = vld [vmem:[#allocation94_spill] sm:$0xff]  ;;  %v7696_v59 = vld [vmem:[#allocation95_spill] sm:$0xff] }
 0x30e   : > { %v6093_v50 = vadd.f32 %v2251_v42, %v2249_v1  ;;  %v2245_v3 = vmul.f32 0.5, %v4600_v58  ;;  %v7697_v1 = vld [vmem:[#allocation96_spill] sm:$0xff]  ;;  %v7698_v42 = vld [vmem:[#allocation97_spill] sm:$0xff]  ;;  %v7699_v2 = vld [vmem:[#allocation98_spill] sm:$0xff] }
 0x30f   : > { %4601 = vtanh.f32 %v6091_v11  ;;  %v2246_v35 = vadd.f32 0.5, %v2244_v41  ;;  %v7700_v58 = vld [vmem:[#allocation99_spill] sm:$0xff]  ;;  %v7701_v41 = vld [vmem:[#allocation100_spill] sm:$0xff] }
 0x310   : > { %4603 = vtanh.f32 %v6093_v50  ;;  %v2247_v29 = vadd.f32 0.5, %v2245_v3  ;;  %v7702_v3 = vld [vmem:[#allocation101_spill] sm:$0xff] }
 0x319   : > { %v4602_v4 = vpop.eup %4601 }
 0x31a   : > { %v4604_v34 = vpop.eup %4603  ;;  %v2256_v8 = vmul.f32 %v4602_v4, %v2246_v35  ;;  %v7703_v35 = vld [vmem:[#allocation102_spill] sm:$0xff]  ;;  %v7704_v4 = vld [vmem:[#allocation103_spill] sm:$0xff] }
 0x31b   : > { %v2257_v57 = vmul.f32 %v4604_v34, %v2247_v29  ;;  %v7705_v29 = vld [vmem:[#allocation104_spill] sm:$0xff]  ;;  %v7706_v34 = vld [vmem:[#allocation105_spill] sm:$0xff] }
 0x31c   : > { %v6097_v9 = vpack.c.bf16 %v2256_v8, %v2256_v8  ;;  %v7707_v8 = vld [vmem:[#allocation106_spill] sm:$0xff] }
 0x31d   : > { %v2270_v38 = vpack.c.bf16 %v2257_v57, %v2257_v57  ;;  %v7708_v57 = vld [vmem:[#allocation107_spill] sm:$0xff] }
 0x31f   : > { %2303 = vmatprep.mubr.bf16.mxu0 %v2270_v38  ;;  %2344 = vmatprep.mubr.bf16.mxu1 %v2270_v38 }
 0x320   : > { %2304 = vmatmul.mubr.bf16.vlgmr.msra.gmra.mrb[48].mxu0 %v6097_v9  ;;  %2345 = vmatmul.mubr.bf16.vlgmr.msra.gmra.mrb[48].mxu1 %v6097_v9 }
 0x321   : > { %2354 = vmatpush1.bf16.msra.mxu0 %v7591_v45  ;;  %2395 = vmatpush1.bf16.msra.mxu1 %v7592_v23 }
 0x322   : > { %2385 = vmatprep.mubr.bf16.mxu0 %v2270_v38  ;;  %2426 = vmatprep.mubr.bf16.mxu1 %v2270_v38  ;;  %v7709_v38 = vld [vmem:[#allocation108_spill] sm:$0xff] }
 0x323   : > { %2355 = vmatprep.subr.bf16.mxu0 %v7593_v46  ;;  %2396 = vmatprep.subr.bf16.mxu1 %v7594_v61 }
 0x325   : > { %2356 = vmatpush1.bf16.msra.mxu0 %v7595_v17  ;;  %2397 = vmatpush1.bf16.msra.mxu1 %v7596_v13 }
 0x326   : > { %2357 = vmatprep.subr.bf16.mxu0 %v7597_v20  ;;  %2398 = vmatprep.subr.bf16.mxu1 %v7598_v18 }
 0x329   : > { %2358 = vmatpush1.bf16.msra.mxu0 %v7599_v15  ;;  %2399 = vmatpush1.bf16.msra.mxu1 %v7600_v19 }
 0x32a   : > { %2359 = vmatprep.subr.bf16.mxu0 %v7601_v44  ;;  %2400 = vmatprep.subr.bf16.mxu1 %v7688_v40 }
 0x32d   : > { %2360 = vmatpush1.bf16.msra.mxu0 %v7689_v56  ;;  %2401 = vmatpush1.bf16.msra.mxu1 %v7690_v51 }
 0x32e   : > { %2361 = vmatprep.subr.bf16.mxu0 %v7691_v49  ;;  %2402 = vmatprep.subr.bf16.mxu1 %v7692_v48 }
 0x331   : > { %2362 = vmatpush1.bf16.msra.mxu0 %v7693_v43  ;;  %2403 = vmatpush1.bf16.msra.mxu1 %v7694_v10 }
 0x332   : > { %2363 = vmatprep.subr.bf16.mxu0 %v7695_v12  ;;  %2404 = vmatprep.subr.bf16.mxu1 %v7696_v59 }
 0x335   : > { %2364 = vmatpush1.bf16.msra.mxu0 %v7697_v1  ;;  %2405 = vmatpush1.bf16.msra.mxu1 %v7698_v42 }
 0x336   : > { %2365 = vmatprep.subr.bf16.mxu0 %v7699_v2  ;;  %2406 = vmatprep.subr.bf16.mxu1 %v7700_v58  ;;  %v7710_v2 = vld [vmem:[#allocation109_spill] sm:$0xff]  ;;  %v7711_v58 = vld [vmem:[#allocation110_spill] sm:$0xff] }
 0x339   : > { %2366 = vmatpush1.bf16.msra.mxu0 %v7701_v41  ;;  %2407 = vmatpush1.bf16.msra.mxu1 %v7702_v3  ;;  %v7712_v41 = vld [vmem:[#allocation111_spill] sm:$0xff]  ;;  %v7713_v3 = vld [vmem:[#allocation112_spill] sm:$0xff] }
 0x33a   : > { %2367 = vmatprep.subr.bf16.mxu0 %v7703_v35  ;;  %2408 = vmatprep.subr.bf16.mxu1 %v7704_v4 }
 0x33d   : > { %2368 = vmatpush1.bf16.msra.mxu0 %v7705_v29  ;;  %2409 = vmatpush1.bf16.msra.mxu1 %v7706_v34  ;;  %v7714_v34 = vld [vmem:[#allocation116_spill] sm:$0xff] }
 0x33e   : > { %2369 = vmatprep.subr.bf16.mxu0 %v7707_v8  ;;  %2410 = vmatprep.subr.bf16.mxu1 %v7708_v57 }
 0x341   : > { %2370 = vmatpush1.bf16.msra.mxu0 %v7709_v38  ;;  %2411 = vmatpush1.bf16.msra.mxu1 %v7710_v2 }
 0x342   : > { %2371 = vmatprep.subr.bf16.mxu0 %v7711_v58  ;;  %2412 = vmatprep.subr.bf16.mxu1 %v7712_v41 }
 0x345   : > { %2372 = vmatpush1.bf16.msra.mxu0 %v7713_v3  ;;  %2413 = vmatpush1.bf16.msra.mxu1 %v7628_v30 }
 0x346   : > { %2373 = vmatprep.subr.bf16.mxu0 %v7629_v31  ;;  %2414 = vmatprep.subr.bf16.mxu1 %v7630_v28 }
 0x349   : > { %2374 = vmatpush1.bf16.msra.mxu0 %v7714_v34  ;;  %2415 = vmatpush1.bf16.msra.mxu1 %v7632_v14 }
 0x34a   : > { %2375 = vmatprep.subr.bf16.mxu0 %v7633_v62  ;;  %2416 = vmatprep.subr.bf16.mxu1 %v7634_v60 }
 0x34d   : > { %2376 = vmatpush1.bf16.msra.mxu0 %v7635_v37  ;;  %2417 = vmatpush1.bf16.msra.mxu1 %v7636_v52 }
 0x34e   : > { %2377 = vmatprep.subr.bf16.mxu0 %v7637_v55  ;;  %2418 = vmatprep.subr.bf16.mxu1 %v7638_v5  ;;  %v7782_v55 = vld [vmem:[#allocation172_spill] sm:$0xff] }
 0x351   : > { %2378 = vmatpush1.bf16.msra.mxu0 %v5590_v54  ;;  %2419 = vmatpush1.bf16.msra.mxu1 %v5594_v63 }
 0x352   : > { %2379 = vmatprep.subr.bf16.mxu0 %v5596_v53  ;;  %2420 = vmatprep.subr.bf16.mxu1 %v7639_v39  ;;  %v7780_v39 = vld [vmem:[#allocation146_spill] sm:$0xff] }
 0x355   : > { %2380 = vmatpush1.bf16.msra.mxu0 %v5606_v36  ;;  %2421 = vmatpush1.bf16.msra.mxu1 %v5610_v25  ;;  %v7779_v36 = vld [vmem:[#allocation143_spill] sm:$0xff] }
 0x356   : > { %2381 = vmatprep.subr.bf16.mxu0 %v5612_v16  ;;  %2422 = vmatprep.subr.bf16.mxu1 %v5615_v21  ;;  %v7777_v21 = vld [vmem:[#allocation142_spill] sm:$0xff]  ;;  %v7778_v16 = vld [vmem:[#allocation144_spill] sm:$0xff] }
 0x359   : > { %2382 = vmatpush1.bf16.msra.mxu0 %v5622_v27  ;;  %2423 = vmatpush1.bf16.msra.mxu1 %v5626_v7  ;;  %v7715_v7 = vld [vmem:[#allocation14_spill] sm:$0xff]  ;;  %v7722_v27 = vld [vmem:[#allocation21_spill] sm:$0xff] }
 0x35a   : > { %2383 = vmatprep.subr.bf16.mxu0 %v5628_v22  ;;  %2424 = vmatprep.subr.bf16.mxu1 %v5631_v0  ;;  %v7716_v22 = vld [vmem:[#allocation15_spill] sm:$0xff]  ;;  %v7717_v0 = vld [vmem:[#allocation16_spill] sm:$0xff] }
 0x35d   : > { %2384 = vmatpush1.bf16.msra.mxu0 %v5634_v47  ;;  %2425 = vmatpush1.bf16.msra.mxu1 %v5638_v6  ;;  %v7718_v47 = vld [vmem:[#allocation17_spill] sm:$0xff]  ;;  %v7719_v6 = vld [vmem:[#allocation18_spill] sm:$0xff] }
 0x35e   : > { %2492 = vmatprep.subr.bf16.mxu0 %v5090_v24  ;;  %2533 = vmatprep.subr.bf16.mxu1 %v5096_v26  ;;  %v7720_v24 = vld [vmem:[#allocation19_spill] sm:$0xff]  ;;  %v7721_v26 = vld [vmem:[#allocation20_spill] sm:$0xff] }
 0x360   : > { %2386 = vmatmul.mubr.bf16.vlgmr.msra.gmra.mrb[52].mxu0 %v6097_v9  ;;  %2427 = vmatmul.mubr.bf16.vlgmr.msra.gmra.mrb[52].mxu1 %v6097_v9  ;;  %v7723_v9 = vld [vmem:[#allocation22_spill] sm:$0xff] }
 0x361   : > { %2493 = vmatpush1.bf16.msra.mxu0 %v5117_v32  ;;  %2534 = vmatpush1.bf16.msra.mxu1 %v5119_v33  ;;  %v7724_v32 = vld [vmem:[#allocation23_spill] sm:$0xff]  ;;  %v7725_v33 = vld [vmem:[#allocation24_spill] sm:$0xff] }
 0x362   : > { %2494 = vmatprep.subr.bf16.mxu0 %v7715_v7  ;;  %2535 = vmatprep.subr.bf16.mxu1 %v7716_v22  ;;  %v7726_v7 = vld [vmem:[#allocation25_spill] sm:$0xff]  ;;  %v7727_v22 = vld [vmem:[#allocation26_spill] sm:$0xff] }
 0x365   : > { %2495 = vmatpush1.bf16.msra.mxu0 %v7717_v0  ;;  %2536 = vmatpush1.bf16.msra.mxu1 %v7718_v47  ;;  %v7728_v0 = vld [vmem:[#allocation27_spill] sm:$0xff]  ;;  %v7729_v47 = vld [vmem:[#allocation28_spill] sm:$0xff] }
 0x366   : > { %2496 = vmatprep.subr.bf16.mxu0 %v7719_v6  ;;  %2537 = vmatprep.subr.bf16.mxu1 %v7720_v24  ;;  %v7730_v6 = vld [vmem:[#allocation29_spill] sm:$0xff]  ;;  %v7731_v24 = vld [vmem:[#allocation30_spill] sm:$0xff] }
 0x369   : > { %2497 = vmatpush1.bf16.msra.mxu0 %v7721_v26  ;;  %2538 = vmatpush1.bf16.msra.mxu1 %v7722_v27  ;;  %v7732_v26 = vld [vmem:[#allocation31_spill] sm:$0xff]  ;;  %v7733_v27 = vld [vmem:[#allocation32_spill] sm:$0xff] }
 0x36a   : > { %2498 = vmatprep.subr.bf16.mxu0 %v7723_v9  ;;  %2539 = vmatprep.subr.bf16.mxu1 %v7724_v32  ;;  %v7734_v9 = vld [vmem:[#allocation33_spill] sm:$0xff]  ;;  %v7735_v32 = vld [vmem:[#allocation34_spill] sm:$0xff] }
 0x36d   : > { %2499 = vmatpush1.bf16.msra.mxu0 %v7725_v33  ;;  %2540 = vmatpush1.bf16.msra.mxu1 %v7726_v7  ;;  %v7736_v33 = vld [vmem:[#allocation35_spill] sm:$0xff]  ;;  %v7737_v7 = vld [vmem:[#allocation36_spill] sm:$0xff] }
 0x36e   : > { %2500 = vmatprep.subr.bf16.mxu0 %v7727_v22  ;;  %2541 = vmatprep.subr.bf16.mxu1 %v7728_v0  ;;  %v7738_v22 = vld [vmem:[#allocation37_spill] sm:$0xff]  ;;  %v7739_v0 = vld [vmem:[#allocation38_spill] sm:$0xff] }
 0x371   : > { %2501 = vmatpush1.bf16.msra.mxu0 %v7729_v47  ;;  %2542 = vmatpush1.bf16.msra.mxu1 %v7730_v6  ;;  %v7740_v47 = vld [vmem:[#allocation39_spill] sm:$0xff]  ;;  %v7741_v6 = vld [vmem:[#allocation40_spill] sm:$0xff] }
 0x372   : > { %2502 = vmatprep.subr.bf16.mxu0 %v7731_v24  ;;  %2543 = vmatprep.subr.bf16.mxu1 %v7732_v26  ;;  %v7742_v24 = vld [vmem:[#allocation41_spill] sm:$0xff]  ;;  %v7743_v26 = vld [vmem:[#allocation42_spill] sm:$0xff] }
 0x375   : > { %2503 = vmatpush1.bf16.msra.mxu0 %v7733_v27  ;;  %2544 = vmatpush1.bf16.msra.mxu1 %v7734_v9  ;;  %v7744_v27 = vld [vmem:[#allocation43_spill] sm:$0xff]  ;;  %v7745_v9 = vld [vmem:[#allocation44_spill] sm:$0xff] }
 0x376   : > { %2504 = vmatprep.subr.bf16.mxu0 %v7735_v32  ;;  %2545 = vmatprep.subr.bf16.mxu1 %v7736_v33  ;;  %v7746_v32 = vld [vmem:[#allocation45_spill] sm:$0xff]  ;;  %v7747_v33 = vld [vmem:[#allocation46_spill] sm:$0xff] }
 0x379   : > { %2505 = vmatpush1.bf16.msra.mxu0 %v7737_v7  ;;  %2546 = vmatpush1.bf16.msra.mxu1 %v7738_v22  ;;  %v7748_v7 = vld [vmem:[#allocation47_spill] sm:$0xff]  ;;  %v7749_v22 = vld [vmem:[#allocation48_spill] sm:$0xff] }
 0x37a   : > { %2506 = vmatprep.subr.bf16.mxu0 %v7739_v0  ;;  %2547 = vmatprep.subr.bf16.mxu1 %v7740_v47  ;;  %v7750_v0 = vld [vmem:[#allocation49_spill] sm:$0xff]  ;;  %v7751_v47 = vld [vmem:[#allocation50_spill] sm:$0xff] }
 0x37d   : > { %2507 = vmatpush1.bf16.msra.mxu0 %v7741_v6  ;;  %2548 = vmatpush1.bf16.msra.mxu1 %v7742_v24  ;;  %v7752_v6 = vld [vmem:[#allocation51_spill] sm:$0xff]  ;;  %v7753_v24 = vld [vmem:[#allocation52_spill] sm:$0xff] }
 0x37e   : > { %2508 = vmatprep.subr.bf16.mxu0 %v7743_v26  ;;  %2549 = vmatprep.subr.bf16.mxu1 %v7744_v27  ;;  %v7754_v26 = vld [vmem:[#allocation53_spill] sm:$0xff]  ;;  %v7755_v27 = vld [vmem:[#allocation54_spill] sm:$0xff] }
 0x381   : > { %2509 = vmatpush1.bf16.msra.mxu0 %v7745_v9  ;;  %2550 = vmatpush1.bf16.msra.mxu1 %v7746_v32  ;;  %v7756_v9 = vld [vmem:[#allocation55_spill] sm:$0xff]  ;;  %v7757_v32 = vld [vmem:[#allocation56_spill] sm:$0xff] }
 0x382   : > { %2510 = vmatprep.subr.bf16.mxu0 %v7747_v33  ;;  %2551 = vmatprep.subr.bf16.mxu1 %v7748_v7  ;;  %v7758_v33 = vld [vmem:[#allocation57_spill] sm:$0xff]  ;;  %v7759_v7 = vld [vmem:[#allocation58_spill] sm:$0xff] }
 0x385   : > { %2511 = vmatpush1.bf16.msra.mxu0 %v7749_v22  ;;  %2552 = vmatpush1.bf16.msra.mxu1 %v7750_v0  ;;  %v7760_v22 = vld [vmem:[#allocation59_spill] sm:$0xff]  ;;  %v7761_v0 = vld [vmem:[#allocation60_spill] sm:$0xff] }
 0x386   : > { %2512 = vmatprep.subr.bf16.mxu0 %v7751_v47  ;;  %2553 = vmatprep.subr.bf16.mxu1 %v7752_v6  ;;  %v7762_v47 = vld [vmem:[#allocation61_spill] sm:$0xff]  ;;  %v7763_v6 = vld [vmem:[#allocation62_spill] sm:$0xff] }
 0x389   : > { %2513 = vmatpush1.bf16.msra.mxu0 %v7753_v24  ;;  %2554 = vmatpush1.bf16.msra.mxu1 %v7754_v26  ;;  %v7764_v24 = vld [vmem:[#allocation63_spill] sm:$0xff]  ;;  %v7765_v26 = vld [vmem:[#allocation64_spill] sm:$0xff] }
 0x38a   : > { %2514 = vmatprep.subr.bf16.mxu0 %v7755_v27  ;;  %2555 = vmatprep.subr.bf16.mxu1 %v7756_v9  ;;  %v7766_v27 = vld [vmem:[#allocation65_spill] sm:$0xff]  ;;  %v7767_v9 = vld [vmem:[#allocation66_spill] sm:$0xff] }
 0x38d   : > { %2515 = vmatpush1.bf16.msra.mxu0 %v7757_v32  ;;  %2556 = vmatpush1.bf16.msra.mxu1 %v7758_v33  ;;  %v7768_v32 = vld [vmem:[#allocation67_spill] sm:$0xff]  ;;  %v7769_v33 = vld [vmem:[#allocation68_spill] sm:$0xff] }
 0x38e   : > { %2516 = vmatprep.subr.bf16.mxu0 %v7759_v7  ;;  %2557 = vmatprep.subr.bf16.mxu1 %v7760_v22  ;;  %v7770_v7 = vld [vmem:[#allocation69_spill] sm:$0xff]  ;;  %v7771_v22 = vld [vmem:[#allocation70_spill] sm:$0xff] }
 0x391   : > { %2517 = vmatpush1.bf16.msra.mxu0 %v7761_v0  ;;  %2558 = vmatpush1.bf16.msra.mxu1 %v7762_v47  ;;  %v7772_v0 = vld [vmem:[#allocation71_spill] sm:$0xff]  ;;  %v7773_v47 = vld [vmem:[#allocation72_spill] sm:$0xff] }
 0x392   : > { %2518 = vmatprep.subr.bf16.mxu0 %v7763_v6  ;;  %2559 = vmatprep.subr.bf16.mxu1 %v7764_v24  ;;  %v7774_v6 = vld [vmem:[#allocation73_spill] sm:$0xff]  ;;  %v7775_v24 = vld [vmem:[#allocation74_spill] sm:$0xff] }
 0x395   : > { %2519 = vmatpush1.bf16.msra.mxu0 %v7765_v26  ;;  %2560 = vmatpush1.bf16.msra.mxu1 %v7766_v27  ;;  %v7776_v26 = vld [vmem:[#allocation75_spill] sm:$0xff] }
 0x396   : > { %2520 = vmatprep.subr.bf16.mxu0 %v7767_v9  ;;  %2561 = vmatprep.subr.bf16.mxu1 %v7768_v32 }
 0x399   : > { %2521 = vmatpush1.bf16.msra.mxu0 %v7769_v33  ;;  %2562 = vmatpush1.bf16.msra.mxu1 %v7770_v7 }
 0x39a   : > { %2522 = vmatprep.subr.bf16.mxu0 %v7771_v22  ;;  %2563 = vmatprep.subr.bf16.mxu1 %v7772_v0 }
 0x39d   : > { %2523 = vmatpush1.bf16.msra.mxu0 %v7773_v47  ;;  %2564 = vmatpush1.bf16.msra.mxu1 %v7774_v6 }
 0x39e   : > { %2574 = vmatprep.subr.bf16.mxu0 %v7775_v24  ;;  %2615 = vmatprep.subr.bf16.mxu1 %v7776_v26 }
 0x3f3   : > { %v2305_v27 = vpop.f32.mrb[48].mxu0  ;;  %v2346_v9 = vpop.f32.mrb[48].mxu1 }
 0x3f4   : > { %v2435_v32 = vadd.f32 %v2305_v27, %v7777_v21  ;;  %v2437_v33 = vadd.f32 %v2346_v9, %v7778_v16  ;;  %v2307_v25 = vpop.f32.mrb[49].mxu0  ;;  %v2348_v7 = vpop.f32.mrb[49].mxu1  ;;  %v7781_v27 = vld [vmem:[#allocation170_spill] sm:$0xff] }
 0x3f5   : > { %v2436_v22 = vadd.f32 %v2307_v25, %v7779_v36  ;;  %v2438_v0 = vadd.f32 %v2348_v7, %v7780_v39  ;;  %v2309_v53 = vpop.f32.mrb[50].mxu0  ;;  %v2350_v47 = vpop.f32.mrb[50].mxu1 }
 0x3f6   : > { %v2310_v63 = vpop.f32.mrb[51].mxu0  ;;  %v2351_v6 = vpop.f32.mrb[51].mxu1  ;;  %v2451_v54 = vmul.f32 0.5, %v2437_v33  ;;  %v2443_v5 = vmul.f32 0.5, %v2435_v32  ;;  %v7783_v53 = vld [vmem:[#allocation171_spill] sm:$0xff] }
 0x3f7   : > { %v2452_v24 = vmul.f32 0.5, %v2438_v0  ;;  %v2444_v26 = vmul.f32 0.5, %v2436_v22  ;;  %v7784_v63 = vld [vmem:[#allocation174_spill] sm:$0xff] }
 0x3f8   : > { %4605 = vtanh.f32 %v2451_v54 }
 0x3f9   : > { %4607 = vtanh.f32 %v2452_v24 }
 0x3fa   : > { %4609 = vtanh.f32 %v2443_v5 }
 0x3fb   : > { %4611 = vtanh.f32 %v2444_v26 }
 0x402   : > { %v4606_v32 = vpop.eup %4605 }
 0x403   : > { %v4608_v22 = vpop.eup %4607  ;;  %v2455_v39 = vmul.f32 0.5, %v4606_v32 }
 0x404   : > { %v4610_v26 = vpop.eup %4609 }
 0x405   : > { %v4612_v5 = vpop.eup %4611  ;;  %v2457_v37 = vadd.f32 0.5, %v2455_v39 }
 0x406   : > { %v2448_v52 = vmul.f32 0.5, %v4612_v5 }
 0x433   : > { %v2387_v21 = vpop.f32.mrb[52].mxu0  ;;  %v2428_v16 = vpop.f32.mrb[52].mxu1 }
 0x434   : > { %v2439_v9 = vadd.f32 %v2387_v21, %v7781_v27  ;;  %v2441_v36 = vadd.f32 %v2428_v16, %v7782_v55  ;;  %v2389_v25 = vpop.f32.mrb[53].mxu0  ;;  %v2430_v7 = vpop.f32.mrb[53].mxu1  ;;  %v2456_v27 = vmul.f32 0.5, %v4608_v22  ;;  %v2447_v16 = vmul.f32 0.5, %v4610_v26 }
 0x435   : > { %v2440_v47 = vadd.f32 %v2389_v25, %v7783_v53  ;;  %v2442_v6 = vadd.f32 %v2430_v7, %v7784_v63  ;;  %v2391_v33 = vpop.f32.mrb[54].mxu0  ;;  %v2432_v0 = vpop.f32.mrb[54].mxu1  ;;  %v2450_v63 = vadd.f32 0.5, %v2448_v52 }
 0x436   : > { %4613 = vtanh.f32 %v2439_v9  ;;  %v2392_v54 = vpop.f32.mrb[55].mxu0  ;;  %v2433_v24 = vpop.f32.mrb[55].mxu1  ;;  %v2461_v21 = vmul.f32 0.5, %v2441_v36  ;;  %v2458_v25 = vadd.f32 0.5, %v2456_v27  ;;  %v2449_v7 = vadd.f32 0.5, %v2447_v16  ;;  %v7786_v16 = vld [vmem:[#allocation99_spill] sm:$0xff] }
 0x437   : > { %4615 = vtanh.f32 %v2440_v47  ;;  %v2462_v55 = vmul.f32 0.5, %v2442_v6  ;;  %v2469_v33 = vmul.f32 %v2457_v37, %v6091_v11 }
 0x438   : > { %4617 = vtanh.f32 %v2461_v21  ;;  %v2470_v47 = vmul.f32 %v2458_v25, %v6093_v50  ;;  %v7787_v25 = vld [vmem:[#allocation100_spill] sm:$0xff] }
 0x439   : > { %4619 = vtanh.f32 %v2462_v55  ;;  %v7785_v55 = vld [vmem:[#allocation98_spill] sm:$0xff] }
 0x440   : > { %v4614_v53 = vpop.eup %4613 }
 0x441   : > { %v4616_v9 = vpop.eup %4615  ;;  %v2471_v0 = vmul.f32 %v4614_v53, %v2449_v7  ;;  %v7788_v7 = vld [vmem:[#allocation101_spill] sm:$0xff] }
 0x442   : > { %v2472_v54 = vmul.f32 %v4616_v9, %v2450_v63  ;;  %v4618_v6 = vpop.eup %4617  ;;  %v7789_v53 = vld [vmem:[#allocation105_spill] sm:$0xff]  ;;  %v7790_v63 = vld [vmem:[#allocation120_spill] sm:$0xff] }
 0x443   : > { %v6241_v32 = vadd.f32 %v2471_v0, %v2469_v33  ;;  %v4620_v24 = vpop.eup %4619  ;;  %v2465_v22 = vmul.f32 0.5, %v4618_v6  ;;  %v7791_v9 = vld [vmem:[#allocation121_spill] sm:$0xff]  ;;  %v7792_v33 = vld [vmem:[#allocation122_spill] sm:$0xff]  ;;  %v7793_v0 = vld [vmem:[#allocation123_spill] sm:$0xff] }
 0x444   : > { %v6243_v36 = vadd.f32 %v2472_v54, %v2470_v47  ;;  %v2466_v26 = vmul.f32 0.5, %v4620_v24  ;;  %v7794_v47 = vld [vmem:[#allocation124_spill] sm:$0xff]  ;;  %v7795_v54 = vld [vmem:[#allocation125_spill] sm:$0xff]  ;;  %v7796_v6 = vld [vmem:[#allocation126_spill] sm:$0xff] }
 0x445   : > { %4621 = vtanh.f32 %v6241_v32  ;;  %v2467_v52 = vadd.f32 0.5, %v2465_v22  ;;  %v7797_v24 = vld [vmem:[#allocation127_spill] sm:$0xff]  ;;  %v7798_v22 = vld [vmem:[#allocation128_spill] sm:$0xff] }
 0x446   : > { %4623 = vtanh.f32 %v6243_v36  ;;  %v2468_v39 = vadd.f32 0.5, %v2466_v26  ;;  %v7799_v26 = vld [vmem:[#allocation129_spill] sm:$0xff] }
 0x44f   : > { %v4622_v5 = vpop.eup %4621 }
 0x450   : > { %v4624_v37 = vpop.eup %4623  ;;  %v2477_v11 = vmul.f32 %v4622_v5, %v2467_v52  ;;  %v7800_v52 = vld [vmem:[#allocation130_spill] sm:$0xff]  ;;  %v7801_v5 = vld [vmem:[#allocation131_spill] sm:$0xff] }
 0x451   : > { %v2478_v21 = vmul.f32 %v4624_v37, %v2468_v39  ;;  %v7802_v39 = vld [vmem:[#allocation132_spill] sm:$0xff]  ;;  %v7803_v37 = vld [vmem:[#allocation133_spill] sm:$0xff] }
 0x452   : > { %v6247_v27 = vpack.c.bf16 %v2477_v11, %v2477_v11  ;;  %v7804_v11 = vld [vmem:[#allocation134_spill] sm:$0xff] }
 0x453   : > { %v2491_v50 = vpack.c.bf16 %v2478_v21, %v2478_v21  ;;  %v7805_v21 = vld [vmem:[#allocation135_spill] sm:$0xff] }
 0x455   : > { %2524 = vmatprep.mubr.bf16.mxu0 %v2491_v50  ;;  %2565 = vmatprep.mubr.bf16.mxu1 %v2491_v50 }
 0x456   : > { %2525 = vmatmul.mubr.bf16.vlgmr.msra.gmra.mrb[56].mxu0 %v6247_v27  ;;  %2566 = vmatmul.mubr.bf16.vlgmr.msra.gmra.mrb[56].mxu1 %v6247_v27 }
 0x457   : > { %2575 = vmatpush1.bf16.msra.mxu0 %v7591_v45  ;;  %2616 = vmatpush1.bf16.msra.mxu1 %v7592_v23 }
 0x458   : > { %2606 = vmatprep.mubr.bf16.mxu0 %v2491_v50  ;;  %2647 = vmatprep.mubr.bf16.mxu1 %v2491_v50  ;;  %v7806_v50 = vld [vmem:[#allocation136_spill] sm:$0xff] }
 0x459   : > { %2576 = vmatprep.subr.bf16.mxu0 %v7593_v46  ;;  %2617 = vmatprep.subr.bf16.mxu1 %v7594_v61 }
 0x45b   : > { %2577 = vmatpush1.bf16.msra.mxu0 %v7595_v17  ;;  %2618 = vmatpush1.bf16.msra.mxu1 %v7596_v13 }
 0x45c   : > { %2578 = vmatprep.subr.bf16.mxu0 %v7597_v20  ;;  %2619 = vmatprep.subr.bf16.mxu1 %v7598_v18 }
 0x45f   : > { %2579 = vmatpush1.bf16.msra.mxu0 %v7599_v15  ;;  %2620 = vmatpush1.bf16.msra.mxu1 %v7600_v19 }
 0x460   : > { %2580 = vmatprep.subr.bf16.mxu0 %v7601_v44  ;;  %2621 = vmatprep.subr.bf16.mxu1 %v7688_v40 }
 0x463   : > { %2581 = vmatpush1.bf16.msra.mxu0 %v7689_v56  ;;  %2622 = vmatpush1.bf16.msra.mxu1 %v7690_v51 }
 0x464   : > { %2582 = vmatprep.subr.bf16.mxu0 %v7691_v49  ;;  %2623 = vmatprep.subr.bf16.mxu1 %v7692_v48 }
 0x467   : > { %2583 = vmatpush1.bf16.msra.mxu0 %v7693_v43  ;;  %2624 = vmatpush1.bf16.msra.mxu1 %v7694_v10 }
 0x468   : > { %2584 = vmatprep.subr.bf16.mxu0 %v7695_v12  ;;  %2625 = vmatprep.subr.bf16.mxu1 %v7696_v59 }
 0x46b   : > { %2585 = vmatpush1.bf16.msra.mxu0 %v7697_v1  ;;  %2626 = vmatpush1.bf16.msra.mxu1 %v7698_v42 }
 0x46c   : > { %2586 = vmatprep.subr.bf16.mxu0 %v7785_v55  ;;  %2627 = vmatprep.subr.bf16.mxu1 %v7786_v16 }
 0x46f   : > { %2587 = vmatpush1.bf16.msra.mxu0 %v7787_v25  ;;  %2628 = vmatpush1.bf16.msra.mxu1 %v7788_v7 }
 0x470   : > { %2588 = vmatprep.subr.bf16.mxu0 %v7703_v35  ;;  %2629 = vmatprep.subr.bf16.mxu1 %v7704_v4 }
 0x473   : > { %2589 = vmatpush1.bf16.msra.mxu0 %v7705_v29  ;;  %2630 = vmatpush1.bf16.msra.mxu1 %v7789_v53 }
 0x474   : > { %2590 = vmatprep.subr.bf16.mxu0 %v7707_v8  ;;  %2631 = vmatprep.subr.bf16.mxu1 %v7708_v57 }
 0x477   : > { %2591 = vmatpush1.bf16.msra.mxu0 %v7709_v38  ;;  %2632 = vmatpush1.bf16.msra.mxu1 %v7710_v2 }
 0x478   : > { %2592 = vmatprep.subr.bf16.mxu0 %v7711_v58  ;;  %2633 = vmatprep.subr.bf16.mxu1 %v7712_v41 }
 0x47b   : > { %2593 = vmatpush1.bf16.msra.mxu0 %v7713_v3  ;;  %2634 = vmatpush1.bf16.msra.mxu1 %v7628_v30 }
 0x47c   : > { %2594 = vmatprep.subr.bf16.mxu0 %v7629_v31  ;;  %2635 = vmatprep.subr.bf16.mxu1 %v7630_v28 }
 0x47f   : > { %2595 = vmatpush1.bf16.msra.mxu0 %v7714_v34  ;;  %2636 = vmatpush1.bf16.msra.mxu1 %v7632_v14  ;;  %v7879_v14 = vld [vmem:[#allocation176_spill] sm:$0xff] }
 0x480   : > { %2596 = vmatprep.subr.bf16.mxu0 %v7633_v62  ;;  %2637 = vmatprep.subr.bf16.mxu1 %v7634_v60 }
 0x483   : > { %2597 = vmatpush1.bf16.msra.mxu0 %v7790_v63  ;;  %2638 = vmatpush1.bf16.msra.mxu1 %v7791_v9 }
 0x484   : > { %2598 = vmatprep.subr.bf16.mxu0 %v7792_v33  ;;  %2639 = vmatprep.subr.bf16.mxu1 %v7793_v0  ;;  %v7876_v0 = vld [vmem:[#allocation147_spill] sm:$0xff]  ;;  %v7877_v33 = vld [vmem:[#allocation149_spill] sm:$0xff] }
 0x487   : > { %2599 = vmatpush1.bf16.msra.mxu0 %v7794_v47  ;;  %2640 = vmatpush1.bf16.msra.mxu1 %v7795_v54  ;;  %v7875_v54 = vld [vmem:[#allocation148_spill] sm:$0xff] }
 0x488   : > { %2600 = vmatprep.subr.bf16.mxu0 %v7796_v6  ;;  %2641 = vmatprep.subr.bf16.mxu1 %v7797_v24  ;;  %v7807_v6 = vld [vmem:[#allocation137_spill] sm:$0xff]  ;;  %v7808_v24 = vld [vmem:[#allocation10_spill] sm:$0xff] }
 0x48b   : > { %2601 = vmatpush1.bf16.msra.mxu0 %v7798_v22  ;;  %2642 = vmatpush1.bf16.msra.mxu1 %v7799_v26  ;;  %v7809_v22 = vld [vmem:[#allocation11_spill] sm:$0xff]  ;;  %v7874_v26 = vld [vmem:[#allocation145_spill] sm:$0xff] }
 0x48c   : > { %2602 = vmatprep.subr.bf16.mxu0 %v7800_v52  ;;  %2643 = vmatprep.subr.bf16.mxu1 %v7801_v5  ;;  %v7810_v5 = vld [vmem:[#allocation12_spill] sm:$0xff]  ;;  %v7819_v52 = vld [vmem:[#allocation21_spill] sm:$0xff] }
 0x48f   : > { %2603 = vmatpush1.bf16.msra.mxu0 %v7802_v39  ;;  %2644 = vmatpush1.bf16.msra.mxu1 %v7803_v37  ;;  %v7811_v39 = vld [vmem:[#allocation13_spill] sm:$0xff]  ;;  %v7812_v37 = vld [vmem:[#allocation14_spill] sm:$0xff] }
 0x490   : > { %2604 = vmatprep.subr.bf16.mxu0 %v7804_v11  ;;  %2645 = vmatprep.subr.bf16.mxu1 %v7805_v21  ;;  %v7813_v11 = vld [vmem:[#allocation15_spill] sm:$0xff]  ;;  %v7814_v21 = vld [vmem:[#allocation16_spill] sm:$0xff] }
 0x493   : > { %2605 = vmatpush1.bf16.msra.mxu0 %v7806_v50  ;;  %2646 = vmatpush1.bf16.msra.mxu1 %v7807_v6  ;;  %v7815_v50 = vld [vmem:[#allocation17_spill] sm:$0xff]  ;;  %v7816_v6 = vld [vmem:[#allocation18_spill] sm:$0xff] }
 0x494   : > { %2713 = vmatprep.subr.bf16.mxu0 %v7808_v24  ;;  %2754 = vmatprep.subr.bf16.mxu1 %v7809_v22  ;;  %v7817_v24 = vld [vmem:[#allocation19_spill] sm:$0xff]  ;;  %v7818_v22 = vld [vmem:[#allocation20_spill] sm:$0xff] }
 0x496   : > { %2607 = vmatmul.mubr.bf16.vlgmr.msra.gmra.mrb[60].mxu0 %v6247_v27  ;;  %2648 = vmatmul.mubr.bf16.vlgmr.msra.gmra.mrb[60].mxu1 %v6247_v27  ;;  %v7820_v27 = vld [vmem:[#allocation22_spill] sm:$0xff] }
 0x497   : > { %2714 = vmatpush1.bf16.msra.mxu0 %v7810_v5  ;;  %2755 = vmatpush1.bf16.msra.mxu1 %v7811_v39  ;;  %v7821_v5 = vld [vmem:[#allocation23_spill] sm:$0xff]  ;;  %v7822_v39 = vld [vmem:[#allocation24_spill] sm:$0xff] }
 0x498   : > { %2715 = vmatprep.subr.bf16.mxu0 %v7812_v37  ;;  %2756 = vmatprep.subr.bf16.mxu1 %v7813_v11  ;;  %v7823_v37 = vld [vmem:[#allocation25_spill] sm:$0xff]  ;;  %v7824_v11 = vld [vmem:[#allocation26_spill] sm:$0xff] }
 0x49b   : > { %2716 = vmatpush1.bf16.msra.mxu0 %v7814_v21  ;;  %2757 = vmatpush1.bf16.msra.mxu1 %v7815_v50  ;;  %v7825_v21 = vld [vmem:[#allocation27_spill] sm:$0xff]  ;;  %v7826_v50 = vld [vmem:[#allocation28_spill] sm:$0xff] }
 0x49c   : > { %2717 = vmatprep.subr.bf16.mxu0 %v7816_v6  ;;  %2758 = vmatprep.subr.bf16.mxu1 %v7817_v24  ;;  %v7827_v6 = vld [vmem:[#allocation29_spill] sm:$0xff]  ;;  %v7828_v24 = vld [vmem:[#allocation30_spill] sm:$0xff] }
 0x49f   : > { %2718 = vmatpush1.bf16.msra.mxu0 %v7818_v22  ;;  %2759 = vmatpush1.bf16.msra.mxu1 %v7819_v52  ;;  %v7829_v22 = vld [vmem:[#allocation31_spill] sm:$0xff]  ;;  %v7830_v52 = vld [vmem:[#allocation32_spill] sm:$0xff] }
 0x4a0   : > { %2719 = vmatprep.subr.bf16.mxu0 %v7820_v27  ;;  %2760 = vmatprep.subr.bf16.mxu1 %v7821_v5  ;;  %v7831_v27 = vld [vmem:[#allocation33_spill] sm:$0xff]  ;;  %v7832_v5 = vld [vmem:[#allocation34_spill] sm:$0xff] }
 0x4a3   : > { %2720 = vmatpush1.bf16.msra.mxu0 %v7822_v39  ;;  %2761 = vmatpush1.bf16.msra.mxu1 %v7823_v37  ;;  %v7833_v39 = vld [vmem:[#allocation35_spill] sm:$0xff]  ;;  %v7834_v37 = vld [vmem:[#allocation36_spill] sm:$0xff] }
 0x4a4   : > { %2721 = vmatprep.subr.bf16.mxu0 %v7824_v11  ;;  %2762 = vmatprep.subr.bf16.mxu1 %v7825_v21  ;;  %v7835_v11 = vld [vmem:[#allocation37_spill] sm:$0xff]  ;;  %v7836_v21 = vld [vmem:[#allocation38_spill] sm:$0xff] }
 0x4a7   : > { %2722 = vmatpush1.bf16.msra.mxu0 %v7826_v50  ;;  %2763 = vmatpush1.bf16.msra.mxu1 %v7827_v6  ;;  %v7837_v50 = vld [vmem:[#allocation39_spill] sm:$0xff]  ;;  %v7838_v6 = vld [vmem:[#allocation40_spill] sm:$0xff] }
 0x4a8   : > { %2723 = vmatprep.subr.bf16.mxu0 %v7828_v24  ;;  %2764 = vmatprep.subr.bf16.mxu1 %v7829_v22  ;;  %v7839_v24 = vld [vmem:[#allocation41_spill] sm:$0xff]  ;;  %v7840_v22 = vld [vmem:[#allocation42_spill] sm:$0xff] }
 0x4ab   : > { %2724 = vmatpush1.bf16.msra.mxu0 %v7830_v52  ;;  %2765 = vmatpush1.bf16.msra.mxu1 %v7831_v27  ;;  %v7841_v52 = vld [vmem:[#allocation43_spill] sm:$0xff]  ;;  %v7842_v27 = vld [vmem:[#allocation44_spill] sm:$0xff] }
 0x4ac   : > { %2725 = vmatprep.subr.bf16.mxu0 %v7832_v5  ;;  %2766 = vmatprep.subr.bf16.mxu1 %v7833_v39  ;;  %v7843_v5 = vld [vmem:[#allocation45_spill] sm:$0xff]  ;;  %v7844_v39 = vld [vmem:[#allocation46_spill] sm:$0xff] }
 0x4af   : > { %2726 = vmatpush1.bf16.msra.mxu0 %v7834_v37  ;;  %2767 = vmatpush1.bf16.msra.mxu1 %v7835_v11  ;;  %v7845_v37 = vld [vmem:[#allocation47_spill] sm:$0xff]  ;;  %v7846_v11 = vld [vmem:[#allocation48_spill] sm:$0xff] }
 0x4b0   : > { %2727 = vmatprep.subr.bf16.mxu0 %v7836_v21  ;;  %2768 = vmatprep.subr.bf16.mxu1 %v7837_v50  ;;  %v7847_v21 = vld [vmem:[#allocation49_spill] sm:$0xff]  ;;  %v7848_v50 = vld [vmem:[#allocation50_spill] sm:$0xff] }
 0x4b3   : > { %2728 = vmatpush1.bf16.msra.mxu0 %v7838_v6  ;;  %2769 = vmatpush1.bf16.msra.mxu1 %v7839_v24  ;;  %v7849_v6 = vld [vmem:[#allocation51_spill] sm:$0xff]  ;;  %v7850_v24 = vld [vmem:[#allocation52_spill] sm:$0xff] }
 0x4b4   : > { %2729 = vmatprep.subr.bf16.mxu0 %v7840_v22  ;;  %2770 = vmatprep.subr.bf16.mxu1 %v7841_v52  ;;  %v7851_v22 = vld [vmem:[#allocation53_spill] sm:$0xff]  ;;  %v7852_v52 = vld [vmem:[#allocation54_spill] sm:$0xff] }
 0x4b7   : > { %2730 = vmatpush1.bf16.msra.mxu0 %v7842_v27  ;;  %2771 = vmatpush1.bf16.msra.mxu1 %v7843_v5  ;;  %v7853_v27 = vld [vmem:[#allocation55_spill] sm:$0xff]  ;;  %v7854_v5 = vld [vmem:[#allocation56_spill] sm:$0xff] }
 0x4b8   : > { %2731 = vmatprep.subr.bf16.mxu0 %v7844_v39  ;;  %2772 = vmatprep.subr.bf16.mxu1 %v7845_v37  ;;  %v7855_v39 = vld [vmem:[#allocation57_spill] sm:$0xff]  ;;  %v7856_v37 = vld [vmem:[#allocation58_spill] sm:$0xff] }
 0x4bb   : > { %2732 = vmatpush1.bf16.msra.mxu0 %v7846_v11  ;;  %2773 = vmatpush1.bf16.msra.mxu1 %v7847_v21  ;;  %v7857_v11 = vld [vmem:[#allocation59_spill] sm:$0xff]  ;;  %v7858_v21 = vld [vmem:[#allocation60_spill] sm:$0xff] }
 0x4bc   : > { %2733 = vmatprep.subr.bf16.mxu0 %v7848_v50  ;;  %2774 = vmatprep.subr.bf16.mxu1 %v7849_v6  ;;  %v7859_v50 = vld [vmem:[#allocation61_spill] sm:$0xff]  ;;  %v7860_v6 = vld [vmem:[#allocation62_spill] sm:$0xff] }
 0x4bf   : > { %2734 = vmatpush1.bf16.msra.mxu0 %v7850_v24  ;;  %2775 = vmatpush1.bf16.msra.mxu1 %v7851_v22  ;;  %v7861_v24 = vld [vmem:[#allocation63_spill] sm:$0xff]  ;;  %v7862_v22 = vld [vmem:[#allocation64_spill] sm:$0xff] }
 0x4c0   : > { %2735 = vmatprep.subr.bf16.mxu0 %v7852_v52  ;;  %2776 = vmatprep.subr.bf16.mxu1 %v7853_v27  ;;  %v7863_v52 = vld [vmem:[#allocation65_spill] sm:$0xff]  ;;  %v7864_v27 = vld [vmem:[#allocation66_spill] sm:$0xff] }
 0x4c3   : > { %2736 = vmatpush1.bf16.msra.mxu0 %v7854_v5  ;;  %2777 = vmatpush1.bf16.msra.mxu1 %v7855_v39  ;;  %v7865_v5 = vld [vmem:[#allocation67_spill] sm:$0xff]  ;;  %v7866_v39 = vld [vmem:[#allocation68_spill] sm:$0xff] }
 0x4c4   : > { %2737 = vmatprep.subr.bf16.mxu0 %v7856_v37  ;;  %2778 = vmatprep.subr.bf16.mxu1 %v7857_v11  ;;  %v7867_v37 = vld [vmem:[#allocation69_spill] sm:$0xff]  ;;  %v7868_v11 = vld [vmem:[#allocation70_spill] sm:$0xff] }
 0x4c7   : > { %2738 = vmatpush1.bf16.msra.mxu0 %v7858_v21  ;;  %2779 = vmatpush1.bf16.msra.mxu1 %v7859_v50  ;;  %v7869_v21 = vld [vmem:[#allocation71_spill] sm:$0xff]  ;;  %v7870_v50 = vld [vmem:[#allocation72_spill] sm:$0xff] }
 0x4c8   : > { %2739 = vmatprep.subr.bf16.mxu0 %v7860_v6  ;;  %2780 = vmatprep.subr.bf16.mxu1 %v7861_v24  ;;  %v7871_v6 = vld [vmem:[#allocation73_spill] sm:$0xff]  ;;  %v7872_v24 = vld [vmem:[#allocation74_spill] sm:$0xff] }
 0x4cb   : > { %2740 = vmatpush1.bf16.msra.mxu0 %v7862_v22  ;;  %2781 = vmatpush1.bf16.msra.mxu1 %v7863_v52  ;;  %v7873_v22 = vld [vmem:[#allocation75_spill] sm:$0xff] }
 0x4cc   : > { %2741 = vmatprep.subr.bf16.mxu0 %v7864_v27  ;;  %2782 = vmatprep.subr.bf16.mxu1 %v7865_v5 }
 0x4cf   : > { %2742 = vmatpush1.bf16.msra.mxu0 %v7866_v39  ;;  %2783 = vmatpush1.bf16.msra.mxu1 %v7867_v37 }
 0x4d0   : > { %2743 = vmatprep.subr.bf16.mxu0 %v7868_v11  ;;  %2784 = vmatprep.subr.bf16.mxu1 %v7869_v21 }
 0x4d3   : > { %2744 = vmatpush1.bf16.msra.mxu0 %v7870_v50  ;;  %2785 = vmatpush1.bf16.msra.mxu1 %v7871_v6 }
 0x4d4   : > { %2795 = vmatprep.subr.bf16.mxu0 %v7872_v24  ;;  %2836 = vmatprep.subr.bf16.mxu1 %v7873_v22 }
 0x529   : > { %v2526_v52 = vpop.f32.mrb[56].mxu0  ;;  %v2567_v27 = vpop.f32.mrb[56].mxu1 }
 0x52a   : > { %v2656_v5 = vadd.f32 %v2526_v52, %v7874_v26  ;;  %v2658_v39 = vadd.f32 %v2567_v27, %v7875_v54  ;;  %v2528_v47 = vpop.f32.mrb[57].mxu0  ;;  %v2569_v37 = vpop.f32.mrb[57].mxu1  ;;  %v7878_v52 = vld [vmem:[#allocation173_spill] sm:$0xff] }
 0x52b   : > { %v2657_v11 = vadd.f32 %v2528_v47, %v7876_v0  ;;  %v2659_v21 = vadd.f32 %v2569_v37, %v7877_v33  ;;  %v2530_v9 = vpop.f32.mrb[58].mxu0  ;;  %v2571_v50 = vpop.f32.mrb[58].mxu1 }
 0x52c   : > { %v2531_v63 = vpop.f32.mrb[59].mxu0  ;;  %v2572_v6 = vpop.f32.mrb[59].mxu1  ;;  %v2672_v60 = vmul.f32 0.5, %v2658_v39  ;;  %v2664_v62 = vmul.f32 0.5, %v2656_v5  ;;  %v7880_v9 = vld [vmem:[#allocation175_spill] sm:$0xff] }
 0x52d   : > { %v2673_v24 = vmul.f32 0.5, %v2659_v21  ;;  %v2665_v22 = vmul.f32 0.5, %v2657_v11  ;;  %v7881_v63 = vld [vmem:[#allocation177_spill] sm:$0xff] }
 0x52e   : > { %4625 = vtanh.f32 %v2672_v60 }
 0x52f   : > { %4627 = vtanh.f32 %v2673_v24 }
 0x530   : > { %4629 = vtanh.f32 %v2664_v62 }
 0x531   : > { %4631 = vtanh.f32 %v2665_v22 }
 0x538   : > { %v4626_v5 = vpop.eup %4625 }
 0x539   : > { %v4628_v62 = vpop.eup %4627  ;;  %v2676_v50 = vmul.f32 0.5, %v4626_v5 }
 0x53a   : > { %v4630_v22 = vpop.eup %4629 }
 0x53b   : > { %v4632_v11 = vpop.eup %4631  ;;  %v2678_v28 = vadd.f32 0.5, %v2676_v50 }
 0x53c   : > { %v2669_v34 = vmul.f32 0.5, %v4632_v11 }
 0x569   : > { %v2608_v26 = vpop.f32.mrb[60].mxu0  ;;  %v2649_v54 = vpop.f32.mrb[60].mxu1 }
 0x56a   : > { %v2660_v27 = vadd.f32 %v2608_v26, %v7878_v52  ;;  %v2662_v0 = vadd.f32 %v2649_v54, %v7879_v14  ;;  %v2610_v47 = vpop.f32.mrb[61].mxu0  ;;  %v2651_v33 = vpop.f32.mrb[61].mxu1  ;;  %v2677_v52 = vmul.f32 0.5, %v4628_v62  ;;  %v2668_v54 = vmul.f32 0.5, %v4630_v22 }
 0x56b   : > { %v2661_v37 = vadd.f32 %v2610_v47, %v7880_v9  ;;  %v2663_v6 = vadd.f32 %v2651_v33, %v7881_v63  ;;  %v2612_v39 = vpop.f32.mrb[62].mxu0  ;;  %v2653_v21 = vpop.f32.mrb[62].mxu1  ;;  %v2671_v63 = vadd.f32 0.5, %v2669_v34 }
 0x56c   : > { %4633 = vtanh.f32 %v2660_v27  ;;  %v2613_v60 = vpop.f32.mrb[63].mxu0  ;;  %v2654_v24 = vpop.f32.mrb[63].mxu1  ;;  %v2682_v26 = vmul.f32 0.5, %v2662_v0  ;;  %v2679_v47 = vadd.f32 0.5, %v2677_v52  ;;  %v2670_v33 = vadd.f32 0.5, %v2668_v54  ;;  %v7883_v54 = vld [vmem:[#allocation116_spill] sm:$0xff] }
 0x56d   : > { %4635 = vtanh.f32 %v2661_v37  ;;  %v2683_v14 = vmul.f32 0.5, %v2663_v6  ;;  %v2690_v39 = vmul.f32 %v2678_v28, %v6241_v32 }
 0x56e   : > { %4637 = vtanh.f32 %v2682_v26  ;;  %v2691_v37 = vmul.f32 %v2679_v47, %v6243_v36  ;;  %v7884_v47 = vld [vmem:[#allocation117_spill] sm:$0xff] }
 0x56f   : > { %4639 = vtanh.f32 %v2683_v14  ;;  %v7882_v14 = vld [vmem:[#allocation115_spill] sm:$0xff] }
 0x576   : > { %v4634_v9 = vpop.eup %4633 }
 0x577   : > { %v4636_v27 = vpop.eup %4635  ;;  %v2692_v21 = vmul.f32 %v4634_v9, %v2670_v33  ;;  %v7885_v33 = vld [vmem:[#allocation118_spill] sm:$0xff]  ;;  %v7886_v9 = vld [vmem:[#allocation119_spill] sm:$0xff] }
 0x578   : > { %v2693_v60 = vmul.f32 %v4636_v27, %v2671_v63  ;;  %v4638_v6 = vpop.eup %4637  ;;  %v7887_v63 = vld [vmem:[#allocation120_spill] sm:$0xff]  ;;  %v7888_v27 = vld [vmem:[#allocation121_spill] sm:$0xff] }
 0x579   : > { %v6391_v5 = vadd.f32 %v2692_v21, %v2690_v39  ;;  %v4640_v24 = vpop.eup %4639  ;;  %v2686_v62 = vmul.f32 0.5, %v4638_v6  ;;  %v7889_v39 = vld [vmem:[#allocation122_spill] sm:$0xff]  ;;  %v7890_v21 = vld [vmem:[#allocation123_spill] sm:$0xff] }
 0x57a   : > { %v6393_v0 = vadd.f32 %v2693_v60, %v2691_v37  ;;  %v2687_v22 = vmul.f32 0.5, %v4640_v24  ;;  %v7891_v37 = vld [vmem:[#allocation124_spill] sm:$0xff]  ;;  %v7892_v60 = vld [vmem:[#allocation125_spill] sm:$0xff]  ;;  %v7893_v6 = vld [vmem:[#allocation126_spill] sm:$0xff] }
 0x57b   : > { %4641 = vtanh.f32 %v6391_v5  ;;  %v2688_v34 = vadd.f32 0.5, %v2686_v62  ;;  %v7894_v24 = vld [vmem:[#allocation127_spill] sm:$0xff]  ;;  %v7895_v62 = vld [vmem:[#allocation128_spill] sm:$0xff] }
 0x57c   : > { %4643 = vtanh.f32 %v6393_v0  ;;  %v2689_v50 = vadd.f32 0.5, %v2687_v22  ;;  %v7896_v22 = vld [vmem:[#allocation129_spill] sm:$0xff] }
 0x585   : > { %v4642_v11 = vpop.eup %4641 }
 0x586   : > { %v4644_v28 = vpop.eup %4643  ;;  %v2698_v32 = vmul.f32 %v4642_v11, %v2688_v34  ;;  %v7897_v34 = vld [vmem:[#allocation130_spill] sm:$0xff]  ;;  %v7898_v11 = vld [vmem:[#allocation131_spill] sm:$0xff] }
 0x587   : > { %v2699_v26 = vmul.f32 %v4644_v28, %v2689_v50  ;;  %v7899_v50 = vld [vmem:[#allocation132_spill] sm:$0xff]  ;;  %v7900_v28 = vld [vmem:[#allocation133_spill] sm:$0xff] }
 0x588   : > { %v6397_v52 = vpack.c.bf16 %v2698_v32, %v2698_v32  ;;  %v7901_v32 = vld [vmem:[#allocation134_spill] sm:$0xff] }
 0x589   : > { %v2712_v36 = vpack.c.bf16 %v2699_v26, %v2699_v26  ;;  %v7902_v26 = vld [vmem:[#allocation135_spill] sm:$0xff] }
 0x58b   : > { %2745 = vmatprep.mubr.bf16.mxu0 %v2712_v36  ;;  %2786 = vmatprep.mubr.bf16.mxu1 %v2712_v36 }
 0x58c   : > { %2746 = vmatmul.mubr.bf16.vlgmr.msra.gmra.mrb[64].mxu0 %v6397_v52  ;;  %2787 = vmatmul.mubr.bf16.vlgmr.msra.gmra.mrb[64].mxu1 %v6397_v52 }
 0x58d   : > { %2796 = vmatpush1.bf16.msra.mxu0 %v7591_v45  ;;  %2837 = vmatpush1.bf16.msra.mxu1 %v7592_v23 }
 0x58e   : > { %2827 = vmatprep.mubr.bf16.mxu0 %v2712_v36  ;;  %2868 = vmatprep.mubr.bf16.mxu1 %v2712_v36  ;;  %v7903_v36 = vld [vmem:[#allocation136_spill] sm:$0xff] }
 0x58f   : > { %2797 = vmatprep.subr.bf16.mxu0 %v7593_v46  ;;  %2838 = vmatprep.subr.bf16.mxu1 %v7594_v61 }
 0x591   : > { %2798 = vmatpush1.bf16.msra.mxu0 %v7595_v17  ;;  %2839 = vmatpush1.bf16.msra.mxu1 %v7596_v13 }
 0x592   : > { %2799 = vmatprep.subr.bf16.mxu0 %v7597_v20  ;;  %2840 = vmatprep.subr.bf16.mxu1 %v7598_v18 }
 0x595   : > { %2800 = vmatpush1.bf16.msra.mxu0 %v7599_v15  ;;  %2841 = vmatpush1.bf16.msra.mxu1 %v7600_v19 }
 0x596   : > { %2801 = vmatprep.subr.bf16.mxu0 %v7601_v44  ;;  %2842 = vmatprep.subr.bf16.mxu1 %v7688_v40 }
 0x599   : > { %2802 = vmatpush1.bf16.msra.mxu0 %v7689_v56  ;;  %2843 = vmatpush1.bf16.msra.mxu1 %v7690_v51 }
 0x59a   : > { %2803 = vmatprep.subr.bf16.mxu0 %v7691_v49  ;;  %2844 = vmatprep.subr.bf16.mxu1 %v7692_v48 }
 0x59d   : > { %2804 = vmatpush1.bf16.msra.mxu0 %v7693_v43  ;;  %2845 = vmatpush1.bf16.msra.mxu1 %v7694_v10 }
 0x59e   : > { %2805 = vmatprep.subr.bf16.mxu0 %v7695_v12  ;;  %2846 = vmatprep.subr.bf16.mxu1 %v7696_v59 }
 0x5a1   : > { %2806 = vmatpush1.bf16.msra.mxu0 %v7697_v1  ;;  %2847 = vmatpush1.bf16.msra.mxu1 %v7698_v42 }
 0x5a2   : > { %2807 = vmatprep.subr.bf16.mxu0 %v7785_v55  ;;  %2848 = vmatprep.subr.bf16.mxu1 %v7786_v16 }
 0x5a5   : > { %2808 = vmatpush1.bf16.msra.mxu0 %v7787_v25  ;;  %2849 = vmatpush1.bf16.msra.mxu1 %v7788_v7 }
 0x5a6   : > { %2809 = vmatprep.subr.bf16.mxu0 %v7703_v35  ;;  %2850 = vmatprep.subr.bf16.mxu1 %v7704_v4 }
 0x5a9   : > { %2810 = vmatpush1.bf16.msra.mxu0 %v7705_v29  ;;  %2851 = vmatpush1.bf16.msra.mxu1 %v7789_v53 }
 0x5aa   : > { %2811 = vmatprep.subr.bf16.mxu0 %v7707_v8  ;;  %2852 = vmatprep.subr.bf16.mxu1 %v7708_v57 }
 0x5ad   : > { %2812 = vmatpush1.bf16.msra.mxu0 %v7709_v38  ;;  %2853 = vmatpush1.bf16.msra.mxu1 %v7710_v2 }
 0x5ae   : > { %2813 = vmatprep.subr.bf16.mxu0 %v7711_v58  ;;  %2854 = vmatprep.subr.bf16.mxu1 %v7712_v41 }
 0x5b1   : > { %2814 = vmatpush1.bf16.msra.mxu0 %v7713_v3  ;;  %2855 = vmatpush1.bf16.msra.mxu1 %v7628_v30 }
 0x5b2   : > { %2815 = vmatprep.subr.bf16.mxu0 %v7629_v31  ;;  %2856 = vmatprep.subr.bf16.mxu1 %v7882_v14 }
 0x5b5   : > { %2816 = vmatpush1.bf16.msra.mxu0 %v7883_v54  ;;  %2857 = vmatpush1.bf16.msra.mxu1 %v7884_v47  ;;  %v7976_v47 = vld [vmem:[#allocation180_spill] sm:$0xff] }
 0x5b6   : > { %2817 = vmatprep.subr.bf16.mxu0 %v7885_v33  ;;  %2858 = vmatprep.subr.bf16.mxu1 %v7886_v9 }
 0x5b9   : > { %2818 = vmatpush1.bf16.msra.mxu0 %v7887_v63  ;;  %2859 = vmatpush1.bf16.msra.mxu1 %v7888_v27 }
 0x5ba   : > { %2819 = vmatprep.subr.bf16.mxu0 %v7889_v39  ;;  %2860 = vmatprep.subr.bf16.mxu1 %v7890_v21  ;;  %v7973_v21 = vld [vmem:[#allocation151_spill] sm:$0xff]  ;;  %v7974_v39 = vld [vmem:[#allocation154_spill] sm:$0xff] }
 0x5bd   : > { %2820 = vmatpush1.bf16.msra.mxu0 %v7891_v37  ;;  %2861 = vmatpush1.bf16.msra.mxu1 %v7892_v60  ;;  %v7972_v60 = vld [vmem:[#allocation152_spill] sm:$0xff] }
 0x5be   : > { %2821 = vmatprep.subr.bf16.mxu0 %v7893_v6  ;;  %2862 = vmatprep.subr.bf16.mxu1 %v7894_v24  ;;  %v7904_v6 = vld [vmem:[#allocation137_spill] sm:$0xff]  ;;  %v7905_v24 = vld [vmem:[#allocation10_spill] sm:$0xff] }
 0x5c1   : > { %2822 = vmatpush1.bf16.msra.mxu0 %v7895_v62  ;;  %2863 = vmatpush1.bf16.msra.mxu1 %v7896_v22  ;;  %v7906_v62 = vld [vmem:[#allocation11_spill] sm:$0xff]  ;;  %v7971_v22 = vld [vmem:[#allocation150_spill] sm:$0xff] }
 0x5c2   : > { %2823 = vmatprep.subr.bf16.mxu0 %v7897_v34  ;;  %2864 = vmatprep.subr.bf16.mxu1 %v7898_v11  ;;  %v7907_v11 = vld [vmem:[#allocation12_spill] sm:$0xff]  ;;  %v7916_v34 = vld [vmem:[#allocation21_spill] sm:$0xff] }
 0x5c5   : > { %2824 = vmatpush1.bf16.msra.mxu0 %v7899_v50  ;;  %2865 = vmatpush1.bf16.msra.mxu1 %v7900_v28  ;;  %v7908_v50 = vld [vmem:[#allocation13_spill] sm:$0xff]  ;;  %v7909_v28 = vld [vmem:[#allocation14_spill] sm:$0xff] }
 0x5c6   : > { %2825 = vmatprep.subr.bf16.mxu0 %v7901_v32  ;;  %2866 = vmatprep.subr.bf16.mxu1 %v7902_v26  ;;  %v7910_v32 = vld [vmem:[#allocation15_spill] sm:$0xff]  ;;  %v7911_v26 = vld [vmem:[#allocation16_spill] sm:$0xff] }
 0x5c9   : > { %2826 = vmatpush1.bf16.msra.mxu0 %v7903_v36  ;;  %2867 = vmatpush1.bf16.msra.mxu1 %v7904_v6  ;;  %v7912_v36 = vld [vmem:[#allocation17_spill] sm:$0xff]  ;;  %v7913_v6 = vld [vmem:[#allocation18_spill] sm:$0xff] }
 0x5ca   : > { %2934 = vmatprep.subr.bf16.mxu0 %v7905_v24  ;;  %2975 = vmatprep.subr.bf16.mxu1 %v7906_v62  ;;  %v7914_v24 = vld [vmem:[#allocation19_spill] sm:$0xff]  ;;  %v7915_v62 = vld [vmem:[#allocation20_spill] sm:$0xff] }
 0x5cc   : > { %2828 = vmatmul.mubr.bf16.vlgmr.msra.gmra.mrb[68].mxu0 %v6397_v52  ;;  %2869 = vmatmul.mubr.bf16.vlgmr.msra.gmra.mrb[68].mxu1 %v6397_v52  ;;  %v7917_v52 = vld [vmem:[#allocation22_spill] sm:$0xff] }
 0x5cd   : > { %2935 = vmatpush1.bf16.msra.mxu0 %v7907_v11  ;;  %2976 = vmatpush1.bf16.msra.mxu1 %v7908_v50  ;;  %v7918_v11 = vld [vmem:[#allocation23_spill] sm:$0xff]  ;;  %v7919_v50 = vld [vmem:[#allocation24_spill] sm:$0xff] }
 0x5ce   : > { %2936 = vmatprep.subr.bf16.mxu0 %v7909_v28  ;;  %2977 = vmatprep.subr.bf16.mxu1 %v7910_v32  ;;  %v7920_v28 = vld [vmem:[#allocation25_spill] sm:$0xff]  ;;  %v7921_v32 = vld [vmem:[#allocation26_spill] sm:$0xff] }
 0x5d1   : > { %2937 = vmatpush1.bf16.msra.mxu0 %v7911_v26  ;;  %2978 = vmatpush1.bf16.msra.mxu1 %v7912_v36  ;;  %v7922_v26 = vld [vmem:[#allocation27_spill] sm:$0xff]  ;;  %v7923_v36 = vld [vmem:[#allocation28_spill] sm:$0xff] }
 0x5d2   : > { %2938 = vmatprep.subr.bf16.mxu0 %v7913_v6  ;;  %2979 = vmatprep.subr.bf16.mxu1 %v7914_v24  ;;  %v7924_v6 = vld [vmem:[#allocation29_spill] sm:$0xff]  ;;  %v7925_v24 = vld [vmem:[#allocation30_spill] sm:$0xff] }
 0x5d5   : > { %2939 = vmatpush1.bf16.msra.mxu0 %v7915_v62  ;;  %2980 = vmatpush1.bf16.msra.mxu1 %v7916_v34  ;;  %v7926_v62 = vld [vmem:[#allocation31_spill] sm:$0xff]  ;;  %v7927_v34 = vld [vmem:[#allocation32_spill] sm:$0xff] }
 0x5d6   : > { %2940 = vmatprep.subr.bf16.mxu0 %v7917_v52  ;;  %2981 = vmatprep.subr.bf16.mxu1 %v7918_v11  ;;  %v7928_v52 = vld [vmem:[#allocation33_spill] sm:$0xff]  ;;  %v7929_v11 = vld [vmem:[#allocation34_spill] sm:$0xff] }
 0x5d9   : > { %2941 = vmatpush1.bf16.msra.mxu0 %v7919_v50  ;;  %2982 = vmatpush1.bf16.msra.mxu1 %v7920_v28  ;;  %v7930_v50 = vld [vmem:[#allocation35_spill] sm:$0xff]  ;;  %v7931_v28 = vld [vmem:[#allocation36_spill] sm:$0xff] }
 0x5da   : > { %2942 = vmatprep.subr.bf16.mxu0 %v7921_v32  ;;  %2983 = vmatprep.subr.bf16.mxu1 %v7922_v26  ;;  %v7932_v32 = vld [vmem:[#allocation37_spill] sm:$0xff]  ;;  %v7933_v26 = vld [vmem:[#allocation38_spill] sm:$0xff] }
 0x5dd   : > { %2943 = vmatpush1.bf16.msra.mxu0 %v7923_v36  ;;  %2984 = vmatpush1.bf16.msra.mxu1 %v7924_v6  ;;  %v7934_v36 = vld [vmem:[#allocation39_spill] sm:$0xff]  ;;  %v7935_v6 = vld [vmem:[#allocation40_spill] sm:$0xff] }
 0x5de   : > { %2944 = vmatprep.subr.bf16.mxu0 %v7925_v24  ;;  %2985 = vmatprep.subr.bf16.mxu1 %v7926_v62  ;;  %v7936_v24 = vld [vmem:[#allocation41_spill] sm:$0xff]  ;;  %v7937_v62 = vld [vmem:[#allocation42_spill] sm:$0xff] }
 0x5e1   : > { %2945 = vmatpush1.bf16.msra.mxu0 %v7927_v34  ;;  %2986 = vmatpush1.bf16.msra.mxu1 %v7928_v52  ;;  %v7938_v34 = vld [vmem:[#allocation43_spill] sm:$0xff]  ;;  %v7939_v52 = vld [vmem:[#allocation44_spill] sm:$0xff] }
 0x5e2   : > { %2946 = vmatprep.subr.bf16.mxu0 %v7929_v11  ;;  %2987 = vmatprep.subr.bf16.mxu1 %v7930_v50  ;;  %v7940_v11 = vld [vmem:[#allocation45_spill] sm:$0xff]  ;;  %v7941_v50 = vld [vmem:[#allocation46_spill] sm:$0xff] }
 0x5e5   : > { %2947 = vmatpush1.bf16.msra.mxu0 %v7931_v28  ;;  %2988 = vmatpush1.bf16.msra.mxu1 %v7932_v32  ;;  %v7942_v28 = vld [vmem:[#allocation47_spill] sm:$0xff]  ;;  %v7943_v32 = vld [vmem:[#allocation48_spill] sm:$0xff] }
 0x5e6   : > { %2948 = vmatprep.subr.bf16.mxu0 %v7933_v26  ;;  %2989 = vmatprep.subr.bf16.mxu1 %v7934_v36  ;;  %v7944_v26 = vld [vmem:[#allocation49_spill] sm:$0xff]  ;;  %v7945_v36 = vld [vmem:[#allocation50_spill] sm:$0xff] }
 0x5e9   : > { %2949 = vmatpush1.bf16.msra.mxu0 %v7935_v6  ;;  %2990 = vmatpush1.bf16.msra.mxu1 %v7936_v24  ;;  %v7946_v6 = vld [vmem:[#allocation51_spill] sm:$0xff]  ;;  %v7947_v24 = vld [vmem:[#allocation52_spill] sm:$0xff] }
 0x5ea   : > { %2950 = vmatprep.subr.bf16.mxu0 %v7937_v62  ;;  %2991 = vmatprep.subr.bf16.mxu1 %v7938_v34  ;;  %v7948_v62 = vld [vmem:[#allocation53_spill] sm:$0xff]  ;;  %v7949_v34 = vld [vmem:[#allocation54_spill] sm:$0xff] }
 0x5ed   : > { %2951 = vmatpush1.bf16.msra.mxu0 %v7939_v52  ;;  %2992 = vmatpush1.bf16.msra.mxu1 %v7940_v11  ;;  %v7950_v52 = vld [vmem:[#allocation55_spill] sm:$0xff]  ;;  %v7951_v11 = vld [vmem:[#allocation56_spill] sm:$0xff] }
 0x5ee   : > { %2952 = vmatprep.subr.bf16.mxu0 %v7941_v50  ;;  %2993 = vmatprep.subr.bf16.mxu1 %v7942_v28  ;;  %v7952_v50 = vld [vmem:[#allocation57_spill] sm:$0xff]  ;;  %v7953_v28 = vld [vmem:[#allocation58_spill] sm:$0xff] }
 0x5f1   : > { %2953 = vmatpush1.bf16.msra.mxu0 %v7943_v32  ;;  %2994 = vmatpush1.bf16.msra.mxu1 %v7944_v26  ;;  %v7954_v32 = vld [vmem:[#allocation59_spill] sm:$0xff]  ;;  %v7955_v26 = vld [vmem:[#allocation60_spill] sm:$0xff] }
 0x5f2   : > { %2954 = vmatprep.subr.bf16.mxu0 %v7945_v36  ;;  %2995 = vmatprep.subr.bf16.mxu1 %v7946_v6  ;;  %v7956_v36 = vld [vmem:[#allocation61_spill] sm:$0xff]  ;;  %v7957_v6 = vld [vmem:[#allocation62_spill] sm:$0xff] }
 0x5f5   : > { %2955 = vmatpush1.bf16.msra.mxu0 %v7947_v24  ;;  %2996 = vmatpush1.bf16.msra.mxu1 %v7948_v62  ;;  %v7958_v24 = vld [vmem:[#allocation63_spill] sm:$0xff]  ;;  %v7959_v62 = vld [vmem:[#allocation64_spill] sm:$0xff] }
 0x5f6   : > { %2956 = vmatprep.subr.bf16.mxu0 %v7949_v34  ;;  %2997 = vmatprep.subr.bf16.mxu1 %v7950_v52  ;;  %v7960_v34 = vld [vmem:[#allocation65_spill] sm:$0xff]  ;;  %v7961_v52 = vld [vmem:[#allocation66_spill] sm:$0xff] }
 0x5f9   : > { %2957 = vmatpush1.bf16.msra.mxu0 %v7951_v11  ;;  %2998 = vmatpush1.bf16.msra.mxu1 %v7952_v50  ;;  %v7962_v11 = vld [vmem:[#allocation67_spill] sm:$0xff]  ;;  %v7963_v50 = vld [vmem:[#allocation68_spill] sm:$0xff] }
 0x5fa   : > { %2958 = vmatprep.subr.bf16.mxu0 %v7953_v28  ;;  %2999 = vmatprep.subr.bf16.mxu1 %v7954_v32  ;;  %v7964_v28 = vld [vmem:[#allocation69_spill] sm:$0xff]  ;;  %v7965_v32 = vld [vmem:[#allocation70_spill] sm:$0xff] }
 0x5fd   : > { %2959 = vmatpush1.bf16.msra.mxu0 %v7955_v26  ;;  %3000 = vmatpush1.bf16.msra.mxu1 %v7956_v36  ;;  %v7966_v26 = vld [vmem:[#allocation71_spill] sm:$0xff]  ;;  %v7967_v36 = vld [vmem:[#allocation72_spill] sm:$0xff] }
 0x5fe   : > { %2960 = vmatprep.subr.bf16.mxu0 %v7957_v6  ;;  %3001 = vmatprep.subr.bf16.mxu1 %v7958_v24  ;;  %v7968_v6 = vld [vmem:[#allocation73_spill] sm:$0xff]  ;;  %v7969_v24 = vld [vmem:[#allocation74_spill] sm:$0xff] }
 0x601   : > { %2961 = vmatpush1.bf16.msra.mxu0 %v7959_v62  ;;  %3002 = vmatpush1.bf16.msra.mxu1 %v7960_v34  ;;  %v7970_v62 = vld [vmem:[#allocation75_spill] sm:$0xff] }
 0x602   : > { %2962 = vmatprep.subr.bf16.mxu0 %v7961_v52  ;;  %3003 = vmatprep.subr.bf16.mxu1 %v7962_v11 }
 0x605   : > { %2963 = vmatpush1.bf16.msra.mxu0 %v7963_v50  ;;  %3004 = vmatpush1.bf16.msra.mxu1 %v7964_v28 }
 0x606   : > { %2964 = vmatprep.subr.bf16.mxu0 %v7965_v32  ;;  %3005 = vmatprep.subr.bf16.mxu1 %v7966_v26 }
 0x609   : > { %2965 = vmatpush1.bf16.msra.mxu0 %v7967_v36  ;;  %3006 = vmatpush1.bf16.msra.mxu1 %v7968_v6 }
 0x60a   : > { %3016 = vmatprep.subr.bf16.mxu0 %v7969_v24  ;;  %3057 = vmatprep.subr.bf16.mxu1 %v7970_v62 }
 0x65f   : > { %v2747_v34 = vpop.f32.mrb[64].mxu0  ;;  %v2788_v52 = vpop.f32.mrb[64].mxu1 }
 0x660   : > { %v2877_v11 = vadd.f32 %v2747_v34, %v7971_v22  ;;  %v2879_v50 = vadd.f32 %v2788_v52, %v7972_v60  ;;  %v2749_v37 = vpop.f32.mrb[65].mxu0  ;;  %v2790_v28 = vpop.f32.mrb[65].mxu1  ;;  %v7975_v34 = vld [vmem:[#allocation178_spill] sm:$0xff] }
 0x661   : > { %v2878_v32 = vadd.f32 %v2749_v37, %v7973_v21  ;;  %v2880_v26 = vadd.f32 %v2790_v28, %v7974_v39  ;;  %v2751_v27 = vpop.f32.mrb[66].mxu0  ;;  %v2792_v36 = vpop.f32.mrb[66].mxu1 }
 0x662   : > { %v2752_v63 = vpop.f32.mrb[67].mxu0  ;;  %v2793_v6 = vpop.f32.mrb[67].mxu1  ;;  %v2893_v9 = vmul.f32 0.5, %v2879_v50  ;;  %v2885_v33 = vmul.f32 0.5, %v2877_v11  ;;  %v7977_v27 = vld [vmem:[#allocation179_spill] sm:$0xff] }
 0x663   : > { %v2894_v24 = vmul.f32 0.5, %v2880_v26  ;;  %v2886_v62 = vmul.f32 0.5, %v2878_v32  ;;  %v7978_v63 = vld [vmem:[#allocation182_spill] sm:$0xff] }
 0x664   : > { %4645 = vtanh.f32 %v2893_v9 }
 0x665   : > { %4647 = vtanh.f32 %v2894_v24 }
 0x666   : > { %4649 = vtanh.f32 %v2885_v33 }
 0x667   : > { %4651 = vtanh.f32 %v2886_v62 }
 0x66e   : > { %v4646_v11 = vpop.eup %4645 }
 0x66f   : > { %v4648_v33 = vpop.eup %4647  ;;  %v2897_v36 = vmul.f32 0.5, %v4646_v11 }
 0x670   : > { %v4650_v62 = vpop.eup %4649 }
 0x671   : > { %v4652_v32 = vpop.eup %4651  ;;  %v2899_v14 = vadd.f32 0.5, %v2897_v36 }
 0x672   : > { %v2890_v54 = vmul.f32 0.5, %v4652_v32 }
 0x69f   : > { %v2829_v22 = vpop.f32.mrb[68].mxu0  ;;  %v2870_v60 = vpop.f32.mrb[68].mxu1 }
 0x6a0   : > { %v2881_v52 = vadd.f32 %v2829_v22, %v7975_v34  ;;  %v2883_v21 = vadd.f32 %v2870_v60, %v7976_v47  ;;  %v2831_v37 = vpop.f32.mrb[69].mxu0  ;;  %v2872_v39 = vpop.f32.mrb[69].mxu1  ;;  %v2898_v34 = vmul.f32 0.5, %v4648_v33  ;;  %v2889_v60 = vmul.f32 0.5, %v4650_v62 }
 0x6a1   : > { %v2882_v28 = vadd.f32 %v2831_v37, %v7977_v27  ;;  %v2884_v6 = vadd.f32 %v2872_v39, %v7978_v63  ;;  %v2833_v50 = vpop.f32.mrb[70].mxu0  ;;  %v2874_v26 = vpop.f32.mrb[70].mxu1  ;;  %v2892_v63 = vadd.f32 0.5, %v2890_v54 }
 0x6a2   : > { %4653 = vtanh.f32 %v2881_v52  ;;  %v2834_v9 = vpop.f32.mrb[71].mxu0  ;;  %v2875_v24 = vpop.f32.mrb[71].mxu1  ;;  %v2903_v22 = vmul.f32 0.5, %v2883_v21  ;;  %v2900_v37 = vadd.f32 0.5, %v2898_v34  ;;  %v2891_v39 = vadd.f32 0.5, %v2889_v60  ;;  %v7980_v60 = vld [vmem:[#allocation116_spill] sm:$0xff] }
 0x6a3   : > { %4655 = vtanh.f32 %v2882_v28  ;;  %v2904_v47 = vmul.f32 0.5, %v2884_v6  ;;  %v2911_v50 = vmul.f32 %v2899_v14, %v6391_v5 }
 0x6a4   : > { %4657 = vtanh.f32 %v2903_v22  ;;  %v2912_v28 = vmul.f32 %v2900_v37, %v6393_v0  ;;  %v7981_v37 = vld [vmem:[#allocation117_spill] sm:$0xff] }
 0x6a5   : > { %4659 = vtanh.f32 %v2904_v47  ;;  %v7979_v47 = vld [vmem:[#allocation115_spill] sm:$0xff] }
 0x6ac   : > { %v4654_v27 = vpop.eup %4653 }
 0x6ad   : > { %v4656_v52 = vpop.eup %4655  ;;  %v2913_v26 = vmul.f32 %v4654_v27, %v2891_v39  ;;  %v7982_v39 = vld [vmem:[#allocation118_spill] sm:$0xff]  ;;  %v7983_v27 = vld [vmem:[#allocation119_spill] sm:$0xff] }
 0x6ae   : > { %v2914_v9 = vmul.f32 %v4656_v52, %v2892_v63  ;;  %v4658_v6 = vpop.eup %4657  ;;  %v7984_v63 = vld [vmem:[#allocation120_spill] sm:$0xff]  ;;  %v7985_v52 = vld [vmem:[#allocation121_spill] sm:$0xff] }
 0x6af   : > { %v6541_v11 = vadd.f32 %v2913_v26, %v2911_v50  ;;  %v4660_v24 = vpop.eup %4659  ;;  %v2907_v33 = vmul.f32 0.5, %v4658_v6  ;;  %v7986_v50 = vld [vmem:[#allocation122_spill] sm:$0xff]  ;;  %v7987_v26 = vld [vmem:[#allocation123_spill] sm:$0xff] }
 0x6b0   : > { %v6543_v21 = vadd.f32 %v2914_v9, %v2912_v28  ;;  %v2908_v62 = vmul.f32 0.5, %v4660_v24  ;;  %v7988_v28 = vld [vmem:[#allocation124_spill] sm:$0xff]  ;;  %v7989_v9 = vld [vmem:[#allocation125_spill] sm:$0xff]  ;;  %v7990_v6 = vld [vmem:[#allocation126_spill] sm:$0xff] }
 0x6b1   : > { %4661 = vtanh.f32 %v6541_v11  ;;  %v2909_v54 = vadd.f32 0.5, %v2907_v33  ;;  %v7991_v24 = vld [vmem:[#allocation127_spill] sm:$0xff]  ;;  %v7992_v33 = vld [vmem:[#allocation128_spill] sm:$0xff] }
 0x6b2   : > { %4663 = vtanh.f32 %v6543_v21  ;;  %v2910_v36 = vadd.f32 0.5, %v2908_v62  ;;  %v7993_v62 = vld [vmem:[#allocation129_spill] sm:$0xff] }
 0x6bb   : > { %v4662_v32 = vpop.eup %4661 }
 0x6bc   : > { %v4664_v5 = vpop.eup %4663  ;;  %v2919_v14 = vmul.f32 %v4662_v32, %v2909_v54  ;;  %v7994_v54 = vld [vmem:[#allocation130_spill] sm:$0xff]  ;;  %v7995_v32 = vld [vmem:[#allocation131_spill] sm:$0xff] }
 0x6bd   : > { %v2920_v22 = vmul.f32 %v4664_v5, %v2910_v36  ;;  %v7996_v36 = vld [vmem:[#allocation132_spill] sm:$0xff]  ;;  %v7997_v5 = vld [vmem:[#allocation133_spill] sm:$0xff] }
 0x6be   : > { %v6547_v34 = vpack.c.bf16 %v2919_v14, %v2919_v14  ;;  %v7998_v14 = vld [vmem:[#allocation134_spill] sm:$0xff] }
 0x6bf   : > { %v2933_v0 = vpack.c.bf16 %v2920_v22, %v2920_v22  ;;  %v7999_v22 = vld [vmem:[#allocation135_spill] sm:$0xff] }
 0x6c1   : > { %2966 = vmatprep.mubr.bf16.mxu0 %v2933_v0  ;;  %3007 = vmatprep.mubr.bf16.mxu1 %v2933_v0 }
 0x6c2   : > { %2967 = vmatmul.mubr.bf16.vlgmr.msra.gmra.mrb[72].mxu0 %v6547_v34  ;;  %3008 = vmatmul.mubr.bf16.vlgmr.msra.gmra.mrb[72].mxu1 %v6547_v34 }
 0x6c3   : > { %3017 = vmatpush1.bf16.msra.mxu0 %v7591_v45  ;;  %3058 = vmatpush1.bf16.msra.mxu1 %v7592_v23 }
 0x6c4   : > { %3048 = vmatprep.mubr.bf16.mxu0 %v2933_v0  ;;  %3089 = vmatprep.mubr.bf16.mxu1 %v2933_v0  ;;  %v8000_v0 = vld [vmem:[#allocation136_spill] sm:$0xff] }
 0x6c5   : > { %3018 = vmatprep.subr.bf16.mxu0 %v7593_v46  ;;  %3059 = vmatprep.subr.bf16.mxu1 %v7594_v61 }
 0x6c7   : > { %3019 = vmatpush1.bf16.msra.mxu0 %v7595_v17  ;;  %3060 = vmatpush1.bf16.msra.mxu1 %v7596_v13 }
 0x6c8   : > { %3020 = vmatprep.subr.bf16.mxu0 %v7597_v20  ;;  %3061 = vmatprep.subr.bf16.mxu1 %v7598_v18 }
 0x6cb   : > { %3021 = vmatpush1.bf16.msra.mxu0 %v7599_v15  ;;  %3062 = vmatpush1.bf16.msra.mxu1 %v7600_v19 }
 0x6cc   : > { %3022 = vmatprep.subr.bf16.mxu0 %v7601_v44  ;;  %3063 = vmatprep.subr.bf16.mxu1 %v7688_v40 }
 0x6cf   : > { %3023 = vmatpush1.bf16.msra.mxu0 %v7689_v56  ;;  %3064 = vmatpush1.bf16.msra.mxu1 %v7690_v51 }
 0x6d0   : > { %3024 = vmatprep.subr.bf16.mxu0 %v7691_v49  ;;  %3065 = vmatprep.subr.bf16.mxu1 %v7692_v48 }
 0x6d3   : > { %3025 = vmatpush1.bf16.msra.mxu0 %v7693_v43  ;;  %3066 = vmatpush1.bf16.msra.mxu1 %v7694_v10 }
 0x6d4   : > { %3026 = vmatprep.subr.bf16.mxu0 %v7695_v12  ;;  %3067 = vmatprep.subr.bf16.mxu1 %v7696_v59 }
 0x6d7   : > { %3027 = vmatpush1.bf16.msra.mxu0 %v7697_v1  ;;  %3068 = vmatpush1.bf16.msra.mxu1 %v7698_v42 }
 0x6d8   : > { %3028 = vmatprep.subr.bf16.mxu0 %v7785_v55  ;;  %3069 = vmatprep.subr.bf16.mxu1 %v7786_v16 }
 0x6db   : > { %3029 = vmatpush1.bf16.msra.mxu0 %v7787_v25  ;;  %3070 = vmatpush1.bf16.msra.mxu1 %v7788_v7 }
 0x6dc   : > { %3030 = vmatprep.subr.bf16.mxu0 %v7703_v35  ;;  %3071 = vmatprep.subr.bf16.mxu1 %v7704_v4 }
 0x6df   : > { %3031 = vmatpush1.bf16.msra.mxu0 %v7705_v29  ;;  %3072 = vmatpush1.bf16.msra.mxu1 %v7789_v53 }
 0x6e0   : > { %3032 = vmatprep.subr.bf16.mxu0 %v7707_v8  ;;  %3073 = vmatprep.subr.bf16.mxu1 %v7708_v57 }
 0x6e3   : > { %3033 = vmatpush1.bf16.msra.mxu0 %v7709_v38  ;;  %3074 = vmatpush1.bf16.msra.mxu1 %v7710_v2 }
 0x6e4   : > { %3034 = vmatprep.subr.bf16.mxu0 %v7711_v58  ;;  %3075 = vmatprep.subr.bf16.mxu1 %v7712_v41 }
 0x6e7   : > { %3035 = vmatpush1.bf16.msra.mxu0 %v7713_v3  ;;  %3076 = vmatpush1.bf16.msra.mxu1 %v7628_v30 }
 0x6e8   : > { %3036 = vmatprep.subr.bf16.mxu0 %v7629_v31  ;;  %3077 = vmatprep.subr.bf16.mxu1 %v7979_v47 }
 0x6eb   : > { %3037 = vmatpush1.bf16.msra.mxu0 %v7980_v60  ;;  %3078 = vmatpush1.bf16.msra.mxu1 %v7981_v37  ;;  %v8073_v37 = vld [vmem:[#allocation184_spill] sm:$0xff] }
 0x6ec   : > { %3038 = vmatprep.subr.bf16.mxu0 %v7982_v39  ;;  %3079 = vmatprep.subr.bf16.mxu1 %v7983_v27 }
 0x6ef   : > { %3039 = vmatpush1.bf16.msra.mxu0 %v7984_v63  ;;  %3080 = vmatpush1.bf16.msra.mxu1 %v7985_v52 }
 0x6f0   : > { %3040 = vmatprep.subr.bf16.mxu0 %v7986_v50  ;;  %3081 = vmatprep.subr.bf16.mxu1 %v7987_v26  ;;  %v8070_v26 = vld [vmem:[#allocation155_spill] sm:$0xff]  ;;  %v8071_v50 = vld [vmem:[#allocation157_spill] sm:$0xff] }
 0x6f3   : > { %3041 = vmatpush1.bf16.msra.mxu0 %v7988_v28  ;;  %3082 = vmatpush1.bf16.msra.mxu1 %v7989_v9  ;;  %v8069_v9 = vld [vmem:[#allocation156_spill] sm:$0xff] }
 0x6f4   : > { %3042 = vmatprep.subr.bf16.mxu0 %v7990_v6  ;;  %3083 = vmatprep.subr.bf16.mxu1 %v7991_v24  ;;  %v8001_v6 = vld [vmem:[#allocation137_spill] sm:$0xff]  ;;  %v8002_v24 = vld [vmem:[#allocation10_spill] sm:$0xff] }
 0x6f7   : > { %3043 = vmatpush1.bf16.msra.mxu0 %v7992_v33  ;;  %3084 = vmatpush1.bf16.msra.mxu1 %v7993_v62  ;;  %v8003_v33 = vld [vmem:[#allocation11_spill] sm:$0xff]  ;;  %v8068_v62 = vld [vmem:[#allocation153_spill] sm:$0xff] }
 0x6f8   : > { %3044 = vmatprep.subr.bf16.mxu0 %v7994_v54  ;;  %3085 = vmatprep.subr.bf16.mxu1 %v7995_v32  ;;  %v8004_v32 = vld [vmem:[#allocation12_spill] sm:$0xff]  ;;  %v8013_v54 = vld [vmem:[#allocation21_spill] sm:$0xff] }
 0x6fb   : > { %3045 = vmatpush1.bf16.msra.mxu0 %v7996_v36  ;;  %3086 = vmatpush1.bf16.msra.mxu1 %v7997_v5  ;;  %v8005_v36 = vld [vmem:[#allocation13_spill] sm:$0xff]  ;;  %v8006_v5 = vld [vmem:[#allocation14_spill] sm:$0xff] }
 0x6fc   : > { %3046 = vmatprep.subr.bf16.mxu0 %v7998_v14  ;;  %3087 = vmatprep.subr.bf16.mxu1 %v7999_v22  ;;  %v8007_v14 = vld [vmem:[#allocation15_spill] sm:$0xff]  ;;  %v8008_v22 = vld [vmem:[#allocation16_spill] sm:$0xff] }
 0x6ff   : > { %3047 = vmatpush1.bf16.msra.mxu0 %v8000_v0  ;;  %3088 = vmatpush1.bf16.msra.mxu1 %v8001_v6  ;;  %v8009_v0 = vld [vmem:[#allocation17_spill] sm:$0xff]  ;;  %v8010_v6 = vld [vmem:[#allocation18_spill] sm:$0xff] }
 0x700   : > { %3155 = vmatprep.subr.bf16.mxu0 %v8002_v24  ;;  %3196 = vmatprep.subr.bf16.mxu1 %v8003_v33  ;;  %v8011_v24 = vld [vmem:[#allocation19_spill] sm:$0xff]  ;;  %v8012_v33 = vld [vmem:[#allocation20_spill] sm:$0xff] }
 0x702   : > { %3049 = vmatmul.mubr.bf16.vlgmr.msra.gmra.mrb[76].mxu0 %v6547_v34  ;;  %3090 = vmatmul.mubr.bf16.vlgmr.msra.gmra.mrb[76].mxu1 %v6547_v34  ;;  %v8014_v34 = vld [vmem:[#allocation22_spill] sm:$0xff] }
 0x703   : > { %3156 = vmatpush1.bf16.msra.mxu0 %v8004_v32  ;;  %3197 = vmatpush1.bf16.msra.mxu1 %v8005_v36  ;;  %v8015_v32 = vld [vmem:[#allocation23_spill] sm:$0xff]  ;;  %v8016_v36 = vld [vmem:[#allocation24_spill] sm:$0xff] }
 0x704   : > { %3157 = vmatprep.subr.bf16.mxu0 %v8006_v5  ;;  %3198 = vmatprep.subr.bf16.mxu1 %v8007_v14  ;;  %v8017_v5 = vld [vmem:[#allocation25_spill] sm:$0xff]  ;;  %v8018_v14 = vld [vmem:[#allocation26_spill] sm:$0xff] }
 0x707   : > { %3158 = vmatpush1.bf16.msra.mxu0 %v8008_v22  ;;  %3199 = vmatpush1.bf16.msra.mxu1 %v8009_v0  ;;  %v8019_v22 = vld [vmem:[#allocation27_spill] sm:$0xff]  ;;  %v8020_v0 = vld [vmem:[#allocation28_spill] sm:$0xff] }
 0x708   : > { %3159 = vmatprep.subr.bf16.mxu0 %v8010_v6  ;;  %3200 = vmatprep.subr.bf16.mxu1 %v8011_v24  ;;  %v8021_v6 = vld [vmem:[#allocation29_spill] sm:$0xff]  ;;  %v8022_v24 = vld [vmem:[#allocation30_spill] sm:$0xff] }
 0x70b   : > { %3160 = vmatpush1.bf16.msra.mxu0 %v8012_v33  ;;  %3201 = vmatpush1.bf16.msra.mxu1 %v8013_v54  ;;  %v8023_v33 = vld [vmem:[#allocation31_spill] sm:$0xff]  ;;  %v8024_v54 = vld [vmem:[#allocation32_spill] sm:$0xff] }
 0x70c   : > { %3161 = vmatprep.subr.bf16.mxu0 %v8014_v34  ;;  %3202 = vmatprep.subr.bf16.mxu1 %v8015_v32  ;;  %v8025_v34 = vld [vmem:[#allocation33_spill] sm:$0xff]  ;;  %v8026_v32 = vld [vmem:[#allocation34_spill] sm:$0xff] }
 0x70f   : > { %3162 = vmatpush1.bf16.msra.mxu0 %v8016_v36  ;;  %3203 = vmatpush1.bf16.msra.mxu1 %v8017_v5  ;;  %v8027_v36 = vld [vmem:[#allocation35_spill] sm:$0xff]  ;;  %v8028_v5 = vld [vmem:[#allocation36_spill] sm:$0xff] }
 0x710   : > { %3163 = vmatprep.subr.bf16.mxu0 %v8018_v14  ;;  %3204 = vmatprep.subr.bf16.mxu1 %v8019_v22  ;;  %v8029_v14 = vld [vmem:[#allocation37_spill] sm:$0xff]  ;;  %v8030_v22 = vld [vmem:[#allocation38_spill] sm:$0xff] }
 0x713   : > { %3164 = vmatpush1.bf16.msra.mxu0 %v8020_v0  ;;  %3205 = vmatpush1.bf16.msra.mxu1 %v8021_v6  ;;  %v8031_v0 = vld [vmem:[#allocation39_spill] sm:$0xff]  ;;  %v8032_v6 = vld [vmem:[#allocation40_spill] sm:$0xff] }
 0x714   : > { %3165 = vmatprep.subr.bf16.mxu0 %v8022_v24  ;;  %3206 = vmatprep.subr.bf16.mxu1 %v8023_v33  ;;  %v8033_v24 = vld [vmem:[#allocation41_spill] sm:$0xff]  ;;  %v8034_v33 = vld [vmem:[#allocation42_spill] sm:$0xff] }
 0x717   : > { %3166 = vmatpush1.bf16.msra.mxu0 %v8024_v54  ;;  %3207 = vmatpush1.bf16.msra.mxu1 %v8025_v34  ;;  %v8035_v54 = vld [vmem:[#allocation43_spill] sm:$0xff]  ;;  %v8036_v34 = vld [vmem:[#allocation44_spill] sm:$0xff] }
 0x718   : > { %3167 = vmatprep.subr.bf16.mxu0 %v8026_v32  ;;  %3208 = vmatprep.subr.bf16.mxu1 %v8027_v36  ;;  %v8037_v32 = vld [vmem:[#allocation45_spill] sm:$0xff]  ;;  %v8038_v36 = vld [vmem:[#allocation46_spill] sm:$0xff] }
 0x71b   : > { %3168 = vmatpush1.bf16.msra.mxu0 %v8028_v5  ;;  %3209 = vmatpush1.bf16.msra.mxu1 %v8029_v14  ;;  %v8039_v5 = vld [vmem:[#allocation47_spill] sm:$0xff]  ;;  %v8040_v14 = vld [vmem:[#allocation48_spill] sm:$0xff] }
 0x71c   : > { %3169 = vmatprep.subr.bf16.mxu0 %v8030_v22  ;;  %3210 = vmatprep.subr.bf16.mxu1 %v8031_v0  ;;  %v8041_v22 = vld [vmem:[#allocation49_spill] sm:$0xff]  ;;  %v8042_v0 = vld [vmem:[#allocation50_spill] sm:$0xff] }
 0x71f   : > { %3170 = vmatpush1.bf16.msra.mxu0 %v8032_v6  ;;  %3211 = vmatpush1.bf16.msra.mxu1 %v8033_v24  ;;  %v8043_v6 = vld [vmem:[#allocation51_spill] sm:$0xff]  ;;  %v8044_v24 = vld [vmem:[#allocation52_spill] sm:$0xff] }
 0x720   : > { %3171 = vmatprep.subr.bf16.mxu0 %v8034_v33  ;;  %3212 = vmatprep.subr.bf16.mxu1 %v8035_v54  ;;  %v8045_v33 = vld [vmem:[#allocation53_spill] sm:$0xff]  ;;  %v8046_v54 = vld [vmem:[#allocation54_spill] sm:$0xff] }
 0x723   : > { %3172 = vmatpush1.bf16.msra.mxu0 %v8036_v34  ;;  %3213 = vmatpush1.bf16.msra.mxu1 %v8037_v32  ;;  %v8047_v34 = vld [vmem:[#allocation55_spill] sm:$0xff]  ;;  %v8048_v32 = vld [vmem:[#allocation56_spill] sm:$0xff] }
 0x724   : > { %3173 = vmatprep.subr.bf16.mxu0 %v8038_v36  ;;  %3214 = vmatprep.subr.bf16.mxu1 %v8039_v5  ;;  %v8049_v36 = vld [vmem:[#allocation57_spill] sm:$0xff]  ;;  %v8050_v5 = vld [vmem:[#allocation58_spill] sm:$0xff] }
 0x727   : > { %3174 = vmatpush1.bf16.msra.mxu0 %v8040_v14  ;;  %3215 = vmatpush1.bf16.msra.mxu1 %v8041_v22  ;;  %v8051_v14 = vld [vmem:[#allocation59_spill] sm:$0xff]  ;;  %v8052_v22 = vld [vmem:[#allocation60_spill] sm:$0xff] }
 0x728   : > { %3175 = vmatprep.subr.bf16.mxu0 %v8042_v0  ;;  %3216 = vmatprep.subr.bf16.mxu1 %v8043_v6  ;;  %v8053_v0 = vld [vmem:[#allocation61_spill] sm:$0xff]  ;;  %v8054_v6 = vld [vmem:[#allocation62_spill] sm:$0xff] }
 0x72b   : > { %3176 = vmatpush1.bf16.msra.mxu0 %v8044_v24  ;;  %3217 = vmatpush1.bf16.msra.mxu1 %v8045_v33  ;;  %v8055_v24 = vld [vmem:[#allocation63_spill] sm:$0xff]  ;;  %v8056_v33 = vld [vmem:[#allocation64_spill] sm:$0xff] }
 0x72c   : > { %3177 = vmatprep.subr.bf16.mxu0 %v8046_v54  ;;  %3218 = vmatprep.subr.bf16.mxu1 %v8047_v34  ;;  %v8057_v54 = vld [vmem:[#allocation65_spill] sm:$0xff]  ;;  %v8058_v34 = vld [vmem:[#allocation66_spill] sm:$0xff] }
 0x72f   : > { %3178 = vmatpush1.bf16.msra.mxu0 %v8048_v32  ;;  %3219 = vmatpush1.bf16.msra.mxu1 %v8049_v36  ;;  %v8059_v32 = vld [vmem:[#allocation67_spill] sm:$0xff]  ;;  %v8060_v36 = vld [vmem:[#allocation68_spill] sm:$0xff] }
 0x730   : > { %3179 = vmatprep.subr.bf16.mxu0 %v8050_v5  ;;  %3220 = vmatprep.subr.bf16.mxu1 %v8051_v14  ;;  %v8061_v5 = vld [vmem:[#allocation69_spill] sm:$0xff]  ;;  %v8062_v14 = vld [vmem:[#allocation70_spill] sm:$0xff] }
 0x733   : > { %3180 = vmatpush1.bf16.msra.mxu0 %v8052_v22  ;;  %3221 = vmatpush1.bf16.msra.mxu1 %v8053_v0  ;;  %v8063_v22 = vld [vmem:[#allocation71_spill] sm:$0xff]  ;;  %v8064_v0 = vld [vmem:[#allocation72_spill] sm:$0xff] }
 0x734   : > { %3181 = vmatprep.subr.bf16.mxu0 %v8054_v6  ;;  %3222 = vmatprep.subr.bf16.mxu1 %v8055_v24  ;;  %v8065_v6 = vld [vmem:[#allocation73_spill] sm:$0xff]  ;;  %v8066_v24 = vld [vmem:[#allocation74_spill] sm:$0xff] }
 0x737   : > { %3182 = vmatpush1.bf16.msra.mxu0 %v8056_v33  ;;  %3223 = vmatpush1.bf16.msra.mxu1 %v8057_v54  ;;  %v8067_v33 = vld [vmem:[#allocation75_spill] sm:$0xff] }
 0x738   : > { %3183 = vmatprep.subr.bf16.mxu0 %v8058_v34  ;;  %3224 = vmatprep.subr.bf16.mxu1 %v8059_v32 }
 0x73b   : > { %3184 = vmatpush1.bf16.msra.mxu0 %v8060_v36  ;;  %3225 = vmatpush1.bf16.msra.mxu1 %v8061_v5 }
 0x73c   : > { %3185 = vmatprep.subr.bf16.mxu0 %v8062_v14  ;;  %3226 = vmatprep.subr.bf16.mxu1 %v8063_v22 }
 0x73f   : > { %3186 = vmatpush1.bf16.msra.mxu0 %v8064_v0  ;;  %3227 = vmatpush1.bf16.msra.mxu1 %v8065_v6 }
 0x740   : > { %3237 = vmatprep.subr.bf16.mxu0 %v8066_v24  ;;  %3278 = vmatprep.subr.bf16.mxu1 %v8067_v33 }
 0x795   : > { %v2968_v54 = vpop.f32.mrb[72].mxu0  ;;  %v3009_v34 = vpop.f32.mrb[72].mxu1 }
 0x796   : > { %v3098_v32 = vadd.f32 %v2968_v54, %v8068_v62  ;;  %v3100_v36 = vadd.f32 %v3009_v34, %v8069_v9  ;;  %v2970_v28 = vpop.f32.mrb[73].mxu0  ;;  %v3011_v5 = vpop.f32.mrb[73].mxu1  ;;  %v8072_v54 = vld [vmem:[#allocation181_spill] sm:$0xff] }
 0x797   : > { %v3099_v14 = vadd.f32 %v2970_v28, %v8070_v26  ;;  %v3101_v22 = vadd.f32 %v3011_v5, %v8071_v50  ;;  %v2972_v52 = vpop.f32.mrb[74].mxu0  ;;  %v3013_v0 = vpop.f32.mrb[74].mxu1 }
 0x798   : > { %v2973_v63 = vpop.f32.mrb[75].mxu0  ;;  %v3014_v6 = vpop.f32.mrb[75].mxu1  ;;  %v3114_v27 = vmul.f32 0.5, %v3100_v36  ;;  %v3106_v39 = vmul.f32 0.5, %v3098_v32  ;;  %v8074_v52 = vld [vmem:[#allocation183_spill] sm:$0xff] }
 0x799   : > { %v3115_v24 = vmul.f32 0.5, %v3101_v22  ;;  %v3107_v33 = vmul.f32 0.5, %v3099_v14  ;;  %v8075_v63 = vld [vmem:[#allocation185_spill] sm:$0xff] }
 0x79a   : > { %4665 = vtanh.f32 %v3114_v27 }
 0x79b   : > { %4667 = vtanh.f32 %v3115_v24 }
 0x79c   : > { %4669 = vtanh.f32 %v3106_v39 }
 0x79d   : > { %4671 = vtanh.f32 %v3107_v33 }
 0x7a4   : > { %v4666_v32 = vpop.eup %4665 }
 0x7a5   : > { %v4668_v39 = vpop.eup %4667  ;;  %v3118_v0 = vmul.f32 0.5, %v4666_v32 }
 0x7a6   : > { %v4670_v33 = vpop.eup %4669 }
 0x7a7   : > { %v4672_v14 = vpop.eup %4671  ;;  %v3120_v47 = vadd.f32 0.5, %v3118_v0 }
 0x7a8   : > { %v3111_v60 = vmul.f32 0.5, %v4672_v14 }
 0x7d5   : > { %v3050_v62 = vpop.f32.mrb[76].mxu0  ;;  %v3091_v9 = vpop.f32.mrb[76].mxu1 }
 0x7d6   : > { %v3102_v34 = vadd.f32 %v3050_v62, %v8072_v54  ;;  %v3104_v26 = vadd.f32 %v3091_v9, %v8073_v37  ;;  %v3052_v28 = vpop.f32.mrb[77].mxu0  ;;  %v3093_v50 = vpop.f32.mrb[77].mxu1  ;;  %v3119_v54 = vmul.f32 0.5, %v4668_v39  ;;  %v3110_v9 = vmul.f32 0.5, %v4670_v33 }
 0x7d7   : > { %v3103_v5 = vadd.f32 %v3052_v28, %v8074_v52  ;;  %v3105_v6 = vadd.f32 %v3093_v50, %v8075_v63  ;;  %v3054_v36 = vpop.f32.mrb[78].mxu0  ;;  %v3095_v22 = vpop.f32.mrb[78].mxu1  ;;  %v3113_v63 = vadd.f32 0.5, %v3111_v60 }
 0x7d8   : > { %4673 = vtanh.f32 %v3102_v34  ;;  %v3055_v27 = vpop.f32.mrb[79].mxu0  ;;  %v3096_v24 = vpop.f32.mrb[79].mxu1  ;;  %v3124_v62 = vmul.f32 0.5, %v3104_v26  ;;  %v3121_v28 = vadd.f32 0.5, %v3119_v54  ;;  %v3112_v50 = vadd.f32 0.5, %v3110_v9  ;;  %v8077_v9 = vld [vmem:[#allocation116_spill] sm:$0xff] }
 0x7d9   : > { %4675 = vtanh.f32 %v3103_v5  ;;  %v3125_v37 = vmul.f32 0.5, %v3105_v6  ;;  %v3132_v36 = vmul.f32 %v3120_v47, %v6541_v11 }
 0x7da   : > { %4677 = vtanh.f32 %v3124_v62  ;;  %v3133_v5 = vmul.f32 %v3121_v28, %v6543_v21  ;;  %v8078_v28 = vld [vmem:[#allocation117_spill] sm:$0xff] }
 0x7db   : > { %4679 = vtanh.f32 %v3125_v37  ;;  %v8076_v37 = vld [vmem:[#allocation115_spill] sm:$0xff] }
 0x7e2   : > { %v4674_v52 = vpop.eup %4673 }
 0x7e3   : > { %v4676_v34 = vpop.eup %4675  ;;  %v3134_v22 = vmul.f32 %v4674_v52, %v3112_v50  ;;  %v8079_v50 = vld [vmem:[#allocation118_spill] sm:$0xff]  ;;  %v8080_v52 = vld [vmem:[#allocation119_spill] sm:$0xff] }
 0x7e4   : > { %v3135_v27 = vmul.f32 %v4676_v34, %v3113_v63  ;;  %v4678_v6 = vpop.eup %4677  ;;  %v8081_v63 = vld [vmem:[#allocation120_spill] sm:$0xff]  ;;  %v8082_v34 = vld [vmem:[#allocation121_spill] sm:$0xff] }
 0x7e5   : > { %v6691_v32 = vadd.f32 %v3134_v22, %v3132_v36  ;;  %v4680_v24 = vpop.eup %4679  ;;  %v3128_v39 = vmul.f32 0.5, %v4678_v6  ;;  %v8083_v36 = vld [vmem:[#allocation122_spill] sm:$0xff]  ;;  %v8084_v22 = vld [vmem:[#allocation123_spill] sm:$0xff] }
 0x7e6   : > { %v6693_v26 = vadd.f32 %v3135_v27, %v3133_v5  ;;  %v3129_v33 = vmul.f32 0.5, %v4680_v24  ;;  %v8085_v5 = vld [vmem:[#allocation124_spill] sm:$0xff]  ;;  %v8086_v27 = vld [vmem:[#allocation125_spill] sm:$0xff]  ;;  %v8087_v6 = vld [vmem:[#allocation126_spill] sm:$0xff] }
 0x7e7   : > { %4681 = vtanh.f32 %v6691_v32  ;;  %v3130_v60 = vadd.f32 0.5, %v3128_v39  ;;  %v8088_v24 = vld [vmem:[#allocation127_spill] sm:$0xff]  ;;  %v8089_v39 = vld [vmem:[#allocation128_spill] sm:$0xff] }
 0x7e8   : > { %4683 = vtanh.f32 %v6693_v26  ;;  %v3131_v0 = vadd.f32 0.5, %v3129_v33  ;;  %v8090_v33 = vld [vmem:[#allocation129_spill] sm:$0xff] }
 0x7f1   : > { %v4682_v14 = vpop.eup %4681 }
 0x7f2   : > { %v4684_v11 = vpop.eup %4683  ;;  %v3140_v47 = vmul.f32 %v4682_v14, %v3130_v60  ;;  %v8091_v60 = vld [vmem:[#allocation130_spill] sm:$0xff]  ;;  %v8092_v14 = vld [vmem:[#allocation131_spill] sm:$0xff] }
 0x7f3   : > { %v3141_v62 = vmul.f32 %v4684_v11, %v3131_v0  ;;  %v8093_v0 = vld [vmem:[#allocation132_spill] sm:$0xff]  ;;  %v8094_v11 = vld [vmem:[#allocation133_spill] sm:$0xff] }
 0x7f4   : > { %v6697_v54 = vpack.c.bf16 %v3140_v47, %v3140_v47  ;;  %v8095_v47 = vld [vmem:[#allocation134_spill] sm:$0xff] }
 0x7f5   : > { %v3154_v21 = vpack.c.bf16 %v3141_v62, %v3141_v62  ;;  %v8096_v62 = vld [vmem:[#allocation135_spill] sm:$0xff] }
 0x7f7   : > { %3187 = vmatprep.mubr.bf16.mxu0 %v3154_v21  ;;  %3228 = vmatprep.mubr.bf16.mxu1 %v3154_v21 }
 0x7f8   : > { %3188 = vmatmul.mubr.bf16.vlgmr.msra.gmra.mrb[80].mxu0 %v6697_v54  ;;  %3229 = vmatmul.mubr.bf16.vlgmr.msra.gmra.mrb[80].mxu1 %v6697_v54 }
 0x7f9   : > { %3238 = vmatpush1.bf16.msra.mxu0 %v7591_v45  ;;  %3279 = vmatpush1.bf16.msra.mxu1 %v7592_v23 }
 0x7fa   : > { %3269 = vmatprep.mubr.bf16.mxu0 %v3154_v21  ;;  %3310 = vmatprep.mubr.bf16.mxu1 %v3154_v21  ;;  %v8097_v21 = vld [vmem:[#allocation136_spill] sm:$0xff] }
 0x7fb   : > { %3239 = vmatprep.subr.bf16.mxu0 %v7593_v46  ;;  %3280 = vmatprep.subr.bf16.mxu1 %v7594_v61 }
 0x7fd   : > { %3240 = vmatpush1.bf16.msra.mxu0 %v7595_v17  ;;  %3281 = vmatpush1.bf16.msra.mxu1 %v7596_v13 }
 0x7fe   : > { %3241 = vmatprep.subr.bf16.mxu0 %v7597_v20  ;;  %3282 = vmatprep.subr.bf16.mxu1 %v7598_v18 }
 0x801   : > { %3242 = vmatpush1.bf16.msra.mxu0 %v7599_v15  ;;  %3283 = vmatpush1.bf16.msra.mxu1 %v7600_v19 }
 0x802   : > { %3243 = vmatprep.subr.bf16.mxu0 %v7601_v44  ;;  %3284 = vmatprep.subr.bf16.mxu1 %v7688_v40 }
 0x805   : > { %3244 = vmatpush1.bf16.msra.mxu0 %v7689_v56  ;;  %3285 = vmatpush1.bf16.msra.mxu1 %v7690_v51 }
 0x806   : > { %3245 = vmatprep.subr.bf16.mxu0 %v7691_v49  ;;  %3286 = vmatprep.subr.bf16.mxu1 %v7692_v48 }
 0x809   : > { %3246 = vmatpush1.bf16.msra.mxu0 %v7693_v43  ;;  %3287 = vmatpush1.bf16.msra.mxu1 %v7694_v10 }
 0x80a   : > { %3247 = vmatprep.subr.bf16.mxu0 %v7695_v12  ;;  %3288 = vmatprep.subr.bf16.mxu1 %v7696_v59 }
 0x80d   : > { %3248 = vmatpush1.bf16.msra.mxu0 %v7697_v1  ;;  %3289 = vmatpush1.bf16.msra.mxu1 %v7698_v42 }
 0x80e   : > { %3249 = vmatprep.subr.bf16.mxu0 %v7785_v55  ;;  %3290 = vmatprep.subr.bf16.mxu1 %v7786_v16 }
 0x811   : > { %3250 = vmatpush1.bf16.msra.mxu0 %v7787_v25  ;;  %3291 = vmatpush1.bf16.msra.mxu1 %v7788_v7 }
 0x812   : > { %3251 = vmatprep.subr.bf16.mxu0 %v7703_v35  ;;  %3292 = vmatprep.subr.bf16.mxu1 %v7704_v4 }
 0x815   : > { %3252 = vmatpush1.bf16.msra.mxu0 %v7705_v29  ;;  %3293 = vmatpush1.bf16.msra.mxu1 %v7789_v53 }
 0x816   : > { %3253 = vmatprep.subr.bf16.mxu0 %v7707_v8  ;;  %3294 = vmatprep.subr.bf16.mxu1 %v7708_v57 }
 0x819   : > { %3254 = vmatpush1.bf16.msra.mxu0 %v7709_v38  ;;  %3295 = vmatpush1.bf16.msra.mxu1 %v7710_v2 }
 0x81a   : > { %3255 = vmatprep.subr.bf16.mxu0 %v7711_v58  ;;  %3296 = vmatprep.subr.bf16.mxu1 %v7712_v41 }
 0x81d   : > { %3256 = vmatpush1.bf16.msra.mxu0 %v7713_v3  ;;  %3297 = vmatpush1.bf16.msra.mxu1 %v7628_v30 }
 0x81e   : > { %3257 = vmatprep.subr.bf16.mxu0 %v7629_v31  ;;  %3298 = vmatprep.subr.bf16.mxu1 %v8076_v37 }
 0x821   : > { %3258 = vmatpush1.bf16.msra.mxu0 %v8077_v9  ;;  %3299 = vmatpush1.bf16.msra.mxu1 %v8078_v28  ;;  %v8170_v28 = vld [vmem:[#allocation188_spill] sm:$0xff] }
 0x822   : > { %3259 = vmatprep.subr.bf16.mxu0 %v8079_v50  ;;  %3300 = vmatprep.subr.bf16.mxu1 %v8080_v52 }
 0x825   : > { %3260 = vmatpush1.bf16.msra.mxu0 %v8081_v63  ;;  %3301 = vmatpush1.bf16.msra.mxu1 %v8082_v34 }
 0x826   : > { %3261 = vmatprep.subr.bf16.mxu0 %v8083_v36  ;;  %3302 = vmatprep.subr.bf16.mxu1 %v8084_v22  ;;  %v8167_v22 = vld [vmem:[#allocation159_spill] sm:$0xff]  ;;  %v8168_v36 = vld [vmem:[#allocation162_spill] sm:$0xff] }
 0x829   : > { %3262 = vmatpush1.bf16.msra.mxu0 %v8085_v5  ;;  %3303 = vmatpush1.bf16.msra.mxu1 %v8086_v27  ;;  %v8166_v27 = vld [vmem:[#allocation160_spill] sm:$0xff] }
 0x82a   : > { %3263 = vmatprep.subr.bf16.mxu0 %v8087_v6  ;;  %3304 = vmatprep.subr.bf16.mxu1 %v8088_v24  ;;  %v8098_v6 = vld [vmem:[#allocation137_spill] sm:$0xff]  ;;  %v8099_v24 = vld [vmem:[#allocation10_spill] sm:$0xff] }
 0x82d   : > { %3264 = vmatpush1.bf16.msra.mxu0 %v8089_v39  ;;  %3305 = vmatpush1.bf16.msra.mxu1 %v8090_v33  ;;  %v8100_v39 = vld [vmem:[#allocation11_spill] sm:$0xff]  ;;  %v8165_v33 = vld [vmem:[#allocation158_spill] sm:$0xff] }
 0x82e   : > { %3265 = vmatprep.subr.bf16.mxu0 %v8091_v60  ;;  %3306 = vmatprep.subr.bf16.mxu1 %v8092_v14  ;;  %v8101_v14 = vld [vmem:[#allocation12_spill] sm:$0xff]  ;;  %v8110_v60 = vld [vmem:[#allocation21_spill] sm:$0xff] }
 0x831   : > { %3266 = vmatpush1.bf16.msra.mxu0 %v8093_v0  ;;  %3307 = vmatpush1.bf16.msra.mxu1 %v8094_v11  ;;  %v8102_v0 = vld [vmem:[#allocation13_spill] sm:$0xff]  ;;  %v8103_v11 = vld [vmem:[#allocation14_spill] sm:$0xff] }
 0x832   : > { %3267 = vmatprep.subr.bf16.mxu0 %v8095_v47  ;;  %3308 = vmatprep.subr.bf16.mxu1 %v8096_v62  ;;  %v8104_v47 = vld [vmem:[#allocation15_spill] sm:$0xff]  ;;  %v8105_v62 = vld [vmem:[#allocation16_spill] sm:$0xff] }
 0x835   : > { %3268 = vmatpush1.bf16.msra.mxu0 %v8097_v21  ;;  %3309 = vmatpush1.bf16.msra.mxu1 %v8098_v6  ;;  %v8106_v21 = vld [vmem:[#allocation17_spill] sm:$0xff]  ;;  %v8107_v6 = vld [vmem:[#allocation18_spill] sm:$0xff] }
 0x836   : > { %3376 = vmatprep.subr.bf16.mxu0 %v8099_v24  ;;  %3417 = vmatprep.subr.bf16.mxu1 %v8100_v39  ;;  %v8108_v24 = vld [vmem:[#allocation19_spill] sm:$0xff]  ;;  %v8109_v39 = vld [vmem:[#allocation20_spill] sm:$0xff] }
 0x838   : > { %3270 = vmatmul.mubr.bf16.vlgmr.msra.gmra.mrb[84].mxu0 %v6697_v54  ;;  %3311 = vmatmul.mubr.bf16.vlgmr.msra.gmra.mrb[84].mxu1 %v6697_v54  ;;  %v8111_v54 = vld [vmem:[#allocation22_spill] sm:$0xff] }
 0x839   : > { %3377 = vmatpush1.bf16.msra.mxu0 %v8101_v14  ;;  %3418 = vmatpush1.bf16.msra.mxu1 %v8102_v0  ;;  %v8112_v14 = vld [vmem:[#allocation23_spill] sm:$0xff]  ;;  %v8113_v0 = vld [vmem:[#allocation24_spill] sm:$0xff] }
 0x83a   : > { %3378 = vmatprep.subr.bf16.mxu0 %v8103_v11  ;;  %3419 = vmatprep.subr.bf16.mxu1 %v8104_v47  ;;  %v8114_v11 = vld [vmem:[#allocation25_spill] sm:$0xff]  ;;  %v8115_v47 = vld [vmem:[#allocation26_spill] sm:$0xff] }
 0x83d   : > { %3379 = vmatpush1.bf16.msra.mxu0 %v8105_v62  ;;  %3420 = vmatpush1.bf16.msra.mxu1 %v8106_v21  ;;  %v8116_v62 = vld [vmem:[#allocation27_spill] sm:$0xff]  ;;  %v8117_v21 = vld [vmem:[#allocation28_spill] sm:$0xff] }
 0x83e   : > { %3380 = vmatprep.subr.bf16.mxu0 %v8107_v6  ;;  %3421 = vmatprep.subr.bf16.mxu1 %v8108_v24  ;;  %v8118_v6 = vld [vmem:[#allocation29_spill] sm:$0xff]  ;;  %v8119_v24 = vld [vmem:[#allocation30_spill] sm:$0xff] }
 0x841   : > { %3381 = vmatpush1.bf16.msra.mxu0 %v8109_v39  ;;  %3422 = vmatpush1.bf16.msra.mxu1 %v8110_v60  ;;  %v8120_v39 = vld [vmem:[#allocation31_spill] sm:$0xff]  ;;  %v8121_v60 = vld [vmem:[#allocation32_spill] sm:$0xff] }
 0x842   : > { %3382 = vmatprep.subr.bf16.mxu0 %v8111_v54  ;;  %3423 = vmatprep.subr.bf16.mxu1 %v8112_v14  ;;  %v8122_v54 = vld [vmem:[#allocation33_spill] sm:$0xff]  ;;  %v8123_v14 = vld [vmem:[#allocation34_spill] sm:$0xff] }
 0x845   : > { %3383 = vmatpush1.bf16.msra.mxu0 %v8113_v0  ;;  %3424 = vmatpush1.bf16.msra.mxu1 %v8114_v11  ;;  %v8124_v0 = vld [vmem:[#allocation35_spill] sm:$0xff]  ;;  %v8125_v11 = vld [vmem:[#allocation36_spill] sm:$0xff] }
 0x846   : > { %3384 = vmatprep.subr.bf16.mxu0 %v8115_v47  ;;  %3425 = vmatprep.subr.bf16.mxu1 %v8116_v62  ;;  %v8126_v47 = vld [vmem:[#allocation37_spill] sm:$0xff]  ;;  %v8127_v62 = vld [vmem:[#allocation38_spill] sm:$0xff] }
 0x849   : > { %3385 = vmatpush1.bf16.msra.mxu0 %v8117_v21  ;;  %3426 = vmatpush1.bf16.msra.mxu1 %v8118_v6  ;;  %v8128_v21 = vld [vmem:[#allocation39_spill] sm:$0xff]  ;;  %v8129_v6 = vld [vmem:[#allocation40_spill] sm:$0xff] }
 0x84a   : > { %3386 = vmatprep.subr.bf16.mxu0 %v8119_v24  ;;  %3427 = vmatprep.subr.bf16.mxu1 %v8120_v39  ;;  %v8130_v24 = vld [vmem:[#allocation41_spill] sm:$0xff]  ;;  %v8131_v39 = vld [vmem:[#allocation42_spill] sm:$0xff] }
 0x84d   : > { %3387 = vmatpush1.bf16.msra.mxu0 %v8121_v60  ;;  %3428 = vmatpush1.bf16.msra.mxu1 %v8122_v54  ;;  %v8132_v60 = vld [vmem:[#allocation43_spill] sm:$0xff]  ;;  %v8133_v54 = vld [vmem:[#allocation44_spill] sm:$0xff] }
 0x84e   : > { %3388 = vmatprep.subr.bf16.mxu0 %v8123_v14  ;;  %3429 = vmatprep.subr.bf16.mxu1 %v8124_v0  ;;  %v8134_v14 = vld [vmem:[#allocation45_spill] sm:$0xff]  ;;  %v8135_v0 = vld [vmem:[#allocation46_spill] sm:$0xff] }
 0x851   : > { %3389 = vmatpush1.bf16.msra.mxu0 %v8125_v11  ;;  %3430 = vmatpush1.bf16.msra.mxu1 %v8126_v47  ;;  %v8136_v11 = vld [vmem:[#allocation47_spill] sm:$0xff]  ;;  %v8137_v47 = vld [vmem:[#allocation48_spill] sm:$0xff] }
 0x852   : > { %3390 = vmatprep.subr.bf16.mxu0 %v8127_v62  ;;  %3431 = vmatprep.subr.bf16.mxu1 %v8128_v21  ;;  %v8138_v62 = vld [vmem:[#allocation49_spill] sm:$0xff]  ;;  %v8139_v21 = vld [vmem:[#allocation50_spill] sm:$0xff] }
 0x855   : > { %3391 = vmatpush1.bf16.msra.mxu0 %v8129_v6  ;;  %3432 = vmatpush1.bf16.msra.mxu1 %v8130_v24  ;;  %v8140_v6 = vld [vmem:[#allocation51_spill] sm:$0xff]  ;;  %v8141_v24 = vld [vmem:[#allocation52_spill] sm:$0xff] }
 0x856   : > { %3392 = vmatprep.subr.bf16.mxu0 %v8131_v39  ;;  %3433 = vmatprep.subr.bf16.mxu1 %v8132_v60  ;;  %v8142_v39 = vld [vmem:[#allocation53_spill] sm:$0xff]  ;;  %v8143_v60 = vld [vmem:[#allocation54_spill] sm:$0xff] }
 0x859   : > { %3393 = vmatpush1.bf16.msra.mxu0 %v8133_v54  ;;  %3434 = vmatpush1.bf16.msra.mxu1 %v8134_v14  ;;  %v8144_v54 = vld [vmem:[#allocation55_spill] sm:$0xff]  ;;  %v8145_v14 = vld [vmem:[#allocation56_spill] sm:$0xff] }
 0x85a   : > { %3394 = vmatprep.subr.bf16.mxu0 %v8135_v0  ;;  %3435 = vmatprep.subr.bf16.mxu1 %v8136_v11  ;;  %v8146_v0 = vld [vmem:[#allocation57_spill] sm:$0xff]  ;;  %v8147_v11 = vld [vmem:[#allocation58_spill] sm:$0xff] }
 0x85d   : > { %3395 = vmatpush1.bf16.msra.mxu0 %v8137_v47  ;;  %3436 = vmatpush1.bf16.msra.mxu1 %v8138_v62  ;;  %v8148_v47 = vld [vmem:[#allocation59_spill] sm:$0xff]  ;;  %v8149_v62 = vld [vmem:[#allocation60_spill] sm:$0xff] }
 0x85e   : > { %3396 = vmatprep.subr.bf16.mxu0 %v8139_v21  ;;  %3437 = vmatprep.subr.bf16.mxu1 %v8140_v6  ;;  %v8150_v21 = vld [vmem:[#allocation61_spill] sm:$0xff]  ;;  %v8151_v6 = vld [vmem:[#allocation62_spill] sm:$0xff] }
 0x861   : > { %3397 = vmatpush1.bf16.msra.mxu0 %v8141_v24  ;;  %3438 = vmatpush1.bf16.msra.mxu1 %v8142_v39  ;;  %v8152_v24 = vld [vmem:[#allocation63_spill] sm:$0xff]  ;;  %v8153_v39 = vld [vmem:[#allocation64_spill] sm:$0xff] }
 0x862   : > { %3398 = vmatprep.subr.bf16.mxu0 %v8143_v60  ;;  %3439 = vmatprep.subr.bf16.mxu1 %v8144_v54  ;;  %v8154_v60 = vld [vmem:[#allocation65_spill] sm:$0xff]  ;;  %v8155_v54 = vld [vmem:[#allocation66_spill] sm:$0xff] }
 0x865   : > { %3399 = vmatpush1.bf16.msra.mxu0 %v8145_v14  ;;  %3440 = vmatpush1.bf16.msra.mxu1 %v8146_v0  ;;  %v8156_v14 = vld [vmem:[#allocation67_spill] sm:$0xff]  ;;  %v8157_v0 = vld [vmem:[#allocation68_spill] sm:$0xff] }
 0x866   : > { %3400 = vmatprep.subr.bf16.mxu0 %v8147_v11  ;;  %3441 = vmatprep.subr.bf16.mxu1 %v8148_v47  ;;  %v8158_v11 = vld [vmem:[#allocation69_spill] sm:$0xff]  ;;  %v8159_v47 = vld [vmem:[#allocation70_spill] sm:$0xff] }
 0x869   : > { %3401 = vmatpush1.bf16.msra.mxu0 %v8149_v62  ;;  %3442 = vmatpush1.bf16.msra.mxu1 %v8150_v21  ;;  %v8160_v62 = vld [vmem:[#allocation71_spill] sm:$0xff]  ;;  %v8161_v21 = vld [vmem:[#allocation72_spill] sm:$0xff] }
 0x86a   : > { %3402 = vmatprep.subr.bf16.mxu0 %v8151_v6  ;;  %3443 = vmatprep.subr.bf16.mxu1 %v8152_v24  ;;  %v8162_v6 = vld [vmem:[#allocation73_spill] sm:$0xff]  ;;  %v8163_v24 = vld [vmem:[#allocation74_spill] sm:$0xff] }
 0x86d   : > { %3403 = vmatpush1.bf16.msra.mxu0 %v8153_v39  ;;  %3444 = vmatpush1.bf16.msra.mxu1 %v8154_v60  ;;  %v8164_v39 = vld [vmem:[#allocation75_spill] sm:$0xff] }
 0x86e   : > { %3404 = vmatprep.subr.bf16.mxu0 %v8155_v54  ;;  %3445 = vmatprep.subr.bf16.mxu1 %v8156_v14 }
 0x871   : > { %3405 = vmatpush1.bf16.msra.mxu0 %v8157_v0  ;;  %3446 = vmatpush1.bf16.msra.mxu1 %v8158_v11 }
 0x872   : > { %3406 = vmatprep.subr.bf16.mxu0 %v8159_v47  ;;  %3447 = vmatprep.subr.bf16.mxu1 %v8160_v62 }
 0x875   : > { %3407 = vmatpush1.bf16.msra.mxu0 %v8161_v21  ;;  %3448 = vmatpush1.bf16.msra.mxu1 %v8162_v6 }
 0x876   : > { %3458 = vmatprep.subr.bf16.mxu0 %v8163_v24  ;;  %3499 = vmatprep.subr.bf16.mxu1 %v8164_v39 }
 0x8cb   : > { %v3189_v60 = vpop.f32.mrb[80].mxu0  ;;  %v3230_v54 = vpop.f32.mrb[80].mxu1 }
 0x8cc   : > { %v3319_v14 = vadd.f32 %v3189_v60, %v8165_v33  ;;  %v3321_v0 = vadd.f32 %v3230_v54, %v8166_v27  ;;  %v3191_v5 = vpop.f32.mrb[81].mxu0  ;;  %v3232_v11 = vpop.f32.mrb[81].mxu1  ;;  %v8169_v60 = vld [vmem:[#allocation186_spill] sm:$0xff] }
 0x8cd   : > { %v3320_v47 = vadd.f32 %v3191_v5, %v8167_v22  ;;  %v3322_v62 = vadd.f32 %v3232_v11, %v8168_v36  ;;  %v3193_v34 = vpop.f32.mrb[82].mxu0  ;;  %v3234_v21 = vpop.f32.mrb[82].mxu1 }
 0x8ce   : > { %v3194_v63 = vpop.f32.mrb[83].mxu0  ;;  %v3235_v6 = vpop.f32.mrb[83].mxu1  ;;  %v3335_v52 = vmul.f32 0.5, %v3321_v0  ;;  %v3327_v50 = vmul.f32 0.5, %v3319_v14  ;;  %v8171_v34 = vld [vmem:[#allocation187_spill] sm:$0xff] }
 0x8cf   : > { %v3336_v24 = vmul.f32 0.5, %v3322_v62  ;;  %v3328_v39 = vmul.f32 0.5, %v3320_v47  ;;  %v8172_v63 = vld [vmem:[#allocation190_spill] sm:$0xff] }
 0x8d0   : > { %4685 = vtanh.f32 %v3335_v52 }
 0x8d1   : > { %4687 = vtanh.f32 %v3336_v24 }
 0x8d2   : > { %4689 = vtanh.f32 %v3327_v50 }
 0x8d3   : > { %4691 = vtanh.f32 %v3328_v39 }
 0x8da   : > { %v4686_v14 = vpop.eup %4685 }
 0x8db   : > { %v4688_v50 = vpop.eup %4687  ;;  %v3339_v39 = vmul.f32 0.5, %v4686_v14 }
 0x8dc   : > { %v4690_v6 = vpop.eup %4689 }
 0x8dd   : > { %v4692_v24 = vpop.eup %4691  ;;  %v3341_v37 = vadd.f32 0.5, %v3339_v39 }
 0x8de   : > { %v3332_v9 = vmul.f32 0.5, %v4692_v24 }
 0x90b   : > { %v3271_v33 = vpop.f32.mrb[84].mxu0  ;;  %v3312_v27 = vpop.f32.mrb[84].mxu1 }
 0x90c   : > { %v3323_v54 = vadd.f32 %v3271_v33, %v8169_v60  ;;  %v3325_v22 = vadd.f32 %v3312_v27, %v8170_v28  ;;  %v3273_v5 = vpop.f32.mrb[85].mxu0  ;;  %v3314_v36 = vpop.f32.mrb[85].mxu1  ;;  %v3340_v60 = vmul.f32 0.5, %v4688_v50  ;;  %v3331_v27 = vmul.f32 0.5, %v4690_v6 }
 0x90d   : > { %v3324_v11 = vadd.f32 %v3273_v5, %v8171_v34  ;;  %v3326_v21 = vadd.f32 %v3314_v36, %v8172_v63  ;;  %v3275_v0 = vpop.f32.mrb[86].mxu0  ;;  %v3316_v62 = vpop.f32.mrb[86].mxu1  ;;  %v3334_v63 = vadd.f32 0.5, %v3332_v9 }
 0x90e   : > { %4693 = vtanh.f32 %v3323_v54  ;;  %v3276_v52 = vpop.f32.mrb[87].mxu0  ;;  %v3317_v47 = vpop.f32.mrb[87].mxu1  ;;  %v3345_v33 = vmul.f32 0.5, %v3325_v22  ;;  %v3342_v5 = vadd.f32 0.5, %v3340_v60  ;;  %v3333_v36 = vadd.f32 0.5, %v3331_v27 }
 0x90f   : > { %4695 = vtanh.f32 %v3324_v11  ;;  %v3346_v28 = vmul.f32 0.5, %v3326_v21  ;;  %v3353_v0 = vmul.f32 %v3341_v37, %v6691_v32 }
 0x910   : > { %4697 = vtanh.f32 %v3345_v33  ;;  %v3354_v11 = vmul.f32 %v3342_v5, %v6693_v26 }
 0x911   : > { %4699 = vtanh.f32 %v3346_v28 }
 0x918   : > { %v4694_v34 = vpop.eup %4693 }
 0x919   : > { %v4696_v54 = vpop.eup %4695  ;;  %v3355_v62 = vmul.f32 %v4694_v34, %v3333_v36 }
 0x91a   : > { %v3356_v52 = vmul.f32 %v4696_v54, %v3334_v63  ;;  %v4698_v21 = vpop.eup %4697  ;;  %v8200_v54 = vld [vmem:[#allocation189_spill] sm:$0xff] }
 0x91b   : > { %v6841_v14 = vadd.f32 %v3355_v62, %v3353_v0  ;;  %v4700_v47 = vpop.eup %4699  ;;  %v3349_v50 = vmul.f32 0.5, %v4698_v21  ;;  %v8201_v62 = vld [vmem:[#allocation192_spill] sm:$0xff] }
 0x91c   : > { %v6843_v22 = vadd.f32 %v3356_v52, %v3354_v11  ;;  %v3350_v6 = vmul.f32 0.5, %v4700_v47  ;;  %v8202_v47 = vld [vmem:[#allocation191_spill] sm:$0xff] }
 0x91d   : > { %4701 = vtanh.f32 %v6841_v14  ;;  %v3351_v9 = vadd.f32 0.5, %v3349_v50 }
 0x91e   : > { %4703 = vtanh.f32 %v6843_v22  ;;  %v3352_v39 = vadd.f32 0.5, %v3350_v6  ;;  %v8203_v6 = vld [vmem:[#allocation193_spill] sm:$0xff] }
 0x927   : > { %v4702_v24 = vpop.eup %4701 }
 0x928   : > { %v4704_v32 = vpop.eup %4703  ;;  %v3361_v37 = vmul.f32 %v4702_v24, %v3351_v9 }
 0x929   : > { %v3362_v33 = vmul.f32 %v4704_v32, %v3352_v39 }
 0x92a   : > { %v6847_v60 = vpack.c.bf16 %v3361_v37, %v3361_v37 }
 0x92b   : > { %v3375_v26 = vpack.c.bf16 %v3362_v33, %v3362_v33 }
 0x92d   : > { %3408 = vmatprep.mubr.bf16.mxu0 %v3375_v26  ;;  %3449 = vmatprep.mubr.bf16.mxu1 %v3375_v26 }
 0x92e   : > { %3409 = vmatmul.mubr.bf16.vlgmr.msra.gmra.mrb[88].mxu0 %v6847_v60  ;;  %3450 = vmatmul.mubr.bf16.vlgmr.msra.gmra.mrb[88].mxu1 %v6847_v60 }
 0x92f   : > { %3459 = vmatpush1.bf16.msra.mxu0 %v7591_v45  ;;  %3500 = vmatpush1.bf16.msra.mxu1 %v7592_v23  ;;  %v8173_v45 = vld [vmem:[#allocation115_spill] sm:$0xff]  ;;  %v8174_v23 = vld [vmem:[#allocation116_spill] sm:$0xff] }
 0x930   : > { %3490 = vmatprep.mubr.bf16.mxu0 %v3375_v26  ;;  %3531 = vmatprep.mubr.bf16.mxu1 %v3375_v26 }
 0x931   : > { %3460 = vmatprep.subr.bf16.mxu0 %v7593_v46  ;;  %3501 = vmatprep.subr.bf16.mxu1 %v7594_v61  ;;  %v8175_v46 = vld [vmem:[#allocation117_spill] sm:$0xff]  ;;  %v8176_v61 = vld [vmem:[#allocation118_spill] sm:$0xff] }
 0x933   : > { %3461 = vmatpush1.bf16.msra.mxu0 %v7595_v17  ;;  %3502 = vmatpush1.bf16.msra.mxu1 %v7596_v13  ;;  %v8177_v17 = vld [vmem:[#allocation119_spill] sm:$0xff]  ;;  %v8178_v13 = vld [vmem:[#allocation120_spill] sm:$0xff] }
 0x934   : > { %3462 = vmatprep.subr.bf16.mxu0 %v7597_v20  ;;  %3503 = vmatprep.subr.bf16.mxu1 %v7598_v18  ;;  %v8179_v20 = vld [vmem:[#allocation121_spill] sm:$0xff]  ;;  %v8180_v18 = vld [vmem:[#allocation122_spill] sm:$0xff] }
 0x937   : > { %3463 = vmatpush1.bf16.msra.mxu0 %v7599_v15  ;;  %3504 = vmatpush1.bf16.msra.mxu1 %v7600_v19  ;;  %v8181_v15 = vld [vmem:[#allocation123_spill] sm:$0xff]  ;;  %v8182_v19 = vld [vmem:[#allocation124_spill] sm:$0xff] }
 0x938   : > { %3464 = vmatprep.subr.bf16.mxu0 %v7601_v44  ;;  %3505 = vmatprep.subr.bf16.mxu1 %v7688_v40  ;;  %v8183_v44 = vld [vmem:[#allocation125_spill] sm:$0xff]  ;;  %v8186_v40 = vld [vmem:[#allocation128_spill] sm:$0xff] }
 0x93b   : > { %3465 = vmatpush1.bf16.msra.mxu0 %v7689_v56  ;;  %3506 = vmatpush1.bf16.msra.mxu1 %v7690_v51  ;;  %v8187_v56 = vld [vmem:[#allocation129_spill] sm:$0xff]  ;;  %v8188_v51 = vld [vmem:[#allocation130_spill] sm:$0xff] }
 0x93c   : > { %3466 = vmatprep.subr.bf16.mxu0 %v7691_v49  ;;  %3507 = vmatprep.subr.bf16.mxu1 %v7692_v48  ;;  %v8189_v49 = vld [vmem:[#allocation131_spill] sm:$0xff]  ;;  %v8190_v48 = vld [vmem:[#allocation132_spill] sm:$0xff] }
 0x93f   : > { %3467 = vmatpush1.bf16.msra.mxu0 %v7693_v43  ;;  %3508 = vmatpush1.bf16.msra.mxu1 %v7694_v10  ;;  %v8191_v43 = vld [vmem:[#allocation133_spill] sm:$0xff]  ;;  %v8192_v10 = vld [vmem:[#allocation134_spill] sm:$0xff] }
 0x940   : > { %3468 = vmatprep.subr.bf16.mxu0 %v7695_v12  ;;  %3509 = vmatprep.subr.bf16.mxu1 %v7696_v59  ;;  %v8193_v12 = vld [vmem:[#allocation135_spill] sm:$0xff]  ;;  %v8194_v59 = vld [vmem:[#allocation136_spill] sm:$0xff] }
 0x943   : > { %3469 = vmatpush1.bf16.msra.mxu0 %v7697_v1  ;;  %3510 = vmatpush1.bf16.msra.mxu1 %v7698_v42  ;;  %v8195_v1 = vld [vmem:[#allocation137_spill] sm:$0xff] }
 0x944   : > { %3470 = vmatprep.subr.bf16.mxu0 %v7785_v55  ;;  %3511 = vmatprep.subr.bf16.mxu1 %v7786_v16 }
 0x947   : > { %3471 = vmatpush1.bf16.msra.mxu0 %v7787_v25  ;;  %3512 = vmatpush1.bf16.msra.mxu1 %v7788_v7 }
 0x948   : > { %3472 = vmatprep.subr.bf16.mxu0 %v7703_v35  ;;  %3513 = vmatprep.subr.bf16.mxu1 %v7704_v4 }
 0x94b   : > { %3473 = vmatpush1.bf16.msra.mxu0 %v7705_v29  ;;  %3514 = vmatpush1.bf16.msra.mxu1 %v7789_v53 }
 0x94c   : > { %3474 = vmatprep.subr.bf16.mxu0 %v7707_v8  ;;  %3515 = vmatprep.subr.bf16.mxu1 %v7708_v57  ;;  %v8198_v8 = vld [vmem:[#allocation163_spill] sm:$0xff] }
 0x94f   : > { %3475 = vmatpush1.bf16.msra.mxu0 %v7709_v38  ;;  %3516 = vmatpush1.bf16.msra.mxu1 %v7710_v2  ;;  %v8199_v38 = vld [vmem:[#allocation165_spill] sm:$0xff] }
 0x950   : > { %3476 = vmatprep.subr.bf16.mxu0 %v7711_v58  ;;  %3517 = vmatprep.subr.bf16.mxu1 %v7712_v41  ;;  %v8196_v58 = vld [vmem:[#allocation161_spill] sm:$0xff] }
 0x953   : > { %3477 = vmatpush1.bf16.msra.mxu0 %v7713_v3  ;;  %3518 = vmatpush1.bf16.msra.mxu1 %v7628_v30  ;;  %v8184_v30 = vld [vmem:[#allocation126_spill] sm:$0xff]  ;;  %v8197_v3 = vld [vmem:[#allocation164_spill] sm:$0xff] }
 0x954   : > { %3478 = vmatprep.subr.bf16.mxu0 %v7629_v31  ;;  %3519 = vmatprep.subr.bf16.mxu1 %v8173_v45  ;;  %v8185_v31 = vld [vmem:[#allocation127_spill] sm:$0xff] }
 0x957   : > { %3479 = vmatpush1.bf16.msra.mxu0 %v8174_v23  ;;  %3520 = vmatpush1.bf16.msra.mxu1 %v8175_v46 }
 0x958   : > { %3480 = vmatprep.subr.bf16.mxu0 %v8176_v61  ;;  %3521 = vmatprep.subr.bf16.mxu1 %v8177_v17 }
 0x95b   : > { %3481 = vmatpush1.bf16.msra.mxu0 %v8178_v13  ;;  %3522 = vmatpush1.bf16.msra.mxu1 %v8179_v20 }
 0x95c   : > { %3482 = vmatprep.subr.bf16.mxu0 %v8180_v18  ;;  %3523 = vmatprep.subr.bf16.mxu1 %v8181_v15 }
 0x95f   : > { %3483 = vmatpush1.bf16.msra.mxu0 %v8182_v19  ;;  %3524 = vmatpush1.bf16.msra.mxu1 %v8183_v44 }
 0x960   : > { %3484 = vmatprep.subr.bf16.mxu0 %v8184_v30  ;;  %3525 = vmatprep.subr.bf16.mxu1 %v8185_v31 }
 0x963   : > { %3485 = vmatpush1.bf16.msra.mxu0 %v8186_v40  ;;  %3526 = vmatpush1.bf16.msra.mxu1 %v8187_v56 }
 0x964   : > { %3486 = vmatprep.subr.bf16.mxu0 %v8188_v51  ;;  %3527 = vmatprep.subr.bf16.mxu1 %v8189_v49 }
 0x967   : > { %3487 = vmatpush1.bf16.msra.mxu0 %v8190_v48  ;;  %3528 = vmatpush1.bf16.msra.mxu1 %v8191_v43 }
 0x968   : > { %3488 = vmatprep.subr.bf16.mxu0 %v8192_v10  ;;  %3529 = vmatprep.subr.bf16.mxu1 %v8193_v12 }
 0x96b   : > { %3489 = vmatpush1.bf16.msra.mxu0 %v8194_v59  ;;  %3530 = vmatpush1.bf16.msra.mxu1 %v8195_v1 }
 0x96e   : > { %3491 = vmatmul.mubr.bf16.vlgmr.msra.gmra.mrb[92].mxu0 %v6847_v60  ;;  %3532 = vmatmul.mubr.bf16.vlgmr.msra.gmra.mrb[92].mxu1 %v6847_v60 }
 0xa01   : > { %v3410_v42 = vpop.f32.mrb[88].mxu0  ;;  %v3451_v2 = vpop.f32.mrb[88].mxu1 }
 0xa02   : > { %v3540_v41 = vadd.f32 %v3410_v42, %v8196_v58  ;;  %v3542_v35 = vadd.f32 %v3451_v2, %v8197_v3  ;;  %v3412_v4 = vpop.f32.mrb[89].mxu0  ;;  %v3453_v29 = vpop.f32.mrb[89].mxu1 }
 0xa03   : > { %v3541_v57 = vadd.f32 %v3412_v4, %v8198_v8  ;;  %v3543_v55 = vadd.f32 %v3453_v29, %v8199_v38  ;;  %v3414_v16 = vpop.f32.mrb[90].mxu0  ;;  %v3455_v25 = vpop.f32.mrb[90].mxu1 }
 0xa04   : > { %v3415_v7 = vpop.f32.mrb[91].mxu0  ;;  %v3456_v53 = vpop.f32.mrb[91].mxu1  ;;  %v3556_v28 = vmul.f32 0.5, %v3542_v35  ;;  %v3548_v5 = vmul.f32 0.5, %v3540_v41 }
 0xa05   : > { %v3557_v27 = vmul.f32 0.5, %v3543_v55  ;;  %v3549_v36 = vmul.f32 0.5, %v3541_v57 }
 0xa06   : > { %4705 = vtanh.f32 %v3556_v28 }
 0xa07   : > { %4707 = vtanh.f32 %v3557_v27 }
 0xa08   : > { %4709 = vtanh.f32 %v3548_v5 }
 0xa09   : > { %4711 = vtanh.f32 %v3549_v36 }
 0xa10   : > { %v4706_v32 = vpop.eup %4705 }
 0xa11   : > { %v4708_v26 = vpop.eup %4707  ;;  %v3560_v23 = vmul.f32 0.5, %v4706_v32 }
 0xa12   : > { %v4710_v60 = vpop.eup %4709  ;;  %v3561_v61 = vmul.f32 0.5, %v4708_v26 }
 0xa13   : > { %v4712_v45 = vpop.eup %4711  ;;  %v3552_v13 = vmul.f32 0.5, %v4710_v60  ;;  %v3562_v18 = vadd.f32 0.5, %v3560_v23 }
 0xa14   : > { %v3553_v20 = vmul.f32 0.5, %v4712_v45  ;;  %v3563_v15 = vadd.f32 0.5, %v3561_v61 }
 0xa15   : > { %v3554_v19 = vadd.f32 0.5, %v3552_v13  ;;  %v3574_v40 = vmul.f32 %v3562_v18, %v6841_v14 }
 0xa16   : > { %v3555_v30 = vadd.f32 0.5, %v3553_v20  ;;  %v3575_v51 = vmul.f32 %v3563_v15, %v6843_v22 }
 0xa41   : > { %v3492_v34 = vpop.f32.mrb[92].mxu0  ;;  %v3533_v63 = vpop.f32.mrb[92].mxu1 }
 0xa42   : > { %v3544_v0 = vadd.f32 %v3492_v34, %v8200_v54  ;;  %v3546_v11 = vadd.f32 %v3533_v63, %v8201_v62  ;;  %v3494_v52 = vpop.f32.mrb[93].mxu0  ;;  %v3535_v21 = vpop.f32.mrb[93].mxu1 }
 0xa43   : > { %v3545_v50 = vadd.f32 %v3494_v52, %v8202_v47  ;;  %v3547_v9 = vadd.f32 %v3535_v21, %v8203_v6  ;;  %v3496_v24 = vpop.f32.mrb[94].mxu0  ;;  %v3537_v39 = vpop.f32.mrb[94].mxu1 }
 0xa44   : > { %4713 = vtanh.f32 %v3544_v0  ;;  %v3497_v37 = vpop.f32.mrb[95].mxu0  ;;  %v3538_v33 = vpop.f32.mrb[95].mxu1  ;;  %v3566_v46 = vmul.f32 0.5, %v3546_v11 }
 0xa45   : > { %4715 = vtanh.f32 %v3545_v50  ;;  %v3567_v17 = vmul.f32 0.5, %v3547_v9 }
 0xa46   : > { %4717 = vtanh.f32 %v3566_v46 }
 0xa47   : > { %4719 = vtanh.f32 %v3567_v17 }
 0xa4e   : > { %v4714_v44 = vpop.eup %4713 }
 0xa4f   : > { %v4716_v31 = vpop.eup %4715  ;;  %v3576_v56 = vmul.f32 %v4714_v44, %v3554_v19 }
 0xa50   : > { %v3577_v49 = vmul.f32 %v4716_v31, %v3555_v30  ;;  %v4718_v10 = vpop.eup %4717 }
 0xa51   : > { %v3578_v48 = vadd.f32 %v3576_v56, %v3574_v40  ;;  %v4720_v12 = vpop.eup %4719  ;;  %v3570_v59 = vmul.f32 0.5, %v4718_v10 }
 0xa52   : > { %v3579_v43 = vadd.f32 %v3577_v49, %v3575_v51  ;;  %v3571_v1 = vmul.f32 0.5, %v4720_v12 }
 0xa53   : > { %4721 = vtanh.f32 %v3578_v48  ;;  %v3572_v42 = vadd.f32 0.5, %v3570_v59 }
 0xa54   : > { %4723 = vtanh.f32 %v3579_v43  ;;  %v3573_v58 = vadd.f32 0.5, %v3571_v1 }
 0xa59   : > { %3587 = sbr.rel (%p4378_p7) target bundleno = 2658 (0xa62), region = 60 }
 0xa5d   : > { %v4722_v2 = vpop.eup %4721 }
 0xa5e   : > { %v4724_v41 = vpop.eup %4723  ;;  %v6925_v3 = vmul.f32 %v4722_v2, %v3572_v42 }
 0xa5f   : > { %v6927_v35 = vmul.f32 %v4724_v41, %v3573_v58 }
 0xa60   : > { %3588 = vst [vmem:[#allocation3] sm:$0xff] %v6925_v3 }
 0xa61   : > { %3589 = vst [vmem:[#allocation3 + $0x8] sm:$0xff] %v6927_v35 }
 0xa62 PF: > { %p4379_p8 = scmp.ne.s32.totalorder %s4932_s9, 1 }
 0xa63   : > { %v4725_v14 = vld [vmem:[%s7107_s4 + $0x40] sm:$0xff] (!%p4379_p8)   ;;  %v4729_v8 = vld [vmem:[%s7107_s4 + $0x48] sm:$0xff] (!%p4379_p8)   ;;  %v4733_v16 = vld [vmem:[%s7107_s4 + $0x50] sm:$0xff] (!%p4379_p8)   ;;  %v3599_v39 = vrot.slane (!%p4379_p8), %v6927_v35, 7  ;;  %v3598_v37 = vrot.slane (!%p4379_p8), %v6925_v3, 7  ;;  %v4865_v13 = vmov (!%p4379_p8), 0.0  }
 0xa64   : > { %3593 = sbr.rel (%p4379_p8) target bundleno = 3131 (0xc3b), region = 64  ;;  %v4726_v22 = vld [vmem:[%s7107_s4 + $0xc0] sm:$0xff] (!%p4379_p8)   ;;  %4428 = vmatprep.subr.bf16.mxu0 (!%p4379_p8), %v4725_v14  ;;  %v4730_v57 = vld [vmem:[%s7107_s4 + $0xc8] sm:$0xff] (!%p4379_p8)   ;;  %v4734_v25 = vld [vmem:[%s7107_s4 + $0xd0] sm:$0xff] (!%p4379_p8)   ;;  %vm4866_vm2 = vmmov (!%p4379_p8), 0   ;;  %vm4072_vm3 = vcmask (!%p4379_p8), 123904  }
 0xa65   : > { %v4727_v4 = vld [vmem:[%s7107_s4] sm:$0xff] (!%p4379_p8)   ;;  %4450 = vmatprep.subr.bf16.mxu1 (!%p4379_p8), %v4726_v22  ;;  %v4731_v38 = vld [vmem:[%s7107_s4 + $0x8] sm:$0xff] (!%p4379_p8)   ;;  %v4735_v7 = vld [vmem:[%s7107_s4 + $0x10] sm:$0xff] (!%p4379_p8)  }
 0xa66   : > { %v4728_v29 = vld [vmem:[%s7107_s4 + $0x80] sm:$0xff] (!%p4379_p8)   ;;  %4429 = vmatpush3.bf16.msra.mxu0 (!%p4379_p8), %v4727_v4  ;;  %v4732_v55 = vld [vmem:[%s7107_s4 + $0x88] sm:$0xff] (!%p4379_p8)   ;;  %v4736_v53 = vld [vmem:[%s7107_s4 + $0x90] sm:$0xff] (!%p4379_p8)  }
 0xa67   : > { %4451 = vmatpush3.bf16.msra.mxu1 (!%p4379_p8), %v4728_v29  ;;  %4430 = vmatprep.subr.bf16.mxu0 (!%p4379_p8), %v4729_v8  ;;  %v4737_v28 = vld [vmem:[%s7107_s4 + $0x58] sm:$0xff] (!%p4379_p8)   ;;  %v4741_v34 = vld [vmem:[%s7107_s4 + $0x60] sm:$0xff] (!%p4379_p8)   ;;  %v4745_v62 = vld [vmem:[%s7107_s4 + $0x68] sm:$0xff] (!%p4379_p8)  }
 0xa68   : > { %4452 = vmatprep.subr.bf16.mxu1 (!%p4379_p8), %v4730_v57  ;;  %v4738_v27 = vld [vmem:[%s7107_s4 + $0xd8] sm:$0xff] (!%p4379_p8)   ;;  %v4742_v63 = vld [vmem:[%s7107_s4 + $0xe0] sm:$0xff] (!%p4379_p8)   ;;  %v4746_v11 = vld [vmem:[%s7107_s4 + $0xe8] sm:$0xff] (!%p4379_p8)  }
 0xa69   : > { %v4739_v5 = vld [vmem:[%s7107_s4 + $0x18] sm:$0xff] (!%p4379_p8)   ;;  %v4743_v54 = vld [vmem:[%s7107_s4 + $0x20] sm:$0xff] (!%p4379_p8)   ;;  %v4747_v52 = vld [vmem:[%s7107_s4 + $0x28] sm:$0xff] (!%p4379_p8)  }
 0xa6a   : > { %4431 = vmatpush3.bf16.msra.mxu0 (!%p4379_p8), %v4731_v38  ;;  %v4740_v36 = vld [vmem:[%s7107_s4 + $0x98] sm:$0xff] (!%p4379_p8)   ;;  %v4744_v0 = vld [vmem:[%s7107_s4 + $0xa0] sm:$0xff] (!%p4379_p8)   ;;  %v4748_v21 = vld [vmem:[%s7107_s4 + $0xa8] sm:$0xff] (!%p4379_p8)  }
 0xa6b   : > { %4453 = vmatpush3.bf16.msra.mxu1 %v4732_v55  ;;  %4432 = vmatprep.subr.bf16.mxu0 %v4733_v16  ;;  %v4749_v47 = vld [vmem:[%s7107_s4 + $0x70] sm:$0xff]   ;;  %v4753_v24 = vld [vmem:[%s7107_s4 + $0x78] sm:$0xff]   ;;  %v3595_v60 = vld [vmem:[#allocation3 + $0x8] sm:$0xff] }
 0xa6c   : > { %4454 = vmatprep.subr.bf16.mxu1 %v4734_v25  ;;  %v4750_v50 = vld [vmem:[%s7107_s4 + $0xf0] sm:$0xff]   ;;  %v4754_v32 = vld [vmem:[%s7107_s4 + $0xf8] sm:$0xff]   ;;  %v3594_v45 = vld [vmem:[#allocation3] sm:$0xff]  ;;  %v3603_v23 = vsel %vm669_vm0, %v3595_v60, %v3599_v39  ;;  %v3607_v46 = vrot.slane %v3595_v60, 1 }
 0xa6d   : > { %v4751_v6 = vld [vmem:[%s7107_s4 + $0x30] sm:$0xff]   ;;  %v4755_v33 = vld [vmem:[%s7107_s4 + $0x38] sm:$0xff]   ;;  %v3602_v61 = vsel %vm669_vm0, %v3594_v45, %v3598_v37  ;;  %v3606_v17 = vrot.slane %v3594_v45, 1  ;;  %v4757_v20 = vld [vmem:[%s7109_s6] sm:$0xff]   ;;  %v3613_v18 = vpack.c.bf16 %v3603_v23, %v3603_v23 }
 0xa6e   : > { %4433 = vmatpush3.bf16.msra.mxu0 %v4735_v7  ;;  %v4752_v9 = vld [vmem:[%s7107_s4 + $0xb0] sm:$0xff]   ;;  %v4756_v26 = vld [vmem:[%s7107_s4 + $0xb8] sm:$0xff]   ;;  %v3612_v15 = vpack.c.bf16 %v3602_v61, %v3602_v61  ;;  %v3611_v19 = vsel %vm669_vm0, %v3607_v46, %v6927_v35  ;;  %v4758_v40 = vld [vmem:[%s7109_s6 + $0x8] sm:$0xff]  }
 0xa6f   : > { %4455 = vmatpush3.bf16.msra.mxu1 %v4736_v53  ;;  %4434 = vmatprep.subr.bf16.mxu0 %v4737_v28  ;;  %v3610_v44 = vsel %vm669_vm0, %v3606_v17, %v6925_v3  ;;  %v3615_v30 = vpack.c.bf16 %v3611_v19, %v3611_v19  ;;  %v4759_v56 = vld [vmem:[%s7109_s6 + $0x10] sm:$0xff]   ;;  %v4760_v51 = vld [vmem:[%s7109_s6 + $0x18] sm:$0xff]   ;;  %v4761_v49 = vld [vmem:[%s7109_s6 + $0x20] sm:$0xff]  }
 0xa70   : > { %4456 = vmatprep.subr.bf16.mxu1 %v4738_v27  ;;  %3911 = vmatprep.mubr.bf16.mxu0 %v3613_v18  ;;  %v3614_v31 = vpack.c.bf16 %v3610_v44, %v3610_v44  ;;  %v4762_v48 = vld [vmem:[%s7109_s6 + $0x28] sm:$0xff]   ;;  %v4763_v43 = vld [vmem:[%s7109_s6 + $0x30] sm:$0xff]   ;;  %v4764_v10 = vld [vmem:[%s7109_s6 + $0x38] sm:$0xff]  }
 0xa71   : > { %3951 = vmatprep.mubr.bf16.mxu1 %v3615_v30  ;;  %v4380_v59 = vld [vmem:[%s7108_s5] ss:$0 sm:$0xff] }
 0xa72   : > { %4435 = vmatpush3.bf16.msra.mxu0 %v4739_v5  ;;  %v4413_v38 = vld [vmem:[%s7110_s7] ss:$0 sm:$0xff] }
 0xa73   : > { %4457 = vmatpush3.bf16.msra.mxu1 %v4740_v36  ;;  %4436 = vmatprep.subr.bf16.mxu0 %v4741_v34 }
 0xa74   : > { %4458 = vmatprep.subr.bf16.mxu1 %v4742_v63 }
 0xa76   : > { %4437 = vmatpush3.bf16.msra.mxu0 %v4743_v54 }
 0xa77   : > { %4459 = vmatpush3.bf16.msra.mxu1 %v4744_v0  ;;  %4438 = vmatprep.subr.bf16.mxu0 %v4745_v62 }
 0xa78   : > { %4460 = vmatprep.subr.bf16.mxu1 %v4746_v11 }
 0xa7a   : > { %4439 = vmatpush3.bf16.msra.mxu0 %v4747_v52 }
 0xa7b   : > { %4461 = vmatpush3.bf16.msra.mxu1 %v4748_v21  ;;  %4440 = vmatprep.subr.bf16.mxu0 %v4749_v47 }
 0xa7c   : > { %4462 = vmatprep.subr.bf16.mxu1 %v4750_v50 }
 0xa7e   : > { %4441 = vmatpush3.bf16.msra.mxu0 %v4751_v6 }
 0xa7f   : > { %4463 = vmatpush3.bf16.msra.mxu1 %v4752_v9  ;;  %4442 = vmatprep.subr.bf16.mxu0 %v4753_v24 }
 0xa80   : > { %4464 = vmatprep.subr.bf16.mxu1 %v4754_v32 }
 0xa82   : > { %4443 = vmatpush3.bf16.msra.mxu0 %v4755_v33 }
 0xa83   : > { %4465 = vmatpush3.bf16.msra.mxu1 %v4756_v26  ;;  %4481 = vmatprep.subr.bf16.mxu0 %v4865_v13 }
 0xa85   : > { %3912 = vmatmul.mubr.bf16.vlgmr.msra.gmra.mrb[0].mxu0 %v3612_v15 }
 0xa86   : > { %4482 = vmatpush3.bf16.msra.mxu0 %v4757_v20  ;;  %3952 = vmatmul.mubr.bf16.vlgmr.msra.gmra.mrb[0].mxu1 %v3614_v31 }
 0xa87   : > { %4483 = vmatprep.subr.bf16.mxu0 %v4865_v13  ;;  %4497 = vmatprep.mubr.msk.bf16.mxu0 %vm4866_vm2, %v4865_v13 }
 0xa8a   : > { %4484 = vmatpush3.bf16.msra.mxu0 %v4758_v40 }
 0xa8b   : > { %4485 = vmatprep.subr.bf16.mxu0 %v4865_v13 }
 0xa8e   : > { %4486 = vmatpush3.bf16.msra.mxu0 %v4759_v56 }
 0xa8f   : > { %4487 = vmatprep.subr.bf16.mxu0 %v4865_v13 }
 0xa92   : > { %4488 = vmatpush3.bf16.msra.mxu0 %v4760_v51 }
 0xa93   : > { %4489 = vmatprep.subr.bf16.mxu0 %v4865_v13 }
 0xa96   : > { %4490 = vmatpush3.bf16.msra.mxu0 %v4761_v49 }
 0xa97   : > { %4491 = vmatprep.subr.bf16.mxu0 %v4865_v13 }
 0xa9a   : > { %4492 = vmatpush3.bf16.msra.mxu0 %v4762_v48 }
 0xa9b   : > { %4493 = vmatprep.subr.bf16.mxu0 %v4865_v13 }
 0xa9e   : > { %4494 = vmatpush3.bf16.msra.mxu0 %v4763_v43 }
 0xa9f   : > { %4495 = vmatprep.subr.bf16.mxu0 %v4865_v13 }
 0xaa2   : > { %4496 = vmatpush3.bf16.msra.mxu0 %v4764_v10 }
 0xb58   : > { %v4444_v12 = vpop.f32.mrb[0].mxu0 }
 0xb59   : > { %v4445_v1 = vpop.f32.mrb[1].mxu0  ;;  %v4466_v42 = vpop.f32.mrb[0].mxu1 }
 0xb5a   : > { %v4446_v2 = vadd.f32 %v4445_v1, %v4444_v12  ;;  %v4447_v58 = vpop.f32.mrb[2].mxu0  ;;  %v4467_v41 = vpop.f32.mrb[1].mxu1 }
 0xb5b   : > { %v4448_v3 = vpop.f32.mrb[3].mxu0  ;;  %v4468_v14 = vadd.f32 %v4467_v41, %v4466_v42  ;;  %v4469_v22 = vpop.f32.mrb[2].mxu1 }
 0xb5c   : > { %v3914_v35 = vadd.f32 %v4446_v2, %v4380_v59  ;;  %v4470_v4 = vpop.f32.mrb[3].mxu1 }
 0xb5e   : > { %v3954_v29 = vadd.f32 %v4468_v14, %v3914_v35 }
 0xb60   : > { %v3959_v8 = vmax.f32 %v3954_v29, 0.0 }
 0xb62   : > { %v3960_v57 = vpack.c.bf16 %v3959_v8, %v3959_v8 }
 0xb64   : > { %4498 = vmatmul.mubr.bf16.vlgmr.msra.gmra.mrb[4].mxu0 %v3960_v57 }
 0xc37   : > { %v4066_v55 = vpop.f32.mrb[4].mxu0 }
 0xc38   : > { %v4067_v16 = vadd.f32 %v4413_v38, %v4066_v55  ;;  %v4499_v25 = vpop.f32.mrb[5].mxu0 }
 0xc39   : > { %v4069_v7 = vpop.f32.mrb[6].mxu0 }
 0xc3a   : > { %4073 = vst.msk [vmem:[#allocation7] sm:$0x3] %vm4072_vm3, %v4067_v16  ;;  %v4500_v53 = vpop.f32.mrb[7].mxu0 }
 0xc3b PF: > { %p4513_p4 = scmp.eq.s32.totalorder %s4932_s9, 1  ;;  %s4867_s25 = smov [#allocation7]  }
 0xc3c   : > { %s4081_s26 = sshll.u32 %s4867_s25, 4  ;;  %s4082_s26 = int_to_ptr.vmem [resolvable:$true] %s4081_s26 }
 0xc3d   : > { %s4795_s27 = scalar_lea.vmem %s4082_s26, 32  ;;  %p4802_p12 = scmp.lt.s32.totalorder %s4082_s26, %s4082_s26 }
 0xc3e   : > { %p4796_p5 = scmp.ne.s32.totalorder %s4082_s26, %s4795_s27  ;;  %p4803_p0 = scmp.lt.s32.totalorder %s4795_s27, %s4795_s27 }
 0xc40   : > { %p4797_p6 = pnand %p4796_p5, %p4513_p4  ;;  %p4804_p1 = por %p4803_p0, %p4802_p12 }
 0xc42   : > { %p4798_p10 = pneg %p4797_p6 }
 0xc44   : > { %p4805_p2 = pnand %p4804_p1, %p4798_p10 }
 0xc46   : > { %4808 = shalt.err (!%p4805_p2)
}
 0xc47   : > { %s4809_s30 = scalar_lea.hbm %s7111_s8, 32 }
 0xc48   : > { %p4810_p11 = scmp.ne.s32.totalorder %s7111_s8, %s4809_s30  ;;  %p4815_p9 = scmp.lt.u32.totalorder %s4809_s30, %s7111_s8 }
 0xc4a   : > { %p4811_p13 = pnand %p4810_p11, %p4513_p4 }
 0xc4c   : > { %p4812_p3 = pneg %p4811_p13 }
 0xc4e   : > { %p4817_p7 = pnand %p4815_p9, %p4812_p3 }
 0xc50   : > { %4820 = shalt.err (!%p4817_p7)
}
 0xc51   : > { %4505 = dma.vmem_to_hbm [thread:$0]  (%p4513_p4), %s4082_s26, 32, %s7111_s8, [#allocation6]  }
 0xc52   : > { %4842 = dma.done.wait (%p4513_p4), [#allocation6], 32  }
 0xc53   : > { %4844 = vsyncadd (%p4513_p4), [#allocation6], 4294967264 }
 0xc54 PF: > { %p19_p8 = scmp.ge.s32.totalorder %s4935_s10, 4   ;;  %s8204_s27 = smov %s4851_s28 }
 0xc55   : > { %s8205_s28 = smov %s4855_s29  ;;  %s8206_s29 = smov %s4945_s13 }
 0xc56   : > { %s8207_s30 = smov %s4935_s10  ;;  %21 = sbr.rel (!%p19_p8) target bundleno = 4 (0x4), region = 114 }
 0xc5d   :  { %4094 = vsyncpa [#allocation5], 1 }
 0xc5e   :  { %4096 = vsyncpa [#allocation5 + $0x1], 1 }
 0xc5f   :  { %4097 = vsyncpa [#allocation6], 1 }
 0xc60   :  { %4099 = vsyncpa [#allocation6 + $0x1], 1 }

</bundles_post_ra>
